<compile_context>
chip_gen: v6e
topology: v6e:2x2x1
jax: 0.10.0
libtpu: 0.0.40
codegen_flags: <defaults>
</compile_context>

<pallas_src>
import functools

import numpy as np
import jax
import jax.numpy as jnp
from jax import lax
from jax.experimental import pallas as pl
from jax.experimental.pallas import tpu as pltpu


# ---------------------------------------------------------------------------
# glue helpers
# ---------------------------------------------------------------------------
def _interp_matrix(src_len: int, dst_len: int) -> np.ndarray:
    """Dense matrix reproducing F.interpolate(mode='linear', align_corners=False)."""
    M = np.zeros((dst_len, src_len), dtype=np.float32)
    if src_len == 1:
        M[:, 0] = 1.0
        return M
    scale = src_len / dst_len
    for i in range(dst_len):
        src = max(scale * (i + 0.5) - 0.5, 0.0)
        i0 = min(int(np.floor(src)), src_len - 1)
        i1 = min(i0 + 1, src_len - 1)
        lam = src - i0
        M[i, i0] += 1.0 - lam
        M[i, i1] += lam
    return M


def init_params(key, output_shape, components=16, mod_rank=16, trans_rank=16,
                asymmetry=1e-3, dtype=jnp.bfloat16):
    """Deterministic synthetic parameters with the shapes from WeightsLib2D.__init__."""
    H, W = output_shape
    ks = jax.random.split(key, 10)
    u = lambda k, s, a: jax.random.uniform(k, s, jnp.float32, -a, a).astype(dtype)
    return dict(
        weights_i=u(ks[0], (1, 1, H, H, 2), 0.15),
        weights_j=u(ks[1], (1, 1, W, W, 2), 0.15),
        weights_base=u(ks[2], (1, 1, H, W, 2), 0.15),
        translate_dynamic=u(ks[3], (1, 1, 1, 2), 1.0),
        rotate_dynamic=u(ks[4], (1, 1, 1, 2), 1.0),
        mod_i=u(ks[5], (1, components, mod_rank, H, 2), 1.0),
        mod_j=u(ks[6], (1, components, mod_rank, W, 2), 1.0),
        inversions=u(ks[7], (1, components, 1, 1, 2), 1.0),
        mod_transformations=u(ks[8], (2 + 2 * trans_rank, components, 2 * components), 0.2),
        projections=(asymmetry * jax.random.normal(ks[9], (1, H, W, 2), jnp.float32)).astype(dtype),
    )


# ---------------------------------------------------------------------------
# Pallas kernel: one grid step == one batch element
# ---------------------------------------------------------------------------
def _wl2d_kernel(asymmetry,
                 mi_ref,    # [2, C, R, H] bf16  (real, imag) planes of mod_i
                 mj_ref,    # [2, C, R, W] bf16
                 pki_ref,   # [1, C, 4H]  f32   lanes: t0r | t0i | g_r | g_i
                 pkj_ref,   # [1, C, 5W]  f32   lanes: t1r | t1i | q_r | q_i | |z_j|^2
                 wbl_ref,   # [2H, 2W]    f32   [[-wb_r, wb_i], [wb_i, wb_r]]
                 wip_ref,   # [2H, 2H]    bf16  [[wi_r, wi_i], [-wi_i, wi_r]]
                 wjp_ref,   # [2W, 2W]    bf16  [[wj_r, wj_i], [-wj_i, wj_r]]
                 pq2_ref,   # [2H, 2W]    f32   [[P, Q], [P, Q]]  (rotate+projection)
                 y_ref,     # [1, 2H, W]  f32   out: [base ; extra]
                 mx_ref):   # [1, 1, 128] f32   out: per-batch max(|mod|^2)
    f32 = jnp.float32
    bf16 = jnp.bfloat16
    H = mi_ref.shape[-1]
    W = mj_ref.shape[-1]

    def packed_dot(lhs_bf, rhs_bf):
        # contract dim 0 of both operands; bf16 in, f32 accumulation.
        return lax.dot_general(lhs_bf, rhs_bf, (((0,), (0,)), ((), ())),
                               preferred_element_type=f32)

    # ---- stage 1: per-batch modulator --------------------------------------
    # mod_i branch: sum_c (mi[c] + t0[c]) * (z_i[c] * conj(inv[c]))
    pki = pki_ref[0]                                  # [C, 4H] f32
    t0r = pki[:, 0:H][:, None, :]
    t0i = pki[:, H:2 * H][:, None, :]
    g_r = pki[:, 2 * H:3 * H][:, None, :]
    g_i = pki[:, 3 * H:4 * H][:, None, :]
    a_r = mi_ref[0] + t0r                             # [C, R, H] (bf16 -> f32 promote)
    a_i = mi_ref[1] + t0i
    Mi_r = jnp.sum(a_r * g_r - a_i * g_i, axis=0)     # [R, H]
    Mi_i = jnp.sum(a_r * g_i + a_i * g_r, axis=0)

    # mod_j branch: sum_c of the inverted component, denom clamped at asymmetry
    pkj = pkj_ref[0]                                  # [C, 5W] f32
    t1r = pkj[:, 0:W][:, None, :]
    t1i = pkj[:, W:2 * W][:, None, :]
    q_r = pkj[:, 2 * W:3 * W][:, None, :]
    q_i = pkj[:, 3 * W:4 * W][:, None, :]
    s_j = pkj[:, 4 * W:5 * W][:, None, :]
    b_r = mj_ref[0] + t1r                             # [C, R, W]
    b_i = mj_ref[1] + t1i
    den = jnp.maximum((b_r * b_r + b_i * b_i) * s_j, asymmetry)
    rec = pl.reciprocal(den, approx=True)             # EUP, off the VALU slot
    Mj_r = jnp.sum((b_i * q_i - b_r * q_r) * rec, axis=0)   # [R, W]
    Mj_i = jnp.sum((b_r * q_i + b_i * q_r) * rec, axis=0)

    # block-packed complex matmul: mod = Mi^T @ Mj (contract R) -> [H, 2W]
    lhs = jnp.concatenate([Mi_r, Mi_i], axis=0).astype(bf16)           # [2R, H]
    rhs = jnp.concatenate(
        [jnp.concatenate([Mj_r, Mj_i], axis=1),
         jnp.concatenate([-Mj_i, Mj_r], axis=1)], axis=0).astype(bf16)  # [2R, 2W]
    mod = packed_dot(lhs, rhs)                        # [H, 2W] = [mod_r | mod_i]
    mod_r = mod[:, 0:W]
    mod_i = mod[:, W:2 * W]

    # per-batch max(|mod|^2); the global max / norm_polar scale is applied in
    # the wrapper epilogue (out = base + const + extra / max|mod|).
    m2 = jnp.max(mod_r * mod_r + mod_i * mod_i)
    mx_ref[...] = jnp.zeros((1, 1, 128), f32) + m2

    # standardize the real channel (unbiased std; invariant to the global
    # norm_polar scale, so it can be done before knowing max|mod|).
    hw = H * W
    mean = jnp.sum(mod_r) * (1.0 / hw)
    d = mod_r - mean
    var = jnp.sum(d * d) * (1.0 / (hw - 1))
    sr = d * lax.rsqrt(var)

    # ---- stage 2: dynamic weights; base/extra paths batched in one matmul --
    # LHS1 = [[-wb_r*sr, wb_i*mod_i], [wb_i*sr, wb_r*mod_i]]  (= wbl * sm2)
    sm = jnp.concatenate([sr, mod_i], axis=1)         # [H, 2W]
    sm2 = jnp.concatenate([sm, sm], axis=0)           # [2H, 2W]
    lhs1 = (wbl_ref[...] * sm2).astype(bf16)          # [2H, 2W]
    r1 = packed_dot(lhs1, wip_ref[...])               # [2W, 2H]
    #   r1[0:W, 0:H]=wd2A_r  r1[0:W, H:2H]=wd2A_i  r1[W:2W, *]= path B

    # 2x2 block swap so real/imag sit along the contract dim for the next dot
    lhs2 = jnp.concatenate(
        [jnp.concatenate([r1[0:W, 0:H], r1[W:2 * W, 0:H]], axis=1),
         jnp.concatenate([r1[0:W, H:2 * H], r1[W:2 * W, H:2 * H]], axis=1)],
        axis=0).astype(bf16)                          # [2W, 2H]
    r2 = packed_dot(lhs2, wjp_ref[...])               # [2H, 2W]
    #   r2[0:H, 0:W]=wd3A_r  r2[0:H, W:2W]=wd3A_i  r2[H:2H, *]= path B

    # rotate + projection folded into the pq2 multiplier (glue-precomputed)
    t = r2 * pq2_ref[...]                             # [2H, 2W]
    y_ref[0, 0:H, :] = t[0:H, 0:W] + t[0:H, W:2 * W]          # base  (path A)
    y_ref[0, H:2 * H, :] = t[H:2 * H, 0:W] + t[H:2 * H, W:2 * W]  # extra (path B)


# ---------------------------------------------------------------------------
# forward wrapper (glue + pallas_call + linear epilogue)
# ---------------------------------------------------------------------------
def weights_lib_2d_forward(x, params, *, asymmetry=1e-3, eps=1e-5):
    f32 = jnp.float32
    bf16 = jnp.bfloat16
    mt = params['mod_transformations'].astype(f32)            # [K, C, 2C]
    K, C, _ = mt.shape
    T = (K - 2) // 2
    R = params['mod_i'].shape[2]
    H = params['mod_i'].shape[3]
    W = params['mod_j'].shape[3]
    B = x.shape[0]

    # --- transformations einsum + 1-D linear interpolation (dense matrix)
    trans = jnp.einsum('ij,kjl->ikl', x.astype(f32), mt).reshape(B, K, C, 2)
    t0, t1 = trans[:, 0], trans[:, 1]                         # [B, C, 2]
    ti = trans[:, 2:2 + T]                                    # [B, T, C, 2]
    tj = trans[:, 2 + T:2 + 2 * T]
    Ih = jnp.asarray(_interp_matrix(T, H))
    Iw = jnp.asarray(_interp_matrix(T, W))
    z_i = jnp.einsum('ht,btcp->bchp', Ih, ti)                 # [B, C, H, 2]
    z_j = jnp.einsum('wt,btcp->bcwp', Iw, tj)                 # [B, C, W, 2]

    # --- fold inversions into tiny per-(b,c) factors (exact complex algebra)
    inv = params['inversions'][0, :, 0, 0, :].astype(f32)     # [C, 2]
    invr = inv[:, 0][None, :, None]
    invi = inv[:, 1][None, :, None]
    zir, zii = z_i[..., 0], z_i[..., 1]                       # [B, C, H]
    zjr, zji = z_j[..., 0], z_j[..., 1]                       # [B, C, W]
    g_r = zir * invr + zii * invi                             # z_i * conj(inv)
    g_i = zii * invr - zir * invi
    q_r = zjr * invr - zji * invi                             # z_j * inv
    q_i = zjr * invi + zji * invr
    s_j = zjr * zjr + zji * zji                               # |z_j|^2

    # --- lane-dense per-batch slabs (dense 128-lane HBM->VMEM rows)
    t0r = jnp.broadcast_to(t0[:, :, 0:1], (B, C, H))
    t0i = jnp.broadcast_to(t0[:, :, 1:2], (B, C, H))
    t1r = jnp.broadcast_to(t1[:, :, 0:1], (B, C, W))
    t1i = jnp.broadcast_to(t1[:, :, 1:2], (B, C, W))
    pk_i = jnp.concatenate([t0r, t0i, g_r, g_i], axis=-1)          # [B, C, 4H] f32
    pk_j = jnp.concatenate([t1r, t1i, q_r, q_i, s_j], axis=-1)     # [B, C, 5W] f32

    # --- static bf16 params, planar real/imag (cast happens in-kernel where needed)
    mi = jnp.moveaxis(params['mod_i'][0], -1, 0)              # [2, C, R, H] bf16
    mj = jnp.moveaxis(params['mod_j'][0], -1, 0)              # [2, C, R, W] bf16

    # weights_base mix matrix for the (base | extra) path-stacked LHS
    wb = params['weights_base'][0, 0].astype(f32)             # [H, W, 2]
    wbr, wbi = wb[..., 0], wb[..., 1]
    wbl = jnp.concatenate([jnp.concatenate([-wbr, wbi], axis=1),
                           jnp.concatenate([wbi, wbr], axis=1)], axis=0)   # [2H,2W] f32

    # block-packed complex-matmul RHS for weights_i / weights_j (stay bf16)
    wi = params['weights_i'][0, 0]                            # [H, H, 2] bf16
    wip = jnp.concatenate([jnp.concatenate([wi[..., 0], wi[..., 1]], axis=1),
                           jnp.concatenate([-wi[..., 1], wi[..., 0]], axis=1)],
                          axis=0)                             # [2H, 2H] bf16
    wj = params['weights_j'][0, 0]                            # [W, W, 2] bf16
    wjp = jnp.concatenate([jnp.concatenate([wj[..., 0], wj[..., 1]], axis=1),
                           jnp.concatenate([-wj[..., 1], wj[..., 0]], axis=1)],
                          axis=0)                             # [2W, 2W] bf16

    # rotate + projection folded into per-pixel coefficients P, Q and a constant
    pj = params['projections'][0].astype(f32)                 # [H, W, 2]
    pr, pi = pj[..., 0], pj[..., 1]
    pden = jnp.sqrt(pr * pr + pi * pi + eps)
    th_cos = pr / pden
    th_sin = pi / pden
    rot = params['rotate_dynamic'].astype(f32).reshape(2)
    tr = params['translate_dynamic'].astype(f32).reshape(2)
    P = rot[1] * th_sin - rot[0] * th_cos                     # coeff of real part
    Q = rot[1] * th_cos + rot[0] * th_sin                     # coeff of imag part
    pq = jnp.concatenate([P, Q], axis=1)                      # [H, 2W]
    pq2 = jnp.concatenate([pq, pq], axis=0)                   # [2H, 2W] f32
    const = tr[0] * P + tr[1] * Q                             # [H, W]  (epilogue only)

    kernel = functools.partial(_wl2d_kernel, float(asymmetry))
    y, maxsq = pl.pallas_call(
        kernel,
        grid=(B,),
        in_specs=[
            pl.BlockSpec((2, C, R, H), lambda b: (0, 0, 0, 0)),   # mod_i (bf16)
            pl.BlockSpec((2, C, R, W), lambda b: (0, 0, 0, 0)),   # mod_j (bf16)
            pl.BlockSpec((1, C, 4 * H), lambda b: (b, 0, 0)),     # pk_i  (f32)
            pl.BlockSpec((1, C, 5 * W), lambda b: (b, 0, 0)),     # pk_j  (f32)
            pl.BlockSpec((2 * H, 2 * W), lambda b: (0, 0)),       # wbl   (f32)
            pl.BlockSpec((2 * H, 2 * H), lambda b: (0, 0)),       # wip   (bf16)
            pl.BlockSpec((2 * W, 2 * W), lambda b: (0, 0)),       # wjp   (bf16)
            pl.BlockSpec((2 * H, 2 * W), lambda b: (0, 0)),       # pq2   (f32)
        ],
        out_specs=[
            pl.BlockSpec((1, 2 * H, W), lambda b: (b, 0, 0)),     # [base ; extra]
            pl.BlockSpec((1, 1, 128), lambda b: (b, 0, 0)),       # max(|mod|^2)
        ],
        out_shape=[
            jax.ShapeDtypeStruct((B, 2 * H, W), jnp.float32),
            jax.ShapeDtypeStruct((B, 1, 128), jnp.float32),
        ],
        compiler_params=pltpu.CompilerParams(
            dimension_semantics=("parallel",),
            vmem_limit_bytes=8 * 1024 * 1024),
    )(mi, mj, pk_i, pk_j, wbl, wip, wjp, pq2)

    # --- linear epilogue: norm_polar's global scale + translate constant.
    # (If mod is identically zero, inv_mx is inf, matching the reference's
    # divide-by-zero behaviour.)
    inv_mx = lax.rsqrt(jnp.max(maxsq))                        # 1 / max(|mod|)
    out = y[:, 0:H, :] + const[None] + inv_mx * y[:, H:2 * H, :]
    return out.astype(params['weights_base'].dtype)


# ---------------------------------------------------------------------------
# pure-JAX reference (torch op order; bf16 matmul operands like the module)
# ---------------------------------------------------------------------------
def reference_forward(x, params, *, asymmetry=1e-3, eps=1e-5):
    f32, bf16 = jnp.float32, jnp.bfloat16
    mt = params['mod_transformations'].astype(f32)
    K, C, _ = mt.shape
    T = (K - 2) // 2
    H = params['mod_i'].shape[3]
    W = params['mod_j'].shape[3]
    B = x.shape[0]

    trans = jnp.einsum('ij,kjl->ikl', x.astype(f32), mt).reshape(B, K, C, 2)
    t0, t1 = trans[:, 0], trans[:, 1]
    ti = trans[:, 2:2 + T]
    tj = trans[:, 2 + T:2 + 2 * T]
    Ih = jnp.asarray(_interp_matrix(T, H))
    Iw = jnp.asarray(_interp_matrix(T, W))
    z_i = jnp.einsum('ht,btcp->bchp', Ih, ti)
    z_j = jnp.einsum('wt,btcp->bcwp', Iw, tj)

    mi = params['mod_i'][0].astype(f32)                       # [C, R, H, 2]
    mj = params['mod_j'][0].astype(f32)
    inv = params['inversions'][0].astype(f32)                 # [C, 1, 1, 2]
    vr = inv[None, :, :, :, 0]
    vi = inv[None, :, :, :, 1]

    # mod_i branch (step-by-step, torch op order)
    a_r = mi[None, ..., 0] + t0[:, :, None, None, 0]
    a_i = mi[None, ..., 1] + t0[:, :, None, None, 1]
    zr = z_i[:, :, None, :, 0]
    zi = z_i[:, :, None, :, 1]
    r1 = a_i * zi - a_r * zr
    i1 = a_r * zi + a_i * zr
    r2 = i1 * vi - r1 * vr
    i2 = r1 * vi + i1 * vr
    Mi_r, Mi_i = r2.sum(axis=1), i2.sum(axis=1)               # [B, R, H]

    # mod_j branch
    a_r = mj[None, ..., 0] + t1[:, :, None, None, 0]
    a_i = mj[None, ..., 1] + t1[:, :, None, None, 1]
    zr = z_j[:, :, None, :, 0]
    zi = z_j[:, :, None, :, 1]
    br = a_i * zi - a_r * zr
    bi = a_r * zi + a_i * zr
    den = br * br + bi * bi
    den = jnp.where(den < asymmetry, asymmetry, den)
    rr = (vr * br + vi * bi) / den
    ri = (vr * bi - vi * br) / den
    Mj_r, Mj_i = rr.sum(axis=1), ri.sum(axis=1)               # [B, R, W]

    def cmm(ar, ai, br_, bi_, eq):
        e = lambda u, v: jnp.einsum(eq, u.astype(bf16), v.astype(bf16),
                                    preferred_element_type=f32)
        return e(ar, br_) - e(ai, bi_), e(ar, bi_) + e(ai, br_)

    modr, modi = cmm(Mi_r, Mi_i, Mj_r, Mj_i, 'brh,brw->bhw')

    mx = jnp.max(jnp.sqrt(modr ** 2 + modi ** 2))
    mr, mi_ = modr / mx, modi / mx
    mean = jnp.mean(mr, axis=(-1, -2), keepdims=True)
    std = jnp.std(mr, axis=(-1, -2), keepdims=True, ddof=1)
    m_r = (mr - mean) / std
    m_i = mi_

    wb = params['weights_base'][0, 0].astype(f32)
    wi = params['weights_i'][0, 0].astype(f32)
    wj = params['weights_j'][0, 0].astype(f32)
    pj = params['projections'][0].astype(f32)
    wbr, wbi = wb[..., 0], wb[..., 1]
    wd_r = wbi * m_i - wbr * m_r
    wd_i = wbr * m_i + wbi * m_r
    wd2_r, wd2_i = cmm(wd_r, wd_i, wi[..., 0], wi[..., 1], 'bhw,hk->bwk')
    wd3_r, wd3_i = cmm(wd2_r, wd2_i, wj[..., 0], wj[..., 1], 'bwh,wk->bhk')

    tr = params['translate_dynamic'].astype(f32).reshape(2)
    rot = params['rotate_dynamic'].astype(f32).reshape(2)
    xr = wd3_r + tr[0]
    xi = wd3_i + tr[1]
    fr = xi * rot[1] - xr * rot[0]
    fi = xr * rot[1] + xi * rot[0]
    pden = jnp.sqrt(pj[..., 0] ** 2 + pj[..., 1] ** 2 + eps)
    out = fr * (pj[..., 0] / pden) + fi * (pj[..., 1] / pden)
    return out.astype(params['weights_base'].dtype)


# ---------------------------------------------------------------------------
if __name__ == "__main__":
    H, W = 32, 32          # output_shape
    C, R, T = 16, 16, 16   # components_count, mod_rank, transformations_rank
    B = 2                  # batch

    key = jax.random.PRNGKey(0)
    kp, kx = jax.random.split(key)
    params = init_params(kp, (H, W), components=C, mod_rank=R, trans_rank=T)
    x = jax.random.normal(kx, (B, C), jnp.float32)

    out = jax.block_until_ready(jax.jit(weights_lib_2d_forward)(x, params))
    assert out.shape == (B, H, W), out.shape
    assert out.dtype == jnp.bfloat16, out.dtype
    assert bool(jnp.isfinite(out.astype(jnp.float32)).all())

    ref = jax.block_until_ready(reference_forward(x, params))
    out_f = out.astype(jnp.float32)
    ref_f = ref.astype(jnp.float32)
    rel_err = float(jnp.max(jnp.abs(out_f - ref_f)) / (jnp.max(jnp.abs(ref_f)) + 1e-6))
    # Tolerance: both sides feed the matmuls with bf16 operands (the module's
    # native dtype).  The kernel uses the exact 4-mult block-packed complex
    # matmul (no Gauss recombination), so the residual error is dominated by
    # the shared bf16 quantisation plus the approximate EUP reciprocal.
    assert rel_err < 3e-2, f"kernel/reference mismatch: rel_err={rel_err}"

    print("KERNEL_OK")
</pallas_src>

<mosaic_0001>
module attributes {stable_mosaic.version = 11 : i64} {
  func.func @_wl2d_kernel(%arg0: i32, %arg1: memref<2x16x16x32xbf16, #tpu.memory_space<vmem>>, %arg2: memref<2x16x16x32xbf16, #tpu.memory_space<vmem>>, %arg3: memref<1x16x128xf32, #tpu.memory_space<vmem>>, %arg4: memref<1x16x160xf32, #tpu.memory_space<vmem>>, %arg5: memref<64x64xf32, #tpu.memory_space<vmem>>, %arg6: memref<64x64xbf16, #tpu.memory_space<vmem>>, %arg7: memref<64x64xbf16, #tpu.memory_space<vmem>>, %arg8: memref<64x64xf32, #tpu.memory_space<vmem>>, %arg9: memref<1x64x32xf32, #tpu.memory_space<vmem>>, %arg10: memref<1x1x128xf32, #tpu.memory_space<vmem>>) attributes {dimension_semantics = [#tpu.dimension_semantics<parallel>], iteration_bounds = array<i64: 2>, scalar_prefetch = 0 : i64, scratch_operands = 0 : i64, tpu.core_type = #tpu.core_type<tc>, window_params = [{pipeline_mode = #tpu.pipeline_mode<synchronous>, transform_indices = @transform_0, window_bounds = array<i64: 2, 16, 16, 32>}, {pipeline_mode = #tpu.pipeline_mode<synchronous>, transform_indices = @transform_1, window_bounds = array<i64: 2, 16, 16, 32>}, {transform_indices = @transform_2, window_bounds = array<i64: 1, 16, 128>}, {transform_indices = @transform_3, window_bounds = array<i64: 1, 16, 160>}, {pipeline_mode = #tpu.pipeline_mode<synchronous>, transform_indices = @transform_4, window_bounds = array<i64: 64, 64>}, {pipeline_mode = #tpu.pipeline_mode<synchronous>, transform_indices = @transform_5, window_bounds = array<i64: 64, 64>}, {pipeline_mode = #tpu.pipeline_mode<synchronous>, transform_indices = @transform_6, window_bounds = array<i64: 64, 64>}, {pipeline_mode = #tpu.pipeline_mode<synchronous>, transform_indices = @transform_7, window_bounds = array<i64: 64, 64>}, {transform_indices = @transform_8, window_bounds = array<i64: 1, 64, 32>}, {transform_indices = @transform_9, window_bounds = array<i64: 1, 1, 128>}]} {
    %c0 = arith.constant 0 : index
    %c0_0 = arith.constant 0 : index
    %c0_1 = arith.constant 0 : index
    %0 = vector.load %arg3[%c0, %c0_0, %c0_1] : memref<1x16x128xf32, #tpu.memory_space<vmem>>, vector<1x16x128xf32>
    %1 = vector.shape_cast %0 : vector<1x16x128xf32> to vector<16x128xf32>
    %2 = vector.extract_strided_slice %1 {offsets = [0, 0], sizes = [16, 32], strides = [1, 1]} : vector<16x128xf32> to vector<16x32xf32>
    %3 = vector.shape_cast %2 : vector<16x32xf32> to vector<16x1x32xf32>
    %4 = vector.extract_strided_slice %1 {offsets = [0, 32], sizes = [16, 32], strides = [1, 1]} : vector<16x128xf32> to vector<16x32xf32>
    %5 = vector.shape_cast %4 : vector<16x32xf32> to vector<16x1x32xf32>
    %6 = vector.extract_strided_slice %1 {offsets = [0, 64], sizes = [16, 32], strides = [1, 1]} : vector<16x128xf32> to vector<16x32xf32>
    %7 = vector.shape_cast %6 : vector<16x32xf32> to vector<16x1x32xf32>
    %8 = vector.extract_strided_slice %1 {offsets = [0, 96], sizes = [16, 32], strides = [1, 1]} : vector<16x128xf32> to vector<16x32xf32>
    %9 = vector.shape_cast %8 : vector<16x32xf32> to vector<16x1x32xf32>
    %c0_2 = arith.constant 0 : index
    %c0_3 = arith.constant 0 : index
    %c0_4 = arith.constant 0 : index
    %c0_5 = arith.constant 0 : index
    %10 = vector.load %arg1[%c0_2, %c0_3, %c0_4, %c0_5] : memref<2x16x16x32xbf16, #tpu.memory_space<vmem>>, vector<1x16x16x32xbf16>
    %11 = vector.shape_cast %10 : vector<1x16x16x32xbf16> to vector<16x16x32xbf16>
    %12 = arith.extf %11 : vector<16x16x32xbf16> to vector<16x16x32xf32>
    %13 = vector.broadcast %3 : vector<16x1x32xf32> to vector<16x16x32xf32>
    %14 = arith.addf %12, %13 : vector<16x16x32xf32>
    %c1 = arith.constant 1 : index
    %c0_6 = arith.constant 0 : index
    %c0_7 = arith.constant 0 : index
    %c0_8 = arith.constant 0 : index
    %15 = vector.load %arg1[%c1, %c0_6, %c0_7, %c0_8] : memref<2x16x16x32xbf16, #tpu.memory_space<vmem>>, vector<1x16x16x32xbf16>
    %16 = vector.shape_cast %15 : vector<1x16x16x32xbf16> to vector<16x16x32xbf16>
    %17 = arith.extf %16 : vector<16x16x32xbf16> to vector<16x16x32xf32>
    %18 = vector.broadcast %5 : vector<16x1x32xf32> to vector<16x16x32xf32>
    %19 = arith.addf %17, %18 : vector<16x16x32xf32>
    %20 = vector.broadcast %7 : vector<16x1x32xf32> to vector<16x16x32xf32>
    %21 = arith.mulf %14, %20 : vector<16x16x32xf32>
    %22 = vector.broadcast %9 : vector<16x1x32xf32> to vector<16x16x32xf32>
    %23 = arith.mulf %19, %22 : vector<16x16x32xf32>
    %24 = arith.subf %21, %23 : vector<16x16x32xf32>
    %cst = arith.constant dense<0.000000e+00> : vector<16x32xf32>
    %25 = vector.multi_reduction <add>, %24, %cst [0] : vector<16x16x32xf32> to vector<16x32xf32>
    %26 = vector.broadcast %9 : vector<16x1x32xf32> to vector<16x16x32xf32>
    %27 = arith.mulf %14, %26 : vector<16x16x32xf32>
    %28 = vector.broadcast %7 : vector<16x1x32xf32> to vector<16x16x32xf32>
    %29 = arith.mulf %19, %28 : vector<16x16x32xf32>
    %30 = arith.addf %27, %29 : vector<16x16x32xf32>
    %cst_9 = arith.constant dense<0.000000e+00> : vector<16x32xf32>
    %31 = vector.multi_reduction <add>, %30, %cst_9 [0] : vector<16x16x32xf32> to vector<16x32xf32>
    %c0_10 = arith.constant 0 : index
    %c0_11 = arith.constant 0 : index
    %c0_12 = arith.constant 0 : index
    %32 = vector.load %arg4[%c0_10, %c0_11, %c0_12] : memref<1x16x160xf32, #tpu.memory_space<vmem>>, vector<1x16x160xf32>
    %33 = vector.shape_cast %32 : vector<1x16x160xf32> to vector<16x160xf32>
    %34 = vector.extract_strided_slice %33 {offsets = [0, 0], sizes = [16, 32], strides = [1, 1]} : vector<16x160xf32> to vector<16x32xf32>
    %35 = vector.shape_cast %34 : vector<16x32xf32> to vector<16x1x32xf32>
    %36 = vector.extract_strided_slice %33 {offsets = [0, 32], sizes = [16, 32], strides = [1, 1]} : vector<16x160xf32> to vector<16x32xf32>
    %37 = vector.shape_cast %36 : vector<16x32xf32> to vector<16x1x32xf32>
    %38 = vector.extract_strided_slice %33 {offsets = [0, 64], sizes = [16, 32], strides = [1, 1]} : vector<16x160xf32> to vector<16x32xf32>
    %39 = vector.shape_cast %38 : vector<16x32xf32> to vector<16x1x32xf32>
    %40 = vector.extract_strided_slice %33 {offsets = [0, 96], sizes = [16, 32], strides = [1, 1]} : vector<16x160xf32> to vector<16x32xf32>
    %41 = vector.shape_cast %40 : vector<16x32xf32> to vector<16x1x32xf32>
    %42 = vector.extract_strided_slice %33 {offsets = [0, 128], sizes = [16, 32], strides = [1, 1]} : vector<16x160xf32> to vector<16x32xf32>
    %43 = vector.shape_cast %42 : vector<16x32xf32> to vector<16x1x32xf32>
    %c0_13 = arith.constant 0 : index
    %c0_14 = arith.constant 0 : index
    %c0_15 = arith.constant 0 : index
    %c0_16 = arith.constant 0 : index
    %44 = vector.load %arg2[%c0_13, %c0_14, %c0_15, %c0_16] : memref<2x16x16x32xbf16, #tpu.memory_space<vmem>>, vector<1x16x16x32xbf16>
    %45 = vector.shape_cast %44 : vector<1x16x16x32xbf16> to vector<16x16x32xbf16>
    %46 = arith.extf %45 : vector<16x16x32xbf16> to vector<16x16x32xf32>
    %47 = vector.broadcast %35 : vector<16x1x32xf32> to vector<16x16x32xf32>
    %48 = arith.addf %46, %47 : vector<16x16x32xf32>
    %c1_17 = arith.constant 1 : index
    %c0_18 = arith.constant 0 : index
    %c0_19 = arith.constant 0 : index
    %c0_20 = arith.constant 0 : index
    %49 = vector.load %arg2[%c1_17, %c0_18, %c0_19, %c0_20] : memref<2x16x16x32xbf16, #tpu.memory_space<vmem>>, vector<1x16x16x32xbf16>
    %50 = vector.shape_cast %49 : vector<1x16x16x32xbf16> to vector<16x16x32xbf16>
    %51 = arith.extf %50 : vector<16x16x32xbf16> to vector<16x16x32xf32>
    %52 = vector.broadcast %37 : vector<16x1x32xf32> to vector<16x16x32xf32>
    %53 = arith.addf %51, %52 : vector<16x16x32xf32>
    %54 = arith.mulf %48, %48 : vector<16x16x32xf32>
    %55 = arith.mulf %53, %53 : vector<16x16x32xf32>
    %56 = arith.addf %54, %55 : vector<16x16x32xf32>
    %57 = vector.broadcast %43 : vector<16x1x32xf32> to vector<16x16x32xf32>
    %58 = arith.mulf %56, %57 : vector<16x16x32xf32>
    %cst_21 = arith.constant 1.000000e-03 : f32
    %59 = vector.broadcast %cst_21 : f32 to vector<16x16x32xf32>
    %60 = arith.maximumf %58, %59 : vector<16x16x32xf32>
    %61 = tpu.reciprocal %60 {approx = true} : vector<16x16x32xf32> -> vector<16x16x32xf32>
    %62 = vector.broadcast %41 : vector<16x1x32xf32> to vector<16x16x32xf32>
    %63 = arith.mulf %53, %62 : vector<16x16x32xf32>
    %64 = vector.broadcast %39 : vector<16x1x32xf32> to vector<16x16x32xf32>
    %65 = arith.mulf %48, %64 : vector<16x16x32xf32>
    %66 = arith.subf %63, %65 : vector<16x16x32xf32>
    %67 = arith.mulf %66, %61 : vector<16x16x32xf32>
    %cst_22 = arith.constant dense<0.000000e+00> : vector<16x32xf32>
    %68 = vector.multi_reduction <add>, %67, %cst_22 [0] : vector<16x16x32xf32> to vector<16x32xf32>
    %69 = vector.broadcast %41 : vector<16x1x32xf32> to vector<16x16x32xf32>
    %70 = arith.mulf %48, %69 : vector<16x16x32xf32>
    %71 = vector.broadcast %39 : vector<16x1x32xf32> to vector<16x16x32xf32>
    %72 = arith.mulf %53, %71 : vector<16x16x32xf32>
    %73 = arith.addf %70, %72 : vector<16x16x32xf32>
    %74 = arith.mulf %73, %61 : vector<16x16x32xf32>
    %cst_23 = arith.constant dense<0.000000e+00> : vector<16x32xf32>
    %75 = vector.multi_reduction <add>, %74, %cst_23 [0] : vector<16x16x32xf32> to vector<16x32xf32>
    %76 = tpu.concatenate %25, %31 in 0 : vector<16x32xf32>, vector<16x32xf32> -> vector<32x32xf32>
    %77 = arith.truncf %76 : vector<32x32xf32> to vector<32x32xbf16>
    %78 = tpu.concatenate %68, %75 in 1 : vector<16x32xf32>, vector<16x32xf32> -> vector<16x64xf32>
    %cst_24 = arith.constant 0.000000e+00 : f32
    %79 = vector.broadcast %cst_24 : f32 to vector<16x32xf32>
    %80 = arith.subf %79, %75 : vector<16x32xf32>
    %81 = tpu.concatenate %80, %68 in 1 : vector<16x32xf32>, vector<16x32xf32> -> vector<16x64xf32>
    %82 = tpu.concatenate %78, %81 in 0 : vector<16x64xf32>, vector<16x64xf32> -> vector<32x64xf32>
    %83 = arith.truncf %82 : vector<32x64xf32> to vector<32x64xbf16>
    %cst_25 = arith.constant dense<0.000000e+00> : vector<32x64xf32>
    %84 = tpu.matmul %77, %83, %cst_25 {dimension_numbers = #tpu.dot_dimension_numbers<[0], [0], [1], [1], [0, 1, 1, 1], [], []>} : vector<32x32xbf16>, vector<32x64xbf16>, vector<32x64xf32> -> vector<32x64xf32>
    %85 = vector.extract_strided_slice %84 {offsets = [0, 0], sizes = [32, 32], strides = [1, 1]} : vector<32x64xf32> to vector<32x32xf32>
    %86 = vector.extract_strided_slice %84 {offsets = [0, 32], sizes = [32, 32], strides = [1, 1]} : vector<32x64xf32> to vector<32x32xf32>
    %87 = arith.mulf %85, %85 : vector<32x32xf32>
    %88 = arith.mulf %86, %86 : vector<32x32xf32>
    %89 = arith.addf %87, %88 : vector<32x32xf32>
    %90 = vector.shape_cast %89 : vector<32x32xf32> to vector<1x32x32xf32>
    %cst_26 = arith.constant dense<0xFF800000> : vector<1xf32>
    %91 = vector.multi_reduction <maximumf>, %90, %cst_26 [1, 2] : vector<1x32x32xf32> to vector<1xf32>
    %92 = vector.shape_cast %91 : vector<1xf32> to vector<1x1x1xf32>
    %93 = vector.extract %92[0, 0, 0] : f32 from vector<1x1x1xf32>
    %cst_27 = arith.constant 0.000000e+00 : f32
    %94 = vector.broadcast %cst_27 : f32 to vector<1x1x128xf32>
    %95 = vector.broadcast %93 : f32 to vector<1x1x128xf32>
    %96 = arith.addf %94, %95 : vector<1x1x128xf32>
    %c0_28 = arith.constant 0 : index
    %c0_29 = arith.constant 0 : index
    %c0_30 = arith.constant 0 : index
    %97 = vector.load %arg10[%c0_28, %c0_29, %c0_30] : memref<1x1x128xf32, #tpu.memory_space<vmem>>, vector<1x1x128xf32>
    tpu.vector_store %arg10[%c0_28, %c0_29, %c0_30], %96 {strides = array<i32>} : memref<1x1x128xf32, #tpu.memory_space<vmem>>, vector<1x1x128xf32>,
    %98 = vector.shape_cast %85 : vector<32x32xf32> to vector<1x32x32xf32>
    %cst_31 = arith.constant dense<0.000000e+00> : vector<1xf32>
    %99 = vector.multi_reduction <add>, %98, %cst_31 [1, 2] : vector<1x32x32xf32> to vector<1xf32>
    %100 = vector.shape_cast %99 : vector<1xf32> to vector<1x1x1xf32>
    %101 = vector.extract %100[0, 0, 0] : f32 from vector<1x1x1xf32>
    %cst_32 = arith.constant 9.765625E-4 : f32
    %102 = arith.mulf %101, %cst_32 : f32
    %103 = vector.broadcast %102 : f32 to vector<32x32xf32>
    %104 = arith.subf %85, %103 : vector<32x32xf32>
    %105 = arith.mulf %104, %104 : vector<32x32xf32>
    %106 = vector.shape_cast %105 : vector<32x32xf32> to vector<1x32x32xf32>
    %cst_33 = arith.constant dense<0.000000e+00> : vector<1xf32>
    %107 = vector.multi_reduction <add>, %106, %cst_33 [1, 2] : vector<1x32x32xf32> to vector<1xf32>
    %108 = vector.shape_cast %107 : vector<1xf32> to vector<1x1x1xf32>
    %109 = vector.extract %108[0, 0, 0] : f32 from vector<1x1x1xf32>
    %cst_34 = arith.constant 9.77517105E-4 : f32
    %110 = arith.mulf %109, %cst_34 : f32
    %111 = math.rsqrt %110 : f32
    %112 = vector.broadcast %111 : f32 to vector<32x32xf32>
    %113 = arith.mulf %104, %112 : vector<32x32xf32>
    %114 = tpu.concatenate %113, %86 in 1 : vector<32x32xf32>, vector<32x32xf32> -> vector<32x64xf32>
    %115 = tpu.concatenate %114, %114 in 0 : vector<32x64xf32>, vector<32x64xf32> -> vector<64x64xf32>
    %c0_35 = arith.constant 0 : index
    %c0_36 = arith.constant 0 : index
    %116 = vector.load %arg5[%c0_35, %c0_36] : memref<64x64xf32, #tpu.memory_space<vmem>>, vector<64x64xf32>
    %117 = arith.mulf %116, %115 : vector<64x64xf32>
    %118 = arith.truncf %117 : vector<64x64xf32> to vector<64x64xbf16>
    %c0_37 = arith.constant 0 : index
    %c0_38 = arith.constant 0 : index
    %119 = vector.load %arg6[%c0_37, %c0_38] : memref<64x64xbf16, #tpu.memory_space<vmem>>, vector<64x64xbf16>
    %cst_39 = arith.constant dense<0.000000e+00> : vector<64x64xf32>
    %120 = tpu.matmul %118, %119, %cst_39 {dimension_numbers = #tpu.dot_dimension_numbers<[0], [0], [1], [1], [0, 1, 1, 1], [], []>} : vector<64x64xbf16>, vector<64x64xbf16>, vector<64x64xf32> -> vector<64x64xf32>
    %121 = vector.extract_strided_slice %120 {offsets = [0, 0], sizes = [32, 32], strides = [1, 1]} : vector<64x64xf32> to vector<32x32xf32>
    %122 = vector.extract_strided_slice %120 {offsets = [32, 0], sizes = [32, 32], strides = [1, 1]} : vector<64x64xf32> to vector<32x32xf32>
    %123 = tpu.concatenate %121, %122 in 1 : vector<32x32xf32>, vector<32x32xf32> -> vector<32x64xf32>
    %124 = vector.extract_strided_slice %120 {offsets = [0, 32], sizes = [32, 32], strides = [1, 1]} : vector<64x64xf32> to vector<32x32xf32>
    %125 = vector.extract_strided_slice %120 {offsets = [32, 32], sizes = [32, 32], strides = [1, 1]} : vector<64x64xf32> to vector<32x32xf32>
    %126 = tpu.concatenate %124, %125 in 1 : vector<32x32xf32>, vector<32x32xf32> -> vector<32x64xf32>
    %127 = tpu.concatenate %123, %126 in 0 : vector<32x64xf32>, vector<32x64xf32> -> vector<64x64xf32>
    %128 = arith.truncf %127 : vector<64x64xf32> to vector<64x64xbf16>
    %c0_40 = arith.constant 0 : index
    %c0_41 = arith.constant 0 : index
    %129 = vector.load %arg7[%c0_40, %c0_41] : memref<64x64xbf16, #tpu.memory_space<vmem>>, vector<64x64xbf16>
    %cst_42 = arith.constant dense<0.000000e+00> : vector<64x64xf32>
    %130 = tpu.matmul %128, %129, %cst_42 {dimension_numbers = #tpu.dot_dimension_numbers<[0], [0], [1], [1], [0, 1, 1, 1], [], []>} : vector<64x64xbf16>, vector<64x64xbf16>, vector<64x64xf32> -> vector<64x64xf32>
    %c0_43 = arith.constant 0 : index
    %c0_44 = arith.constant 0 : index
    %131 = vector.load %arg8[%c0_43, %c0_44] : memref<64x64xf32, #tpu.memory_space<vmem>>, vector<64x64xf32>
    %132 = arith.mulf %130, %131 : vector<64x64xf32>
    %133 = vector.extract_strided_slice %132 {offsets = [0, 0], sizes = [32, 32], strides = [1, 1]} : vector<64x64xf32> to vector<32x32xf32>
    %134 = vector.extract_strided_slice %132 {offsets = [0, 32], sizes = [32, 32], strides = [1, 1]} : vector<64x64xf32> to vector<32x32xf32>
    %135 = arith.addf %133, %134 : vector<32x32xf32>
    %c0_45 = arith.constant 0 : index
    %c0_46 = arith.constant 0 : index
    %c0_47 = arith.constant 0 : index
    %136 = vector.load %arg9[%c0_45, %c0_46, %c0_47] : memref<1x64x32xf32, #tpu.memory_space<vmem>>, vector<1x32x32xf32>
    %137 = vector.shape_cast %136 : vector<1x32x32xf32> to vector<32x32xf32>
    %138 = vector.shape_cast %135 : vector<32x32xf32> to vector<1x32x32xf32>
    tpu.vector_store %arg9[%c0_45, %c0_46, %c0_47], %138 {strides = array<i32>} : memref<1x64x32xf32, #tpu.memory_space<vmem>>, vector<1x32x32xf32>,
    %139 = vector.extract_strided_slice %132 {offsets = [32, 0], sizes = [32, 32], strides = [1, 1]} : vector<64x64xf32> to vector<32x32xf32>
    %140 = vector.extract_strided_slice %132 {offsets = [32, 32], sizes = [32, 32], strides = [1, 1]} : vector<64x64xf32> to vector<32x32xf32>
    %141 = arith.addf %139, %140 : vector<32x32xf32>
    %c0_48 = arith.constant 0 : index
    %c32 = arith.constant 32 : index
    %c0_49 = arith.constant 0 : index
    %142 = vector.load %arg9[%c0_48, %c32, %c0_49] : memref<1x64x32xf32, #tpu.memory_space<vmem>>, vector<1x32x32xf32>
    %143 = vector.shape_cast %142 : vector<1x32x32xf32> to vector<32x32xf32>
    %144 = vector.shape_cast %141 : vector<32x32xf32> to vector<1x32x32xf32>
    tpu.vector_store %arg9[%c0_48, %c32, %c0_49], %144 {strides = array<i32>} : memref<1x64x32xf32, #tpu.memory_space<vmem>>, vector<1x32x32xf32>,
    return
  }
  func.func @transform_0(%arg0: i32) -> (i32, i32, i32, i32) {
    %c0_i32 = arith.constant 0 : i32
    %c0_i32_0 = arith.constant 0 : i32
    %c0_i32_1 = arith.constant 0 : i32
    %c0_i32_2 = arith.constant 0 : i32
    %c0_i32_3 = arith.constant 0 : i32
    return %c0_i32, %c0_i32_0, %c0_i32_1, %c0_i32_2 : i32, i32, i32, i32
  }
  func.func @transform_1(%arg0: i32) -> (i32, i32, i32, i32) {
    %c0_i32 = arith.constant 0 : i32
    %c0_i32_0 = arith.constant 0 : i32
    %c0_i32_1 = arith.constant 0 : i32
    %c0_i32_2 = arith.constant 0 : i32
    %c0_i32_3 = arith.constant 0 : i32
    return %c0_i32, %c0_i32_0, %c0_i32_1, %c0_i32_2 : i32, i32, i32, i32
  }
  func.func @transform_2(%arg0: i32) -> (i32, i32, i32) {
    %c0_i32 = arith.constant 0 : i32
    %c0_i32_0 = arith.constant 0 : i32
    %c0_i32_1 = arith.constant 0 : i32
    return %arg0, %c0_i32, %c0_i32_0 : i32, i32, i32
  }
  func.func @transform_3(%arg0: i32) -> (i32, i32, i32) {
    %c0_i32 = arith.constant 0 : i32
    %c0_i32_0 = arith.constant 0 : i32
    %c0_i32_1 = arith.constant 0 : i32
    return %arg0, %c0_i32, %c0_i32_0 : i32, i32, i32
  }
  func.func @transform_4(%arg0: i32) -> (i32, i32) {
    %c0_i32 = arith.constant 0 : i32
    %c0_i32_0 = arith.constant 0 : i32
    %c0_i32_1 = arith.constant 0 : i32
    return %c0_i32, %c0_i32_0 : i32, i32
  }
  func.func @transform_5(%arg0: i32) -> (i32, i32) {
    %c0_i32 = arith.constant 0 : i32
    %c0_i32_0 = arith.constant 0 : i32
    %c0_i32_1 = arith.constant 0 : i32
    return %c0_i32, %c0_i32_0 : i32, i32
  }
  func.func @transform_6(%arg0: i32) -> (i32, i32) {
    %c0_i32 = arith.constant 0 : i32
    %c0_i32_0 = arith.constant 0 : i32
    %c0_i32_1 = arith.constant 0 : i32
    return %c0_i32, %c0_i32_0 : i32, i32
  }
  func.func @transform_7(%arg0: i32) -> (i32, i32) {
    %c0_i32 = arith.constant 0 : i32
    %c0_i32_0 = arith.constant 0 : i32
    %c0_i32_1 = arith.constant 0 : i32
    return %c0_i32, %c0_i32_0 : i32, i32
  }
  func.func @transform_8(%arg0: i32) -> (i32, i32, i32) {
    %c0_i32 = arith.constant 0 : i32
    %c0_i32_0 = arith.constant 0 : i32
    %c0_i32_1 = arith.constant 0 : i32
    return %arg0, %c0_i32, %c0_i32_0 : i32, i32, i32
  }
  func.func @transform_9(%arg0: i32) -> (i32, i32, i32) {
    %c0_i32 = arith.constant 0 : i32
    %c0_i32_0 = arith.constant 0 : i32
    %c0_i32_1 = arith.constant 0 : i32
    return %arg0, %c0_i32, %c0_i32_0 : i32, i32, i32
  }
}

</mosaic_0001>

<bundles_post_ra>
// kernel: weights_lib_2d_forward.1
= control target key start
LH: loop header
LB: loop body
LE: loop exit
PB: predicated region body
PF: predicated region fallthrough
CT: control target
= control target key end

     0   :  { %s3807_s30 = smov 0   ;;  %s6101_s0 = inlined_call_operand.vmem [shape: bf16[2,16,16,32], index: 0, kind: input, shape index: {}]   ;;  %s6102_s1 = inlined_call_operand.vmem [shape: bf16[2,16,16,32], index: 1, kind: input, shape index: {}]   ;;  %s6103_s2 = inlined_call_operand.vmem [shape: f32[2,16,128], index: 2, kind: input, shape index: {}]   ;;  %s6104_s3 = inlined_call_operand.vmem [shape: f32[2,16,160], index: 3, kind: input, shape index: {}]   ;;  %s6105_s4 = inlined_call_operand.vmem [shape: f32[64,64], index: 4, kind: input, shape index: {}]   ;;  %s6106_s5 = inlined_call_operand.vmem [shape: bf16[64,64], index: 5, kind: input, shape index: {}]   ;;  %s6107_s6 = inlined_call_operand.vmem [shape: bf16[64,64], index: 6, kind: input, shape index: {}]   ;;  %s6108_s7 = inlined_call_operand.vmem [shape: f32[64,64], index: 7, kind: input, shape index: {}]   ;;  %s6109_s8 = inlined_call_operand.vmem [shape: f32[2,64,32], index: 8, kind: output, shape index: {0}]   ;;  %s6110_s9 = inlined_call_operand.vmem [shape: f32[2,1,128], index: 9, kind: output, shape index: {1}]  }
   0x1 LB: > { %s3138_s10 = sadd.s32 4294967295, %s3751_s30   ;;  %p3142_p0 = scmp.ge.s32.totalorder %s3751_s30, 1  ;;  %s3751_s30 = sphi %s3807_s30, %s20_s30  }
   0x2   : > { %p300_p1 = scmp.lt.s32.totalorder %s3751_s30, 3 }
   0x4   : > { %p301_p2 = pnand %p3142_p0, %p300_p1 }
   0x6   : > { %304 = sbr.rel (%p301_p2) target bundleno = 2198 (0x896), region = 52 }
   0xb   : > { %p344_p3 = scmp.lt.s32.totalorder %s3138_s10, 1  ;;  %v371_v0 = vlaneseq  ;;  %v3753_v1 = vmov 1966171168   ;;  %s3754_s15 = smov 96   ;;  %v3365_v54 = vld [vmem:[%s6102_s1] sm:$0xff]   ;;  %v3524_v56 = vld [vmem:[%s6102_s1 + $0x10] sm:$0xff]  }
   0xc   : > { %v369_v2 = vunpack.c.l.s4 %v3753_v1  ;;  %s3755_s16 = smov 32   ;;  %s3756_s17 = smov 64   ;;  %v3970_v55 = vld [vmem:[%s6102_s1 + $0x80] sm:$0xff]   ;;  %v3984_v59 = vld [vmem:[%s6102_s1 + $0x90] sm:$0xff]   ;;  %v3366_v60 = vunpack.c.l.bf16 %v3365_v54  ;;  %v3367_v62 = vunpack.c.h.bf16 %v3365_v54  ;;  %v3374_v1 = vunpack.c.l.bf16 %v3524_v56 }
   0xd   : > { %s6476_s10 = smov (!%p344_p3, %s3138_s10), 1  ;;  %v372_v3 = vshrl.u32 %v371_v0, 7  ;;  %v3530_v61 = vld [vmem:[%s6102_s1 + $0x40] sm:$0xff]   ;;  %vm978_vm0 = vcmask 261120   ;;  %vm2735_vm1 = vcmask 523264  }
   0xe   : > { %v370_v4 = vunpack.c.0.s8 %v369_v2  ;;  %s3234_s11 = sshll.u32 %s6476_s10, 5  ;;  %s3233_s18 = sshll.u32 %s6476_s10, 4  ;;  %v3996_v2 = vld [vmem:[%s6102_s1 + $0xc0] sm:$0xff]  }
   0xf   : > { %s3821_s14 = scalar_lea.vmem %s6104_s3, %s3234_s11  ;;  %v3827_v8 = vsub.s32 0, %v372_v3  ;;  %s3949_s21 = scalar_lea.vmem %s6103_s2, %s3233_s18 }
  0x10   : > { %v3823_v5 = vsub.s32 %v370_v4, %v372_v3  ;;  %v1199_v6 = vld [vmem:[%s3821_s14] sm:$0xff]  ;;  %v1201_v7 = vld [vmem:[%s3821_s14 + $0x10] sm:$0xff]  ;;  %v3960_v53 = vld [vmem:[%s3821_s14 + $0x8] sm:$0xff]  ;;  %v3375_v4 = vunpack.c.h.bf16 %v3524_v56 }
  0x11   : > { %v1205_v11 = vcombine.high %v1199_v6, %v1199_v6  ;;  %v1254_v39 = vcombine.high %v1201_v7, %v1201_v7  ;;  %v363_v51 = vld [vmem:[%s3949_s21] sm:$0xff]  ;;  %v3523_v56 = vld [vmem:[%s6102_s1 + $0x8] sm:$0xff]  }
  0x12   : > { %v1212_v9 = vrot.slane %v1199_v6, %v3823_v5  ;;  %v1261_v10 = vrot.slane %v1201_v7, %v3823_v5  ;;  %v374_v52 = vrot.slane %v363_v51, %v3823_v5  ;;  %v3979_v58 = vrot.slane %v3960_v53, %v3823_v5 }
  0x13   : > { %v1219_v19 = vrot.slane %v1205_v11, %v3823_v5  ;;  %v1268_v41 = vrot.slane %v1254_v39, %v3823_v5  ;;  %v367_v7 = vcombine.high %v363_v51, %v363_v51 }
  0x14   : > { %v1228_v12 = vrot.slane %v1212_v9, %v3823_v5  ;;  %v1277_v13 = vrot.slane %v1261_v10, %v3823_v5  ;;  %v1269_v14 = vcombine.high %v1261_v10, %v1261_v10  ;;  %v1220_v15 = vcombine.high %v1212_v9, %v1212_v9  ;;  %v4001_v9 = vld [vmem:[%s3821_s14 + $0x18] sm:$0xff]  ;;  %v3531_v10 = vld [vmem:[%s6102_s1 + $0x48] sm:$0xff]   ;;  %s361_s14 = scalar_lea.vmem %s6110_s9, %s6476_s10 }
  0x15   : > { %v1221_v25 = vcombine.high %v1219_v19, %v1219_v19  ;;  %v1235_v27 = vrot.slane %v1219_v19, %v3823_v5  ;;  %v1284_v42 = vrot.slane %v1268_v41, %v3823_v5  ;;  %v1270_v43 = vcombine.high %v1268_v41, %v1268_v41 }
  0x16   : > { %v3834_v16 = vrot.slane %v1228_v12, %v3827_v8  ;;  %v1250_v17 = vcombine.high %v1228_v12, %v1228_v12  ;;  %v1291_v18 = vrot.slane %v1269_v14, %v3823_v5  ;;  %v1242_v20 = vrot.slane %v1220_v15, %v3823_v5  ;;  %v4015_v15 = vld [vmem:[%s6102_s1 + $0xc8] sm:$0xff]  }
  0x17   : > { %v3845_v22 = vrot.slane %v1277_v13, %v3827_v8  ;;  %v1249_v29 = vrot.slane %v1221_v25, %v3823_v5  ;;  %v3867_v30 = vrot.slane %v1235_v27, %v3827_v8  ;;  %v1251_v31 = vcombine.high %v1235_v27, %v1235_v27 }
  0x18   : > { %1644 = vrot.lane.b32.xlu0 %v3834_v16, %s3754_s15  ;;  %v3842_v21 = vrot.slane %v1250_v17, %v3827_v8  ;;  %v3850_v23 = vrot.slane %v1291_v18, %v3827_v8  ;;  %v1252_v24 = vcombine.high %v1242_v20, %v1242_v20  ;;  %v3855_v26 = vrot.slane %v1242_v20, %v3827_v8 }
  0x19   : > { %v3872_v32 = vrot.slane %v1249_v29, %v3827_v8  ;;  %v1253_v33 = vcombine.high %v1249_v29, %v1249_v29  ;;  %v3877_v34 = vrot.slane %v1251_v31, %v3827_v8  ;;  %v1299_v35 = vcombine.high %v1277_v13, %v1277_v13  ;;  %v4157_v13 = vld [vmem:[%s6102_s1 + $0x98] sm:$0xff]  }
  0x1a   : > { %1648 = vrot.lane.b32.xlu1 %v3842_v21, %s3754_s15  ;;  %v3861_v28 = vrot.slane %v1252_v24, %v3827_v8  ;;  %v1301_v37 = vcombine.high %v1291_v18, %v1291_v18  ;;  %v3907_v44 = vrot.slane %v1284_v42, %v3827_v8  ;;  %v1298_v45 = vrot.slane %v1270_v43, %v3823_v5 }
  0x1b   : > { %v3882_v36 = vrot.slane %v1253_v33, %v3827_v8  ;;  %v3887_v38 = vrot.slane %v1299_v35, %v3827_v8  ;;  %v1300_v47 = vcombine.high %v1284_v42, %v1284_v42  ;;  %v382_v57 = vcombine.high %v374_v52, %v374_v52 }
  0x1c   : > { %1660 = vrot.lane.b32.xlu0 %v3845_v22, %s3754_s15  ;;  %v3892_v40 = vrot.slane %v1301_v37, %v3827_v8  ;;  %v3917_v46 = vrot.slane %v1298_v45, %v3827_v8  ;;  %v1302_v49 = vcombine.high %v1298_v45, %v1298_v45  ;;  %v390_v3 = vrot.slane %v374_v52, %v3823_v5 }
  0x1d   : > { %v3926_v48 = vrot.slane %v1300_v47, %v3827_v8  ;;  %v404_v11 = vrot.slane %v382_v57, %v3823_v5  ;;  %v1328_v12 = vrot.slane %v3979_v58, %v3823_v5  ;;  %v3398_v14 = vunpack.c.l.bf16 %v3530_v61 }
  0x1e   : > { %1662 = vrot.lane.b32.xlu1 %v3850_v23, %s3754_s15  ;;  %v3935_v50 = vrot.slane %v1302_v49, %v3827_v8  ;;  %v412_v17 = vcombine.high %v390_v3, %v390_v3  ;;  %v3399_v18 = vunpack.c.h.bf16 %v3530_v61  ;;  %v1361_v25 = vrot.slane %v4001_v9, %v3823_v5 }
  0x1f   : > { %v414_v24 = vcombine.high %v404_v11, %v404_v11  ;;  %v3402_v27 = vunpack.c.l.bf16 %v3531_v10  ;;  %v3403_v29 = vunpack.c.h.bf16 %v3531_v10  ;;  %v4024_v31 = vadd.f32 %v3366_v60, %v3834_v16 }
  0x20   : > { %1646 = vrot.lane.b32.xlu0 %v3855_v26, %s3754_s15  ;;  %v4027_v33 = vadd.f32 %v3367_v62, %v3834_v16  ;;  %v381_v35 = vrot.slane %v367_v7, %v3823_v5  ;;  %v4034_v39 = vrot.slane %v390_v3, %v3827_v8  ;;  %v4037_v41 = vrot.slane %v404_v11, %v3827_v8 }
  0x21   : > { %6255 = vst [vmem:[#allocation2_spill] sm:$0xff] %v4024_v31  ;;  %v1305_v42 = vcombine.high %v3960_v53, %v3960_v53  ;;  %v1350_v43 = vcombine.high %v1328_v12, %v1328_v12  ;;  %v4045_v45 = vrot.slane %v1328_v12, %v3827_v8  ;;  %v4048_v47 = vadd.f32 %v3374_v1, %v3842_v21 }
  0x22   : > { %1650 = vrot.lane.b32.xlu1 %v3861_v28, %s3754_s15  ;;  %6256 = vst [vmem:[#allocation3_spill] sm:$0xff] %v4027_v33  ;;  %6257 = vst [vmem:[#allocation4_spill] sm:$0xff] %v4034_v39  ;;  %v4051_v49 = vadd.f32 %v3375_v4, %v3842_v21  ;;  %v4056_v51 = vrot.slane %v414_v24, %v3827_v8  ;;  %v4059_v52 = vadd.f32 %v3398_v14, %v3845_v22 }
  0x23   : > { %6258 = vst [vmem:[#allocation5_spill] sm:$0xff] %v4037_v41  ;;  %6260 = vst [vmem:[#allocation7_spill] sm:$0xff] %v4048_v47  ;;  %v1369_v53 = vcombine.high %v1361_v25, %v1361_v25  ;;  %v1320_v54 = vcombine.high %v3979_v58, %v3979_v58  ;;  %v4072_v57 = vmul.f32 %v4027_v33, %v4027_v33  ;;  %v3370_v10 = vunpack.c.l.bf16 %v3523_v56 }
  0x24   : > { %1652 = vrot.lane.b32.xlu0 %v3867_v30, %s3754_s15  ;;  %6261 = vst [vmem:[#allocation8_spill] sm:$0xff] %v4051_v49  ;;  %6262 = vst [vmem:[#allocation9_spill] sm:$0xff] %v4056_v51  ;;  %v4075_v60 = vrot.slane %v381_v35, %v3823_v5  ;;  %v4078_v61 = vadd.f32 %v3399_v18, %v3845_v22  ;;  %v4083_v58 = vrot.slane %v1350_v43, %v3827_v8 }
  0x25   : > { %6263 = vst [vmem:[#allocation10_spill] sm:$0xff] %v4059_v52  ;;  %v4086_v62 = vrot.slane %v1361_v25, %v3823_v5  ;;  %v4089_v1 = vadd.f32 %v3402_v27, %v3850_v23  ;;  %v4092_v3 = vadd.f32 %v3403_v29, %v3850_v23  ;;  %v4099_v4 = vmul.f32 %v4048_v47, %v4048_v47 }
  0x26   : > { %1654 = vrot.lane.b32.xlu1 %v3872_v32, %s3754_s15  ;;  %6264 = vst [vmem:[#allocation11_spill] sm:$0xff] %v4078_v61  ;;  %v4103_v7 = vmul.f32 %v4051_v49, %v4051_v49  ;;  %v3371_v11 = vunpack.c.h.bf16 %v3523_v56  ;;  %v4112_v12 = vrot.slane %v1369_v53, %v3823_v5  ;;  %v1342_v14 = vrot.slane %v1320_v54, %v3823_v5  ;;  %v3526_v56 = vld [vmem:[%s6102_s1 + $0x20] sm:$0xff]  }
  0x27   : > { %6265 = vst [vmem:[#allocation12_spill] sm:$0xff] %v4089_v1  ;;  %6266 = vst [vmem:[#allocation13_spill] sm:$0xff] %v4092_v3  ;;  %v383_v18 = vcombine.high %v381_v35, %v381_v35  ;;  %v4122_v24 = vrot.slane %v4075_v60, %v3827_v8  ;;  %v4126_v25 = vmul.f32 %v4078_v61, %v4078_v61  ;;  %v3382_v0 = vunpack.c.l.bf16 %v3526_v56 }
  0x28   : > { %1656 = vrot.lane.b32.xlu0 %v3877_v34, %s3754_s15  ;;  %v4133_v43 = vrot.slane %v4086_v62, %v3827_v8  ;;  %v4137_v35 = vmul.f32 %v4089_v1, %v4089_v1  ;;  %v4141_v53 = vmul.f32 %v4092_v3, %v4092_v3  ;;  %v1319_v54 = vrot.slane %v1305_v42, %v3823_v5  ;;  %v3527_v42 = vld [vmem:[%s6102_s1 + $0x28] sm:$0xff]   ;;  %v3528_v3 = vld [vmem:[%s6102_s1 + $0x30] sm:$0xff]  }
  0x29   : > { %6267 = vst [vmem:[#allocation14_spill] sm:$0xff] %v4122_v24  ;;  %v4149_v37 = vadd.f32 %v3370_v10, %v3855_v26  ;;  %v4152_v20 = vadd.f32 %v3371_v11, %v3855_v26  ;;  %v4166_v10 = vrot.slane %v4112_v12, %v3827_v8  ;;  %v1352_v11 = vcombine.high %v1342_v14, %v1342_v14 }
  0x2a   : > { %1658 = vrot.lane.b32.xlu1 %v3882_v36, %s3754_s15  ;;  %v4173_v27 = vrot.slane %v1342_v14, %v3827_v8  ;;  %v3383_v63 = vunpack.c.h.bf16 %v3526_v56  ;;  %v1321_v14 = vcombine.high %v1319_v54, %v1319_v54  ;;  %v3386_v1 = vunpack.c.l.bf16 %v3527_v42 }
  0x2b   : > { %6268 = vst [vmem:[#allocation15_spill] sm:$0xff] %v4149_v37  ;;  %6269 = vst [vmem:[#allocation16_spill] sm:$0xff] %v4152_v20  ;;  %v4191_v56 = vmul.f32 %v4149_v37, %v4149_v37  ;;  %v4195_v61 = vmul.f32 %v4152_v20, %v4152_v20  ;;  %v4209_v47 = vrot.slane %v1352_v11, %v3827_v8  ;;  %v3390_v37 = vunpack.c.l.bf16 %v3528_v3 }
  0x2c   : > { %1664 = vrot.lane.b32.xlu0 %v3887_v38, %s3754_s15  ;;  %v1349_v11 = vrot.slane %v1321_v14, %v3823_v5 }
  0x2d   : > { %6273 = vst [vmem:[#allocation20_spill] sm:$0xff] %v4209_v47  ;;  %v4259_v33 = vadd.f32 %v3390_v37, %v3877_v34 }
  0x2e   : > { %1666 = vrot.lane.b32.xlu1 %v3892_v40, %s3754_s15  ;;  %v4275_v37 = vrot.slane %v1349_v11, %v3827_v8 }
  0x2f   : > { %6279 = vst [vmem:[#allocation26_spill] sm:$0xff] %v4259_v33 }
  0x30   : > { %1996 = vrot.lane.b32.xlu0 %v3834_v16, %s3755_s16  ;;  %6282 = vst [vmem:[#allocation29_spill] sm:$0xff] %v4275_v37  ;;  %v1399_v37 = vcombine.high %v4086_v62, %v4086_v62  ;;  %v4349_v62 = vld [vmem:[%s6102_s1 + $0xd8] sm:$0xff]  }
  0x31   : > { %6294 = vst [vmem:[#allocation41_spill] sm:$0xff] %v4349_v62 }
  0x32   : > { %1998 = vrot.lane.b32.xlu1 %v3855_v26, %s3755_s16 }
  0x34   : > { %2076 = vrot.lane.b32.xlu0 %v3834_v16, %s3756_s17  ;;  %v4042_v16 = vrot.slane %v412_v17, %v3827_v8  ;;  %v4118_v17 = vld [vmem:[%s6102_s1 + $0x88] sm:$0xff]  }
  0x36   : > { %2078 = vrot.lane.b32.xlu1 %v3855_v26, %s3756_s17  ;;  %6259 = vst [vmem:[#allocation6_spill] sm:$0xff] %v4042_v16  ;;  %v1335_v26 = vrot.slane %v1319_v54, %v3823_v5  ;;  %v4220_v54 = vadd.f32 %v3383_v63, %v3867_v30 }
  0x38   : > { %1668 = vrot.lane.b32.xlu0 %v3907_v44, %s3754_s15  ;;  %6275 = vst [vmem:[#allocation22_spill] sm:$0xff] %v4220_v54  ;;  %v1351_v14 = vcombine.high %v1335_v26, %v1335_v26 }
  0x3a   : > { %2000 = vrot.lane.b32.xlu1 %v3842_v21, %s3755_s16 }
  0x3c   : > { %2080 = vrot.lane.b32.xlu0 %v3842_v21, %s3756_s17  ;;  %v4068_v21 = vmul.f32 %v4024_v31, %v4024_v31  ;;  %v4245_v31 = vrot.slane %v1335_v26, %v3827_v8 }
  0x3e   : > { %1670 = vrot.lane.b32.xlu1 %v3917_v46, %s3754_s15  ;;  %6278 = vst [vmem:[#allocation25_spill] sm:$0xff] %v4245_v31 }
  0x40   : > { %2002 = vrot.lane.b32.xlu0 %v3861_v28, %s3755_s16 }
  0x42   : > { %2082 = vrot.lane.b32.xlu1 %v3861_v28, %s3756_s17 }
  0x44   : > { %1672 = vrot.lane.b32.xlu0 %v3926_v48, %s3754_s15 }
  0x46   : > { %2004 = vrot.lane.b32.xlu1 %v3867_v30, %s3755_s16 }
  0x48   : > { %2084 = vrot.lane.b32.xlu0 %v3867_v30, %s3756_s17 }
  0x4a   : > { %1674 = vrot.lane.b32.xlu1 %v3935_v50, %s3754_s15 }
  0x4c   : > { %2006 = vrot.lane.b32.xlu0 %v3872_v32, %s3755_s16 }
  0x4e   : > { %2086 = vrot.lane.b32.xlu1 %v3872_v32, %s3756_s17 }
  0x50   : > { %2008 = vrot.lane.b32.xlu0 %v3877_v34, %s3755_s16 }
  0x52   : > { %2088 = vrot.lane.b32.xlu1 %v3877_v34, %s3756_s17 }
  0x54   : > { %2010 = vrot.lane.b32.xlu0 %v3882_v36, %s3755_s16 }
  0x56   : > { %2090 = vrot.lane.b32.xlu1 %v3882_v36, %s3756_s17 }
  0x58   : > { %2012 = vrot.lane.b32.xlu0 %v3845_v22, %s3755_s16 }
  0x5a   : > { %2092 = vrot.lane.b32.xlu1 %v3845_v22, %s3756_s17  ;;  %v3525_v22 = vld [vmem:[%s6102_s1 + $0x18] sm:$0xff]  }
  0x5b   : > { %v3378_v29 = vunpack.c.l.bf16 %v3525_v22  ;;  %v3379_v19 = vunpack.c.h.bf16 %v3525_v22  ;;  %v4170_v22 = vrot.slane %v383_v18, %v3823_v5  ;;  %v4187_v18 = vld [vmem:[%s6102_s1 + $0xa0] sm:$0xff]  }
  0x5c   : > { %2014 = vrot.lane.b32.xlu0 %v3850_v23, %s3755_s16 }
  0x5d   : > { %v4176_v6 = vadd.f32 %v3378_v29, %v3861_v28  ;;  %v3387_v29 = vunpack.c.h.bf16 %v3527_v42  ;;  %v4205_v49 = vrot.slane %v4170_v22, %v3827_v8  ;;  %v4225_v42 = vld [vmem:[%s6102_s1 + $0xa8] sm:$0xff]  }
  0x5e   : > { %2094 = vrot.lane.b32.xlu1 %v3850_v23, %s3756_s17  ;;  %v4109_v23 = vmul.f32 %v4059_v52, %v4059_v52  ;;  %v4198_v52 = vadd.f32 %v3379_v19, %v3861_v28  ;;  %v4217_v19 = vadd.f32 %v3382_v0, %v3867_v30  ;;  %v3391_v0 = vunpack.c.h.bf16 %v3528_v3  ;;  %v3529_v30 = vld [vmem:[%s6102_s1 + $0x38] sm:$0xff]  }
  0x5f   : > { %6270 = vst [vmem:[#allocation17_spill] sm:$0xff] %v4176_v6  ;;  %6272 = vst [vmem:[#allocation19_spill] sm:$0xff] %v4205_v49  ;;  %v4213_v20 = vmul.f32 %v4176_v6, %v4176_v6  ;;  %v4231_v6 = vadd.f32 %v3386_v1, %v3872_v32  ;;  %v4234_v28 = vadd.f32 %v3387_v29, %v3872_v32  ;;  %v4256_v29 = vld [vmem:[%s6102_s1 + $0xb0] sm:$0xff]   ;;  %v3394_v26 = vunpack.c.l.bf16 %v3529_v30 }
  0x60   : > { %2016 = vrot.lane.b32.xlu0 %v3887_v38, %s3755_s16  ;;  %6271 = vst [vmem:[#allocation18_spill] sm:$0xff] %v4198_v52  ;;  %6274 = vst [vmem:[#allocation21_spill] sm:$0xff] %v4217_v19  ;;  %v4241_v63 = vmul.f32 %v4198_v52, %v4198_v52  ;;  %v413_v1 = vcombine.high %v4075_v60, %v4075_v60  ;;  %v3532_v60 = vld [vmem:[%s6102_s1 + $0x50] sm:$0xff]   ;;  %v4266_v52 = vmul.f32 %v4217_v19, %v4217_v19 }
  0x61   : > { %6276 = vst [vmem:[#allocation23_spill] sm:$0xff] %v4231_v6  ;;  %6277 = vst [vmem:[#allocation24_spill] sm:$0xff] %v4234_v28  ;;  %v4270_v3 = vmul.f32 %v4220_v54, %v4220_v54  ;;  %v3395_v32 = vunpack.c.h.bf16 %v3529_v30  ;;  %v4279_v31 = vmul.f32 %v4231_v6, %v4231_v6  ;;  %v4283_v19 = vmul.f32 %v4234_v28, %v4234_v28  ;;  %v4291_v30 = vld [vmem:[%s6102_s1 + $0xb8] sm:$0xff]  }
  0x62   : > { %2096 = vrot.lane.b32.xlu1 %v3887_v38, %s3756_s17  ;;  %6280 = vst [vmem:[#allocation27_spill] sm:$0xff] %v4266_v52  ;;  %v4286_v47 = vadd.f32 %v3391_v0, %v3877_v34  ;;  %v4294_v54 = vrot.slane %v413_v1, %v3827_v8  ;;  %v1353_v6 = vcombine.high %v1349_v11, %v1349_v11  ;;  %v3533_v28 = vld [vmem:[%s6102_s1 + $0x58] sm:$0xff]   ;;  %v4313_v11 = vld [vmem:[%s6102_s1 + $0xd0] sm:$0xff]   ;;  %v4324_v34 = vld [vmem:[%s3949_s21 + $0x8] sm:$0xff] }
  0x63   : > { %6281 = vst [vmem:[#allocation28_spill] sm:$0xff] %v4270_v3  ;;  %6283 = vst [vmem:[#allocation30_spill] sm:$0xff] %v4279_v31  ;;  %v3406_v31 = vunpack.c.l.bf16 %v3532_v60  ;;  %v4304_v0 = vrot.slane %v1351_v14, %v3827_v8  ;;  %v4308_v1 = vmul.f32 %v4259_v33, %v4259_v33  ;;  %v4318_v52 = vadd.f32 %v3394_v26, %v3882_v36 }
  0x64   : > { %2018 = vrot.lane.b32.xlu0 %v3892_v40, %s3755_s16  ;;  %6284 = vst [vmem:[#allocation31_spill] sm:$0xff] %v4283_v19  ;;  %6285 = vst [vmem:[#allocation32_spill] sm:$0xff] %v4286_v47  ;;  %v3407_v19 = vunpack.c.h.bf16 %v3532_v60  ;;  %v4321_v14 = vadd.f32 %v3395_v32, %v3882_v36  ;;  %v4330_v60 = vmul.f32 %v4286_v47, %v4286_v47  ;;  %v3410_v26 = vunpack.c.l.bf16 %v3533_v28  ;;  %v3534_v36 = vld [vmem:[%s6102_s1 + $0x60] sm:$0xff]  }
  0x65   : > { %6286 = vst [vmem:[#allocation33_spill] sm:$0xff] %v4294_v54  ;;  %6287 = vst [vmem:[#allocation34_spill] sm:$0xff] %v4304_v0  ;;  %v415_v3 = vcombine.high %v4170_v22, %v4170_v22  ;;  %v4340_v32 = vrot.slane %v1353_v6, %v3827_v8  ;;  %v4343_v33 = vadd.f32 %v3406_v31, %v3887_v38  ;;  %v3411_v31 = vunpack.c.h.bf16 %v3533_v28 }
  0x66   : > { %2098 = vrot.lane.b32.xlu1 %v3892_v40, %s3756_s17  ;;  %6288 = vst [vmem:[#allocation35_spill] sm:$0xff] %v4308_v1  ;;  %6289 = vst [vmem:[#allocation36_spill] sm:$0xff] %v4318_v52  ;;  %v1354_v22 = vcombine.high %v4001_v9, %v4001_v9  ;;  %v4356_v0 = vadd.f32 %v3407_v19, %v3887_v38  ;;  %v423_v47 = vrot.slane %v4324_v34, %v3823_v5 }
  0x67   : > { %6290 = vst [vmem:[#allocation37_spill] sm:$0xff] %v4321_v14  ;;  %6291 = vst [vmem:[#allocation38_spill] sm:$0xff] %v4330_v60  ;;  %v4367_v60 = vmul.f32 %v4321_v14, %v4321_v14  ;;  %v1401_v9 = vcombine.high %v4112_v12, %v4112_v12  ;;  %v3414_v1 = vunpack.c.l.bf16 %v3534_v36  ;;  %v4374_v38 = vrot.slane %v1399_v37, %v3827_v8  ;;  %v3535_v14 = vld [vmem:[%s6102_s1 + $0x68] sm:$0xff]  }
  0x68   : > { %2020 = vrot.lane.b32.xlu0 %v3907_v44, %s3755_s16  ;;  %6292 = vst [vmem:[#allocation39_spill] sm:$0xff] %v4340_v32  ;;  %6293 = vst [vmem:[#allocation40_spill] sm:$0xff] %v4343_v33  ;;  %v4363_v32 = vmul.f32 %v4318_v52, %v4318_v52  ;;  %v4377_v28 = vrot.slane %v415_v3, %v3827_v8  ;;  %v4380_v19 = vadd.f32 %v3410_v26, %v3892_v40  ;;  %v4395_v3 = vld [vmem:[%s6102_s1 + $0xe0] sm:$0xff]  }
  0x69   : > { %6295 = vst [vmem:[#allocation42_spill] sm:$0xff] %v4356_v0  ;;  %6296 = vst [vmem:[#allocation43_spill] sm:$0xff] %v4367_v60  ;;  %v4388_v12 = vmul.f32 %v4343_v33, %v4343_v33  ;;  %v1368_v37 = vrot.slane %v1354_v22, %v3823_v5  ;;  %v4401_v26 = vmul.f32 %v4356_v0, %v4356_v0  ;;  %v3418_v62 = vunpack.c.l.bf16 %v3535_v14 }
  0x6a   : > { %2100 = vrot.lane.b32.xlu1 %v3907_v44, %s3756_s17  ;;  %6297 = vst [vmem:[#allocation44_spill] sm:$0xff] %v4374_v38  ;;  %6298 = vst [vmem:[#allocation45_spill] sm:$0xff] %v4377_v28  ;;  %v3415_v38 = vunpack.c.h.bf16 %v3534_v36  ;;  %v4404_v6 = vadd.f32 %v3411_v31, %v3892_v40  ;;  %v439_v52 = vrot.slane %v423_v47, %v3823_v5  ;;  %v3536_v36 = vld [vmem:[%s6102_s1 + $0x70] sm:$0xff]   ;;  %v3419_v60 = vunpack.c.h.bf16 %v3535_v14 }
  0x6b   : > { %6299 = vst [vmem:[#allocation46_spill] sm:$0xff] %v4380_v19  ;;  %6300 = vst [vmem:[#allocation47_spill] sm:$0xff] %v4388_v12  ;;  %v431_v33 = vcombine.high %v423_v47, %v423_v47  ;;  %v4411_v22 = vrot.slane %v1401_v9, %v3827_v8  ;;  %v4414_v12 = vadd.f32 %v3414_v1, %v3907_v44  ;;  %v4426_v9 = vld [vmem:[%s6102_s1 + $0xe8] sm:$0xff]  }
  0x6c   : > { %2022 = vrot.lane.b32.xlu0 %v3917_v46, %s3755_s16  ;;  %6301 = vst [vmem:[#allocation48_spill] sm:$0xff] %v4401_v26  ;;  %6302 = vst [vmem:[#allocation49_spill] sm:$0xff] %v4404_v6  ;;  %v4420_v40 = vmul.f32 %v4380_v19, %v4380_v19  ;;  %v1370_v31 = vcombine.high %v1368_v37, %v1368_v37  ;;  %v416_v1 = vcombine.high %v4324_v34, %v4324_v34 }
  0x6d   : > { %6303 = vst [vmem:[#allocation50_spill] sm:$0xff] %v4411_v22  ;;  %6304 = vst [vmem:[#allocation51_spill] sm:$0xff] %v4414_v12  ;;  %v1384_v14 = vrot.slane %v1368_v37, %v3823_v5  ;;  %v4432_v0 = vadd.f32 %v3415_v38, %v3907_v44  ;;  %v3422_v22 = vunpack.c.l.bf16 %v3536_v36  ;;  %v3423_v26 = vunpack.c.h.bf16 %v3536_v36 }
  0x6e   : > { %2102 = vrot.lane.b32.xlu1 %v3917_v46, %s3756_s17  ;;  %6305 = vst [vmem:[#allocation52_spill] sm:$0xff] %v4420_v40  ;;  %6306 = vst [vmem:[#allocation53_spill] sm:$0xff] %v4426_v9  ;;  %v4438_v47 = vmul.f32 %v4404_v6, %v4404_v6  ;;  %v4441_v19 = vrot.slane %v439_v52, %v3827_v8  ;;  %v453_v34 = vrot.slane %v431_v33, %v3823_v5 }
  0x6f   : > { %6307 = vst [vmem:[#allocation54_spill] sm:$0xff] %v4432_v0  ;;  %v4447_v44 = vmul.f32 %v4414_v12, %v4414_v12  ;;  %v4450_v38 = vadd.f32 %v3418_v62, %v3917_v46  ;;  %v4453_v37 = vadd.f32 %v3419_v60, %v3917_v46  ;;  %v1398_v33 = vrot.slane %v1370_v31, %v3823_v5  ;;  %v4482_v31 = vld [vmem:[%s6102_s1 + $0xf0] sm:$0xff]  }
  0x70   : > { %2024 = vrot.lane.b32.xlu0 %v3926_v48, %s3755_s16  ;;  %6308 = vst [vmem:[#allocation55_spill] sm:$0xff] %v4441_v19  ;;  %v461_v40 = vcombine.high %v439_v52, %v439_v52  ;;  %v463_v12 = vcombine.high %v453_v34, %v453_v34  ;;  %v430_v6 = vrot.slane %v416_v1, %v3823_v5 }
  0x71   : > { %6309 = vst [vmem:[#allocation56_spill] sm:$0xff] %v4450_v38  ;;  %6310 = vst [vmem:[#allocation57_spill] sm:$0xff] %v4453_v37  ;;  %v4465_v62 = vmul.f32 %v4432_v0, %v4432_v0  ;;  %v4468_v46 = vrot.slane %v1384_v14, %v3827_v8  ;;  %v4471_v60 = vadd.f32 %v3422_v22, %v3926_v48 }
  0x72   : > { %2104 = vrot.lane.b32.xlu1 %v3926_v48, %s3756_s17  ;;  %v4474_v36 = vadd.f32 %v3423_v26, %v3926_v48  ;;  %v432_v0 = vcombine.high %v430_v6, %v430_v6  ;;  %v4489_v48 = vmul.f32 %v4450_v38, %v4450_v38  ;;  %v4493_v26 = vmul.f32 %v4453_v37, %v4453_v37  ;;  %v4509_v38 = vld [vmem:[%s6102_s1 + $0xf8] sm:$0xff]  }
  0x73   : > { %6311 = vst [vmem:[#allocation58_spill] sm:$0xff] %v4468_v46  ;;  %6312 = vst [vmem:[#allocation59_spill] sm:$0xff] %v4471_v60  ;;  %v4485_v46 = vrot.slane %v453_v34, %v3827_v8  ;;  %v1400_v22 = vcombine.high %v1384_v14, %v1384_v14  ;;  %v4498_v52 = vrot.slane %v1398_v33, %v3827_v8  ;;  %v6325_v14 = vunpack.c.l.bf16 %v3970_v55 }
  0x74   : > { %706 = vrot.lane.b32.xlu0 %v4034_v39, %s3754_s15  ;;  %6313 = vst [vmem:[#allocation60_spill] sm:$0xff] %v4474_v36  ;;  %6315 = vst [vmem:[#allocation62_spill] sm:$0xff] %v4489_v48  ;;  %v4504_v34 = vrot.slane %v463_v12, %v3827_v8  ;;  %v446_v37 = vrot.slane %v430_v6, %v3823_v5  ;;  %v1402_v48 = vcombine.high %v1398_v33, %v1398_v33 }
  0x75   : > { %6314 = vst [vmem:[#allocation61_spill] sm:$0xff] %v4485_v46  ;;  %6316 = vst [vmem:[#allocation63_spill] sm:$0xff] %v4493_v26  ;;  %v460_v26 = vrot.slane %v432_v0, %v3823_v5 }
  0x76   : > { %708 = vrot.lane.b32.xlu1 %v4037_v41, %s3754_s15  ;;  %6317 = vst [vmem:[#allocation64_spill] sm:$0xff] %v4498_v52  ;;  %6319 = vst [vmem:[#allocation66_spill] sm:$0xff] %v4504_v34  ;;  %v4516_v52 = vmul.f32 %v4471_v60, %v4471_v60  ;;  %v4547_v5 = vrot.slane %v446_v37, %v3827_v8 }
  0x77   : > { %6320 = vst [vmem:[#allocation67_spill] sm:$0xff] %v4509_v38  ;;  %v464_v0 = vcombine.high %v460_v26, %v460_v26  ;;  %v4572_v38 = vrot.slane %v1402_v48, %v3827_v8  ;;  %v6335_v48 = vunpack.c.h.bf16 %v3996_v2 }
  0x78   : > { %2026 = vrot.lane.b32.xlu0 %v3935_v50, %s3755_s16  ;;  %6321 = vst [vmem:[#allocation68_spill] sm:$0xff] %v4516_v52  ;;  %v4540_v52 = vrot.slane %v1400_v22, %v3827_v8  ;;  %6327 = vst [vmem:[#allocation72_spill] sm:$0xff] %v4547_v5  ;;  %v6328_v22 = vunpack.c.l.bf16 %v3984_v59 }
  0x79   : > { %6331 = vst [vmem:[#allocation74_spill] sm:$0xff] %v4572_v38 }
  0x7a   : > { %2106 = vrot.lane.b32.xlu1 %v3935_v50, %s3756_s17 }
  0x7c   : > { %710 = vrot.lane.b32.xlu0 %v4042_v16, %s3754_s15 }
  0x7e   : > { %786 = vrot.lane.b32.xlu1 %v4034_v39, %s3756_s17 }
  0x80   : > { %788 = vrot.lane.b32.xlu0 %v4037_v41, %s3756_s17 }
  0x82   : > { %866 = vrot.lane.b32.xlu1 %v4034_v39, %s3755_s16  ;;  %v3537_v39 = vld [vmem:[%s6102_s1 + $0x78] sm:$0xff]  }
  0x83   : > { %v3426_v1 = vunpack.c.l.bf16 %v3537_v39 }
  0x84   : > { %868 = vrot.lane.b32.xlu0 %v4037_v41, %s3755_s16  ;;  %v3427_v41 = vunpack.c.h.bf16 %v3537_v39  ;;  %v4501_v39 = vrot.slane %v461_v40, %v3827_v8  ;;  %v4520_v40 = vmul.f32 %v4474_v36, %v4474_v36  ;;  %v6326_v36 = vunpack.c.h.bf16 %v3970_v55 }
  0x85   : > { %v4525_v9 = vadd.f32 %v3426_v1, %v3935_v50 }
  0x86   : > { %712 = vrot.lane.b32.xlu1 %v4056_v51, %s3754_s15  ;;  %6318 = vst [vmem:[#allocation65_spill] sm:$0xff] %v4501_v39  ;;  %6322 = vst [vmem:[#allocation69_spill] sm:$0xff] %v4520_v40  ;;  %v4528_v6 = vadd.f32 %v3427_v41, %v3935_v50  ;;  %v462_v41 = vcombine.high %v446_v37, %v446_v37 }
  0x87   : > { %6323 = vst [vmem:[#allocation70_spill] sm:$0xff] %v4525_v9  ;;  %v4565_v37 = vmul.f32 %v4525_v9, %v4525_v9 }
  0x88   : > { %790 = vrot.lane.b32.xlu0 %v4042_v16, %s3756_s17  ;;  %6324 = vst [vmem:[#allocation71_spill] sm:$0xff] %v4528_v6 }
  0x89   : > { %6330 = vst [vmem:[#allocation73_spill] sm:$0xff] %v4565_v37  ;;  %v6333_v37 = vunpack.c.l.bf16 %v3996_v2 }
  0x8a   : > { %v1645_v12 = vpop.permute.xlu0 %1644  ;;  %870 = vrot.lane.b32.xlu1 %v4042_v16, %s3755_s16  ;;  %v4569_v16 = vmul.f32 %v4528_v6, %v4528_v6 }
  0x8b   : > { %v4533_v60 = vadd.f32 %v6325_v14, %v1645_v12  ;;  %v4537_v40 = vadd.f32 %v6326_v36, %v1645_v12  ;;  %v6329_v12 = vunpack.c.h.bf16 %v3984_v59 }
  0x8c   : > { %v1649_v1 = vpop.permute.xlu1 %1648  ;;  %714 = vrot.lane.b32.xlu0 %v4122_v24, %s3754_s15 }
  0x8d   : > { %v1756_v55 = vmul.f32 %v4533_v60, %v4533_v60  ;;  %v1757_v36 = vmul.f32 %v4537_v40, %v4537_v40  ;;  %v4555_v14 = vadd.f32 %v6328_v22, %v1649_v1  ;;  %v4559_v33 = vadd.f32 %v6329_v12, %v1649_v1 }
  0x8e   : > { %v1661_v50 = vpop.permute.xlu0 %1660  ;;  %792 = vrot.lane.b32.xlu1 %v4056_v51, %s3756_s17  ;;  %v4575_v22 = vrot.slane %v460_v26, %v3827_v8 }
  0x8f   : > { %v1788_v59 = vadd.f32 %v1756_v55, %v4068_v21  ;;  %v1789_v1 = vadd.f32 %v1757_v36, %v4072_v57  ;;  %v1760_v12 = vmul.f32 %v4555_v14, %v4555_v14  ;;  %v1761_v9 = vmul.f32 %v4559_v33, %v4559_v33 }
  0x90   : > { %6332 = vst [vmem:[#allocation75_spill] sm:$0xff] %v4575_v22  ;;  %v4585_v6 = vadd.f32 %v6333_v37, %v1661_v50  ;;  %v4589_v38 = vadd.f32 %v6335_v48, %v1661_v50  ;;  %v1663_v26 = vpop.permute.xlu1 %1662  ;;  %872 = vrot.lane.b32.xlu0 %v4056_v51, %s3755_s16  ;;  %v4594_v21 = vrot.slane %v462_v41, %v3827_v8  ;;  %v6339_v41 = vunpack.c.l.bf16 %v4015_v15 }
  0x91   : > { %v4597_v57 = vrot.slane %v464_v0, %v3827_v8  ;;  %v1900_v55 = vmul.f32 %v4045_v45, %v1788_v59  ;;  %v1901_v36 = vmul.f32 %v4045_v45, %v1789_v1  ;;  %v1792_v37 = vadd.f32 %v1760_v12, %v4099_v4 }
  0x92   : > { %6334 = vst [vmem:[#allocation76_spill] sm:$0xff] %v4585_v6  ;;  %6336 = vst [vmem:[#allocation77_spill] sm:$0xff] %v4589_v38  ;;  %v1793_v2 = vadd.f32 %v1761_v9, %v4103_v7  ;;  %v1772_v50 = vmul.f32 %v4585_v6, %v4585_v6  ;;  %v1773_v48 = vmul.f32 %v4589_v38, %v4589_v38  ;;  %v6341_v8 = vunpack.c.h.bf16 %v4015_v15  ;;  %v1647_v59 = vpop.permute.xlu0 %1646  ;;  %v6393_v38 = vld [vmem:[#allocation16_spill] sm:$0xff] }
  0x93   : > { %6337 = vst [vmem:[#allocation78_spill] sm:$0xff] %v4594_v21  ;;  %6338 = vst [vmem:[#allocation79_spill] sm:$0xff] %v4597_v57  ;;  %v4609_v51 = vadd.f32 %v6339_v41, %v1663_v26  ;;  %716 = vrot.lane.b32.xlu1 %v4205_v49, %s3754_s15  ;;  %v1932_v45 = vmax.f32 %v1900_v55, 0.001  ;;  %v1933_v4 = vmax.f32 %v1901_v36, 0.001  ;;  %v1904_v7 = vmul.f32 %v4083_v58, %v1792_v37 }
  0x94   : > { %v4613_v0 = vadd.f32 %v6341_v8, %v1663_v26  ;;  %v1905_v9 = vmul.f32 %v4083_v58, %v1793_v2  ;;  %v1804_v1 = vadd.f32 %v1772_v50, %v4109_v23  ;;  %v1805_v12 = vadd.f32 %v1773_v48, %v4126_v25  ;;  %v1651_v26 = vpop.permute.xlu1 %1650  ;;  %794 = vrot.lane.b32.xlu0 %v4122_v24, %s3756_s17 }
  0x95   : > { %6340 = vst [vmem:[#allocation80_spill] sm:$0xff] %v4609_v51  ;;  %v1774_v41 = vmul.f32 %v4609_v51, %v4609_v51  ;;  %3679 = vrcp.f32 %v1932_v45  ;;  %v1936_v55 = vmax.f32 %v1904_v7, 0.001  ;;  %v6343_v37 = vunpack.c.l.bf16 %v4118_v17 }
  0x96   : > { %6342 = vst [vmem:[#allocation81_spill] sm:$0xff] %v4613_v0  ;;  %v1775_v15 = vmul.f32 %v4613_v0, %v4613_v0  ;;  %v1937_v36 = vmax.f32 %v1905_v9, 0.001  ;;  %3681 = vrcp.f32 %v1933_v4  ;;  %v1916_v23 = vmul.f32 %v4133_v43, %v1804_v1  ;;  %v1653_v50 = vpop.permute.xlu0 %1652 }
  0x97   : > { %v4629_v58 = vadd.f32 %v6343_v37, %v1647_v59  ;;  %v1917_v25 = vmul.f32 %v4133_v43, %v1805_v12  ;;  %v1806_v2 = vadd.f32 %v1774_v41, %v4137_v35  ;;  %874 = vrot.lane.b32.xlu1 %v4122_v24, %s3755_s16  ;;  %3683 = vrcp.f32 %v1936_v55 }
  0x98   : > { %v1807_v48 = vadd.f32 %v1775_v15, %v4141_v53  ;;  %v6344_v8 = vunpack.c.h.bf16 %v4118_v17  ;;  %3685 = vrcp.f32 %v1937_v36  ;;  %v1948_v7 = vmax.f32 %v1916_v23, 0.001  ;;  %v1655_v35 = vpop.permute.xlu1 %1654  ;;  %718 = vrot.lane.b32.xlu0 %v4294_v54, %s3754_s15 }
  0x99   : > { %v1758_v4 = vmul.f32 %v4629_v58, %v4629_v58  ;;  %v1949_v9 = vmax.f32 %v1917_v25, 0.001  ;;  %v1918_v43 = vmul.f32 %v4166_v10, %v1806_v2  ;;  %v6346_v15 = vunpack.c.h.bf16 %v4157_v13 }
  0x9a   : > { %v4639_v45 = vadd.f32 %v6344_v8, %v1647_v59  ;;  %v1919_v1 = vmul.f32 %v4166_v10, %v1807_v48  ;;  %v6345_v59 = vunpack.c.l.bf16 %v4157_v13  ;;  %3687 = vrcp.f32 %v1948_v7  ;;  %v1657_v10 = vpop.permute.xlu0 %1656 }
  0x9b   : > { %v1790_v17 = vadd.f32 %v1758_v4, %v4191_v56  ;;  %v1950_v41 = vmax.f32 %v1918_v43, 0.001  ;;  %v4656_v55 = vadd.f32 %v6346_v15, %v1651_v26  ;;  %v6347_v36 = vunpack.c.l.bf16 %v4187_v18  ;;  %796 = vrot.lane.b32.xlu1 %v4205_v49, %s3756_s17 }
  0x9c   : > { %v1759_v53 = vmul.f32 %v4639_v45, %v4639_v45  ;;  %v4652_v12 = vadd.f32 %v6345_v59, %v1651_v26  ;;  %3689 = vrcp.f32 %v1949_v9  ;;  %v1951_v56 = vmax.f32 %v1919_v1, 0.001  ;;  %v1659_v8 = vpop.permute.xlu1 %1658  ;;  %876 = vrot.lane.b32.xlu0 %v4205_v49, %s3755_s16 }
  0x9d   : > { %v4660_v37 = vadd.f32 %v6347_v36, %v1653_v50  ;;  %v1902_v25 = vmul.f32 %v4173_v27, %v1790_v17  ;;  %3691 = vrcp.f32 %v1950_v41  ;;  %v1763_v26 = vmul.f32 %v4656_v55, %v4656_v55  ;;  %v6350_v17 = vld [vmem:[#allocation27_spill] sm:$0xff] }
  0x9e   : > { %v1791_v23 = vadd.f32 %v1759_v53, %v4195_v61  ;;  %v1762_v13 = vmul.f32 %v4652_v12, %v4652_v12  ;;  %v6348_v2 = vunpack.c.h.bf16 %v4187_v18  ;;  %3693 = vrcp.f32 %v1951_v56  ;;  %v1665_v53 = vpop.permute.xlu0 %1664  ;;  %v6354_v56 = vld [vmem:[#allocation28_spill] sm:$0xff] }
  0x9f   : > { %v1934_v4 = vmax.f32 %v1902_v25, 0.001  ;;  %v1764_v7 = vmul.f32 %v4660_v37, %v4660_v37  ;;  %v1795_v43 = vadd.f32 %v1763_v26, %v4241_v63  ;;  %720 = vrot.lane.b32.xlu1 %v4377_v28, %s3754_s15  ;;  %v6351_v41 = vunpack.c.h.bf16 %v4225_v42  ;;  %v6353_v63 = vld [vmem:[#allocation20_spill] sm:$0xff]  ;;  %v6355_v26 = vld [vmem:[#allocation25_spill] sm:$0xff] }
  0xa0   : > { %v4672_v48 = vadd.f32 %v6348_v2, %v1653_v50  ;;  %v1903_v61 = vmul.f32 %v4173_v27, %v1791_v23  ;;  %v1794_v9 = vadd.f32 %v1762_v13, %v4213_v20  ;;  %v6349_v50 = vunpack.c.l.bf16 %v4225_v42  ;;  %v4699_v13 = vpop.permute.xlu1 %1666  ;;  %798 = vrot.lane.b32.xlu0 %v4294_v54, %s3756_s17 }
  0xa1   : > { %3695 = vrcp.f32 %v1934_v4  ;;  %v1796_v59 = vadd.f32 %v1764_v7, %v6350_v17  ;;  %v4692_v20 = vadd.f32 %v6351_v41, %v1655_v35  ;;  %v1907_v36 = vmul.f32 %v6353_v63, %v1795_v43  ;;  %v6359_v41 = vld [vmem:[#allocation31_spill] sm:$0xff] }
  0xa2   : > { %v1765_v18 = vmul.f32 %v4672_v48, %v4672_v48  ;;  %v4685_v1 = vadd.f32 %v6349_v50, %v1655_v35  ;;  %v1935_v27 = vmax.f32 %v1903_v61, 0.001  ;;  %v1906_v15 = vmul.f32 %v6353_v63, %v1794_v9  ;;  %v4710_v4 = vpop.eup %3679  ;;  %v4714_v17 = vpop.permute.xlu0 %1996 }
  0xa3   : > { %6352 = vst [vmem:[#allocation27_spill] sm:$0xff] %v4692_v20  ;;  %v1908_v2 = vmul.f32 %v6355_v26, %v1796_v59  ;;  %v1767_v42 = vmul.f32 %v4692_v20, %v4692_v20  ;;  %v6356_v35 = vunpack.c.l.bf16 %v4256_v29  ;;  %v1939_v9 = vmax.f32 %v1907_v36, 0.001  ;;  %878 = vrot.lane.b32.xlu1 %v4294_v54, %s3755_s16 }
  0xa4   : > { %v1797_v23 = vadd.f32 %v1765_v18, %v6354_v56  ;;  %v1766_v25 = vmul.f32 %v4685_v1, %v4685_v1  ;;  %3697 = vrcp.f32 %v1935_v27  ;;  %v1938_v7 = vmax.f32 %v1906_v15, 0.001  ;;  %v6358_v18 = vld [vmem:[#allocation30_spill] sm:$0xff]  ;;  %v4718_v27 = vpop.eup %3681  ;;  %722 = vrot.lane.b32.xlu0 %v4441_v19, %s3754_s15 }
  0xa5   : > { %v4708_v61 = vadd.f32 %v6356_v35, %v1657_v10  ;;  %v1940_v59 = vmax.f32 %v1908_v2, 0.001  ;;  %v1799_v63 = vadd.f32 %v1767_v42, %v6359_v41  ;;  %v6360_v56 = vunpack.c.h.bf16 %v4256_v29  ;;  %v4727_v36 = vpop.eup %3683  ;;  %v4734_v2 = vpop.permute.xlu1 %1998 }
  0xa6   : > { %v1909_v43 = vmul.f32 %v6355_v26, %v1797_v23  ;;  %v1798_v50 = vadd.f32 %v1766_v25, %v6358_v18  ;;  %3699 = vrcp.f32 %v1938_v7  ;;  %v6362_v25 = vld [vmem:[#allocation29_spill] sm:$0xff]  ;;  %v6363_v18 = vunpack.c.l.bf16 %v4291_v30  ;;  %v4738_v29 = vpop.eup %3685  ;;  %v6365_v7 = vld [vmem:[#allocation35_spill] sm:$0xff]  ;;  %v4750_v49 = vpop.permute.xlu0 %2076 }
  0xa7   : > { %6357 = vst [vmem:[#allocation20_spill] sm:$0xff] %v4708_v61  ;;  %v4723_v35 = vadd.f32 %v6360_v56, %v1657_v10  ;;  %v1768_v15 = vmul.f32 %v4708_v61, %v4708_v61  ;;  %3701 = vrcp.f32 %v1939_v9  ;;  %v1911_v10 = vmul.f32 %v6362_v25, %v1799_v63  ;;  %800 = vrot.lane.b32.xlu1 %v4377_v28, %s3756_s17  ;;  %v4754_v9 = vpop.eup %3687 }
  0xa8   : > { %v1941_v23 = vmax.f32 %v1909_v43, 0.001  ;;  %v1910_v26 = vmul.f32 %v6362_v25, %v1798_v50  ;;  %v4732_v54 = vadd.f32 %v6363_v18, %v1659_v8  ;;  %3703 = vrcp.f32 %v1940_v59  ;;  %6368 = vst [vmem:[#allocation31_spill] sm:$0xff] %v4754_v9  ;;  %v6369_v25 = vld [vmem:[#allocation38_spill] sm:$0xff]  ;;  %880 = vrot.lane.b32.xlu0 %v4377_v28, %s3755_s16  ;;  %v6380_v28 = vld [vmem:[#allocation41_spill] sm:$0xff] }
  0xa9   : > { %6361 = vst [vmem:[#allocation28_spill] sm:$0xff] %v4723_v35  ;;  %v1769_v42 = vmul.f32 %v4723_v35, %v4723_v35  ;;  %v1800_v43 = vadd.f32 %v1768_v15, %v6365_v7  ;;  %v6366_v41 = vunpack.c.h.bf16 %v4291_v30  ;;  %v1943_v63 = vmax.f32 %v1911_v10, 0.001  ;;  %v6370_v59 = vld [vmem:[#allocation34_spill] sm:$0xff]  ;;  %v4758_v7 = vpop.eup %3689  ;;  %v4767_v0 = vpop.permute.xlu1 %2078 }
  0xaa   : > { %6364 = vst [vmem:[#allocation25_spill] sm:$0xff] %v4732_v54  ;;  %v1942_v50 = vmax.f32 %v1910_v26, 0.001  ;;  %v1770_v18 = vmul.f32 %v4732_v54, %v4732_v54  ;;  %3705 = vrcp.f32 %v1941_v23  ;;  %6371 = vst [vmem:[#allocation29_spill] sm:$0xff] %v4758_v7  ;;  %v4771_v23 = vpop.eup %3691  ;;  %v2285_v6 = vmul.f32 %v4734_v2, %v6393_v38 }
  0xab   : > { %v4746_v56 = vadd.f32 %v6366_v41, %v1659_v8  ;;  %v1801_v15 = vadd.f32 %v1769_v42, %v6369_v25  ;;  %v1912_v26 = vmul.f32 %v6370_v59, %v1800_v43  ;;  %v6372_v41 = vunpack.c.l.bf16 %v4313_v11  ;;  %6374 = vst [vmem:[#allocation38_spill] sm:$0xff] %v4771_v23  ;;  %724 = vrot.lane.b32.xlu1 %v4485_v46, %s3754_s15 }
  0xac   : > { %3707 = vrcp.f32 %v1942_v50  ;;  %v1802_v8 = vadd.f32 %v1770_v18, %v4363_v32  ;;  %v6375_v43 = vunpack.c.h.bf16 %v4313_v11  ;;  %v4778_v32 = vpop.eup %3693  ;;  %v6378_v18 = vld [vmem:[#allocation43_spill] sm:$0xff]  ;;  %v6381_v23 = vunpack.c.l.bf16 %v6380_v28  ;;  %802 = vrot.lane.b32.xlu0 %v4441_v19, %s3756_s17 }
  0xad   : > { %6367 = vst [vmem:[#allocation30_spill] sm:$0xff] %v4746_v56  ;;  %v1771_v30 = vmul.f32 %v4746_v56, %v4746_v56  ;;  %v4765_v24 = vadd.f32 %v6372_v41, %v1665_v53  ;;  %3709 = vrcp.f32 %v1943_v63  ;;  %v1913_v10 = vmul.f32 %v6370_v59, %v1801_v15  ;;  %6377 = vst [vmem:[#allocation82_spill] sm:$0xff] %v4778_v32  ;;  %v6379_v41 = vld [vmem:[#allocation39_spill] sm:$0xff]  ;;  %v4789_v15 = vpop.permute.xlu0 %1668 }
  0xae   : > { %v1944_v42 = vmax.f32 %v1912_v26, 0.001  ;;  %v4776_v50 = vadd.f32 %v6375_v43, %v1665_v53  ;;  %v1914_v7 = vmul.f32 %v6379_v41, %v1802_v8  ;;  %v4787_v63 = vadd.f32 %v6381_v23, %v4699_v13  ;;  %v6385_v43 = vld [vmem:[#allocation47_spill] sm:$0xff] }
  0xaf   : > { %6373 = vst [vmem:[#allocation35_spill] sm:$0xff] %v4765_v24  ;;  %v1803_v25 = vadd.f32 %v1771_v30, %v6378_v18  ;;  %v1776_v9 = vmul.f32 %v4765_v24, %v4765_v24  ;;  %v1945_v11 = vmax.f32 %v1913_v10, 0.001  ;;  %v6383_v59 = vunpack.c.h.bf16 %v6380_v28  ;;  %v4800_v30 = vpop.eup %3695  ;;  %v4806_v10 = vpop.permute.xlu1 %2000  ;;  %882 = vrot.lane.b32.xlu1 %v4441_v19, %s3755_s16 }
  0xb0   : > { %6376 = vst [vmem:[#allocation34_spill] sm:$0xff] %v4776_v50  ;;  %6382 = vst [vmem:[#allocation43_spill] sm:$0xff] %v4787_v63  ;;  %3711 = vrcp.f32 %v1944_v42  ;;  %v1777_v53 = vmul.f32 %v4776_v50, %v4776_v50  ;;  %v1946_v23 = vmax.f32 %v1914_v7, 0.001  ;;  %v1778_v32 = vmul.f32 %v4787_v63, %v4787_v63  ;;  %v6386_v42 = vld [vmem:[#allocation48_spill] sm:$0xff]  ;;  %726 = vrot.lane.b32.xlu0 %v4501_v39, %s3754_s15 }
  0xb1   : > { %v4798_v26 = vadd.f32 %v6383_v59, %v4699_v13  ;;  %v1915_v8 = vmul.f32 %v6379_v41, %v1803_v25  ;;  %v1808_v18 = vadd.f32 %v1776_v9, %v6385_v43  ;;  %3713 = vrcp.f32 %v1945_v11  ;;  %v4815_v7 = vpop.eup %3697  ;;  %v6387_v41 = vld [vmem:[#allocation44_spill] sm:$0xff]  ;;  %v4819_v50 = vpop.permute.xlu0 %2080 }
  0xb2   : > { %v1809_v28 = vadd.f32 %v1777_v53, %v6386_v42  ;;  %v2044_v25 = vmul.f32 %v4714_v17, %v4533_v60  ;;  %3715 = vrcp.f32 %v1946_v23  ;;  %v6388_v43 = vld [vmem:[#allocation52_spill] sm:$0xff]  ;;  %v2045_v42 = vmul.f32 %v4714_v17, %v4537_v40 }
  0xb3   : > { %6384 = vst [vmem:[#allocation39_spill] sm:$0xff] %v4798_v26  ;;  %v1779_v13 = vmul.f32 %v4798_v26, %v4798_v26  ;;  %v1947_v9 = vmax.f32 %v1915_v8, 0.001  ;;  %v1920_v59 = vmul.f32 %v6387_v41, %v1808_v18  ;;  %v1810_v63 = vadd.f32 %v1778_v32, %v6388_v43  ;;  %v6389_v26 = vld [vmem:[#allocation2_spill] sm:$0xff]  ;;  %v6391_v43 = vld [vmem:[#allocation3_spill] sm:$0xff]  ;;  %v4832_v51 = vpop.permute.xlu1 %1670  ;;  %804 = vrot.lane.b32.xlu1 %v4485_v46, %s3756_s17 }
  0xb4   : > { %v1921_v11 = vmul.f32 %v6387_v41, %v1809_v28  ;;  %v2282_v8 = vmul.f32 %v4714_v17, %v6389_v26  ;;  %v6390_v18 = vld [vmem:[#allocation50_spill] sm:$0xff]  ;;  %v2283_v24 = vmul.f32 %v4714_v17, %v6391_v43  ;;  %v4836_v28 = vpop.eup %3699  ;;  %v2046_v41 = vmul.f32 %v4734_v2, %v4629_v58  ;;  %884 = vrot.lane.b32.xlu0 %v4485_v46, %s3755_s16 }
  0xb5   : > { %v1811_v53 = vadd.f32 %v1779_v13, %v4438_v47  ;;  %3717 = vrcp.f32 %v1947_v9  ;;  %v1952_v23 = vmax.f32 %v1920_v59, 0.001  ;;  %v1922_v32 = vmul.f32 %v6390_v18, %v1810_v63  ;;  %v4843_v63 = vpop.eup %3701  ;;  %v6392_v59 = vld [vmem:[#allocation15_spill] sm:$0xff]  ;;  %v4849_v56 = vpop.permute.xlu0 %2002 }
  0xb6   : > { %v1953_v47 = vmax.f32 %v1921_v11, 0.001  ;;  %v2047_v9 = vmul.f32 %v4734_v2, %v4639_v45  ;;  %v2284_v19 = vmul.f32 %v4734_v2, %v6392_v59  ;;  %v4853_v11 = vpop.eup %3703  ;;  %v2314_v2 = vmul.f32 %v4750_v49, %v4533_v60 }
  0xb7   : > { %v1923_v13 = vmul.f32 %v6390_v18, %v1811_v53  ;;  %3719 = vrcp.f32 %v1952_v23  ;;  %v1954_v17 = vmax.f32 %v1922_v32, 0.001  ;;  %v2124_v18 = vmul.f32 %v4750_v49, %v6389_v26  ;;  %v4859_v32 = vpop.eup %3705  ;;  %728 = vrot.lane.b32.xlu1 %v4504_v34, %s3754_s15 }
  0xb8   : > { %3721 = vrcp.f32 %v1953_v47  ;;  %v2125_v23 = vmul.f32 %v4750_v49, %v6391_v43  ;;  %v2315_v54 = vmul.f32 %v4750_v49, %v4537_v40  ;;  %v2126_v35 = vmul.f32 %v4767_v0, %v6392_v59  ;;  %v4867_v47 = vpop.permute.xlu1 %2082  ;;  %806 = vrot.lane.b32.xlu0 %v4501_v39, %s3756_s17 }
  0xb9   : > { %v1955_v53 = vmax.f32 %v1923_v13, 0.001  ;;  %3723 = vrcp.f32 %v1954_v17  ;;  %v4871_v26 = vpop.eup %3707  ;;  %v2156_v43 = vsub.f32 %v2044_v25, %v2124_v18  ;;  %v2127_v17 = vmul.f32 %v4767_v0, %v6393_v38  ;;  %v4879_v20 = vpop.permute.xlu0 %1672 }
  0xba   : > { %v2157_v13 = vsub.f32 %v2045_v42, %v2125_v23  ;;  %v4875_v60 = vpop.eup %3709  ;;  %v2346_v61 = vadd.f32 %v2314_v2, %v2282_v8  ;;  %v2347_v49 = vadd.f32 %v2315_v54, %v2283_v24  ;;  %v2158_v40 = vsub.f32 %v2046_v41, %v2126_v35 }
  0xbb   : > { %3725 = vrcp.f32 %v1955_v53  ;;  %v2316_v59 = vmul.f32 %v4767_v0, %v4629_v58  ;;  %v2188_v53 = vmul.f32 %v4710_v4, %v2156_v43  ;;  %v2159_v42 = vsub.f32 %v2047_v9, %v2127_v17  ;;  %886 = vrot.lane.b32.xlu1 %v4501_v39, %s3755_s16 }
  0xbc   : > { %v2189_v25 = vmul.f32 %v4718_v27, %v2157_v13  ;;  %v2317_v38 = vmul.f32 %v4767_v0, %v4639_v45  ;;  %v2378_v24 = vmul.f32 %v4710_v4, %v2346_v61  ;;  %v2379_v54 = vmul.f32 %v4718_v27, %v2347_v49  ;;  %v4892_v8 = vpop.permute.xlu1 %2004  ;;  %730 = vrot.lane.b32.xlu0 %v4547_v5, %s3754_s15 }
  0xbd   : > { %v4887_v18 = vpop.eup %3711  ;;  %v2190_v58 = vmul.f32 %v4800_v30, %v2158_v40  ;;  %v2348_v35 = vadd.f32 %v2316_v59, %v2284_v19  ;;  %v2220_v41 = vsel %vm978_vm0, %v2188_v53, 0.0  ;;  %v2191_v0 = vmul.f32 %v4815_v7, %v2159_v42  ;;  %v4905_v2 = vpop.permute.xlu0 %2084 }
  0xbe   : > { %v2251_v9 = vsel %vm978_vm0, %v2189_v25, 0.0  ;;  %v2349_v45 = vadd.f32 %v2317_v38, %v2285_v6  ;;  %v4899_v23 = vpop.eup %3713  ;;  %v2410_v61 = vsel %vm978_vm0, %v2378_v24, 0.0  ;;  %v2441_v4 = vsel %vm978_vm0, %v2379_v54, 0.0 }
  0xbf   : > { %v2221_v19 = vsel %vm978_vm0, %v2190_v58, 0.0  ;;  %v2380_v27 = vmul.f32 %v4800_v30, %v2348_v35  ;;  %v4909_v43 = vpop.eup %3715  ;;  %v2252_v6 = vsel %vm978_vm0, %v2191_v0, 0.0  ;;  %v6394_v49 = vunpack.c.l.bf16 %v4395_v3  ;;  %v6398_v0 = vld [vmem:[#allocation8_spill] sm:$0xff]  ;;  %808 = vrot.lane.b32.xlu1 %v4504_v34, %s3756_s17 }
  0xc0   : > { %v4911_v13 = vadd.f32 %v2221_v19, %v2220_v41  ;;  %v2381_v17 = vmul.f32 %v4815_v7, %v2349_v45  ;;  %v4920_v59 = vadd.f32 %v2252_v6, %v2251_v9  ;;  %v6395_v53 = vunpack.c.h.bf16 %v4395_v3  ;;  %v4930_v38 = vpop.permute.xlu1 %1674  ;;  %v6397_v41 = vld [vmem:[#allocation7_spill] sm:$0xff]  ;;  %888 = vrot.lane.b32.xlu0 %v4504_v34, %s3755_s16  ;;  %v6443_v34 = vld [vmem:[#allocation34_spill] sm:$0xff] }
  0xc1   : > { %v4918_v40 = vadd.f32 %v6394_v49, %v4789_v15  ;;  %v2411_v30 = vsel %vm978_vm0, %v2380_v27, 0.0  ;;  %v2048_v42 = vmul.f32 %v4806_v10, %v4555_v14  ;;  %v2049_v3 = vmul.f32 %v4806_v10, %v4559_v33 }
  0xc2   : > { %v4926_v25 = vadd.f32 %v6395_v53, %v4789_v15  ;;  %v4934_v7 = vpop.eup %3717  ;;  %v4936_v24 = vadd.f32 %v2411_v30, %v2410_v61  ;;  %v2442_v54 = vsel %vm978_vm0, %v2381_v17, 0.0  ;;  %v2286_v9 = vmul.f32 %v4806_v10, %v6397_v41  ;;  %v4949_v61 = vpop.permute.xlu0 %2006  ;;  %v6399_v53 = vld [vmem:[#allocation53_spill] sm:$0xff] }
  0xc3   : > { %v1780_v58 = vmul.f32 %v4918_v40, %v4918_v40  ;;  %v2443_v15 = vadd.f32 %v2442_v54, %v2441_v4  ;;  %v2287_v45 = vmul.f32 %v4806_v10, %v6398_v0  ;;  %v2128_v4 = vmul.f32 %v4819_v50, %v6397_v41  ;;  %732 = vrot.lane.b32.xlu1 %v4575_v22, %s3754_s15 }
  0xc4   : > { %6396 = vst [vmem:[#allocation41_spill] sm:$0xff] %v4926_v25  ;;  %v1781_v35 = vmul.f32 %v4926_v25, %v4926_v25  ;;  %v4953_v19 = vpop.eup %3719  ;;  %v2129_v6 = vmul.f32 %v4819_v50, %v6398_v0  ;;  %v2318_v17 = vmul.f32 %v4819_v50, %v4555_v14  ;;  %v2319_v30 = vmul.f32 %v4819_v50, %v4559_v33  ;;  %v4977_v0 = vpop.permute.xlu1 %2086 }
  0xc5   : > { %v1812_v27 = vadd.f32 %v1780_v58, %v4447_v44  ;;  %v4962_v49 = vpop.eup %3721  ;;  %v6400_v54 = vunpack.c.l.bf16 %v6399_v53  ;;  %v6401_v58 = vunpack.c.h.bf16 %v6399_v53  ;;  %v2160_v33 = vsub.f32 %v2048_v42, %v2128_v4  ;;  %810 = vrot.lane.b32.xlu0 %v4547_v5, %s3756_s17 }
  0xc6   : > { %v1813_v10 = vadd.f32 %v1781_v35, %v4465_v62  ;;  %v4981_v14 = vpop.eup %3723  ;;  %v6402_v62 = vld [vmem:[#allocation58_spill] sm:$0xff]  ;;  %v2161_v50 = vsub.f32 %v2049_v3, %v2129_v6  ;;  %v2350_v39 = vadd.f32 %v2318_v17, %v2286_v9  ;;  %v2351_v25 = vadd.f32 %v2319_v30, %v2287_v45 }
  0xc7   : > { %v4970_v44 = vadd.f32 %v6400_v54, %v4832_v51  ;;  %v4975_v41 = vadd.f32 %v6401_v58, %v4832_v51  ;;  %v1924_v35 = vmul.f32 %v6402_v62, %v1812_v27  ;;  %v4991_v58 = vpop.permute.xlu0 %2008  ;;  %v2192_v42 = vmul.f32 %v4727_v36, %v2160_v33  ;;  %v6403_v6 = vld [vmem:[#allocation62_spill] sm:$0xff]  ;;  %890 = vrot.lane.b32.xlu1 %v4547_v5, %s3755_s16 }
  0xc8   : > { %v4984_v46 = vpop.eup %3725  ;;  %v1925_v54 = vmul.f32 %v6402_v62, %v1813_v10  ;;  %v2193_v3 = vmul.f32 %v4738_v29, %v2161_v50  ;;  %v2382_v9 = vmul.f32 %v4727_v36, %v2350_v39  ;;  %v2383_v45 = vmul.f32 %v4738_v29, %v2351_v25  ;;  %v6404_v10 = vld [vmem:[#allocation63_spill] sm:$0xff]  ;;  %v5001_v62 = vpop.permute.xlu1 %2088  ;;  %v6405_v36 = vld [vmem:[#allocation64_spill] sm:$0xff] }
  0xc9   : > { %v1782_v51 = vmul.f32 %v4970_v44, %v4970_v44  ;;  %v1783_v53 = vmul.f32 %v4975_v41, %v4975_v41  ;;  %v1956_v27 = vmax.f32 %v1924_v35, 0.001  ;;  %v2223_v35 = vsel %vm978_vm0, %v2192_v42, 0.0  ;;  %734 = vrot.lane.b32.xlu0 %v4594_v21, %s3754_s15 }
  0xca   : > { %v1957_v4 = vmax.f32 %v1925_v54, 0.001  ;;  %v2254_v33 = vsel %vm978_vm0, %v2193_v3, 0.0  ;;  %v2413_v50 = vsel %vm978_vm0, %v2382_v9, 0.0  ;;  %v2444_v39 = vsel %vm978_vm0, %v2383_v45, 0.0  ;;  %v6407_v3 = vld [vmem:[#allocation18_spill] sm:$0xff] }
  0xcb   : > { %v1814_v17 = vadd.f32 %v1782_v51, %v6403_v6  ;;  %v1815_v30 = vadd.f32 %v1783_v53, %v6404_v10  ;;  %3727 = vrcp.f32 %v1956_v27  ;;  %v5011_v54 = vpop.permute.xlu0 %2010  ;;  %v2050_v51 = vmul.f32 %v4849_v56, %v4652_v12  ;;  %v6406_v27 = vld [vmem:[#allocation17_spill] sm:$0xff]  ;;  %812 = vrot.lane.b32.xlu1 %v4575_v22, %s3756_s17 }
  0xcc   : > { %3729 = vrcp.f32 %v1957_v4  ;;  %v2051_v53 = vmul.f32 %v4849_v56, %v4656_v55  ;;  %v2288_v42 = vmul.f32 %v4849_v56, %v6406_v27  ;;  %v2289_v9 = vmul.f32 %v4849_v56, %v6407_v3  ;;  %v5025_v10 = vpop.permute.xlu1 %2090 }
  0xcd   : > { %v1926_v29 = vmul.f32 %v6405_v36, %v1814_v17  ;;  %v1927_v25 = vmul.f32 %v6405_v36, %v1815_v30  ;;  %v2224_v6 = vadd.f32 %v2223_v35, %v4911_v13  ;;  %v2255_v17 = vadd.f32 %v2254_v33, %v4920_v59  ;;  %892 = vrot.lane.b32.xlu0 %v4575_v22, %s3755_s16 }
  0xce   : > { %v2414_v30 = vadd.f32 %v2413_v50, %v4936_v24  ;;  %v2445_v36 = vadd.f32 %v2444_v39, %v2443_v15  ;;  %v2130_v5 = vmul.f32 %v4867_v47, %v6406_v27  ;;  %v2131_v56 = vmul.f32 %v4867_v47, %v6407_v3  ;;  %v6410_v3 = vld [vmem:[#allocation68_spill] sm:$0xff] }
  0xcf   : > { %v1958_v4 = vmax.f32 %v1926_v29, 0.001  ;;  %v1959_v45 = vmax.f32 %v1927_v25, 0.001  ;;  %v2320_v13 = vmul.f32 %v4867_v47, %v4652_v12  ;;  %v2321_v59 = vmul.f32 %v4867_v47, %v4656_v55  ;;  %v5043_v24 = vpop.permute.xlu0 %2012  ;;  %736 = vrot.lane.b32.xlu1 %v4597_v57, %s3754_s15 }
  0xd0   : > { %v6408_v35 = vunpack.c.l.bf16 %v4482_v31  ;;  %v2162_v15 = vsub.f32 %v2050_v51, %v2130_v5  ;;  %v2163_v50 = vsub.f32 %v2051_v53, %v2131_v56  ;;  %v6409_v39 = vunpack.c.h.bf16 %v4482_v31  ;;  %v5056_v27 = vpop.permute.xlu1 %2092 }
  0xd1   : > { %3731 = vrcp.f32 %v1958_v4  ;;  %v2352_v29 = vadd.f32 %v2320_v13, %v2288_v42  ;;  %v2353_v55 = vadd.f32 %v2321_v59, %v2289_v9  ;;  %v2052_v25 = vmul.f32 %v4892_v8, %v4660_v37  ;;  %v6411_v4 = vld [vmem:[#allocation21_spill] sm:$0xff]  ;;  %814 = vrot.lane.b32.xlu0 %v4594_v21, %s3756_s17 }
  0xd2   : > { %v5041_v33 = vadd.f32 %v6408_v35, %v4879_v20  ;;  %3733 = vrcp.f32 %v1959_v45  ;;  %v5050_v12 = vadd.f32 %v6409_v39, %v4879_v20  ;;  %v2194_v5 = vmul.f32 %v4836_v28, %v2162_v15  ;;  %v6412_v35 = vld [vmem:[#allocation69_spill] sm:$0xff] }
  0xd3   : > { %v2195_v51 = vmul.f32 %v4843_v63, %v2163_v50  ;;  %v2053_v20 = vmul.f32 %v4892_v8, %v4672_v48  ;;  %v2384_v53 = vmul.f32 %v4836_v28, %v2352_v29  ;;  %v2385_v42 = vmul.f32 %v4843_v63, %v2353_v55  ;;  %v5071_v56 = vpop.permute.xlu0 %2014  ;;  %v6413_v50 = vld [vmem:[#allocation22_spill] sm:$0xff]  ;;  %894 = vrot.lane.b32.xlu1 %v4594_v21, %s3755_s16 }
  0xd4   : > { %v1784_v47 = vmul.f32 %v5041_v33, %v5041_v33  ;;  %v1785_v31 = vmul.f32 %v5050_v12, %v5050_v12  ;;  %v2290_v45 = vmul.f32 %v4892_v8, %v6411_v4  ;;  %v2225_v13 = vsel %vm978_vm0, %v2194_v5, 0.0 }
  0xd5   : > { %v2256_v59 = vsel %vm978_vm0, %v2195_v51, 0.0  ;;  %v2291_v28 = vmul.f32 %v4892_v8, %v6413_v50  ;;  %v2226_v63 = vadd.f32 %v2225_v13, %v2224_v6  ;;  %v2415_v29 = vsel %vm978_vm0, %v2384_v53, 0.0  ;;  %816 = vrot.lane.b32.xlu0 %v4597_v57, %s3756_s17 }
  0xd6   : > { %v1816_v9 = vadd.f32 %v1784_v47, %v6410_v3  ;;  %v1817_v15 = vadd.f32 %v1785_v31, %v6412_v35  ;;  %v2257_v39 = vadd.f32 %v2256_v59, %v2255_v17  ;;  %v2446_v55 = vsel %vm978_vm0, %v2385_v42, 0.0  ;;  %v5082_v47 = vpop.permute.xlu1 %2094 }
  0xd7   : > { %v2416_v3 = vadd.f32 %v2415_v29, %v2414_v30  ;;  %v2447_v5 = vadd.f32 %v2446_v55, %v2445_v36  ;;  %v2132_v8 = vmul.f32 %v4905_v2, %v6411_v4  ;;  %v2133_v6 = vmul.f32 %v4905_v2, %v6413_v50  ;;  %v5098_v30 = vpop.permute.xlu0 %2016  ;;  %896 = vrot.lane.b32.xlu1 %v4597_v57, %s3755_s16 }
  0xd8   : > { %v1928_v51 = vmul.f32 %v4540_v52, %v1816_v9  ;;  %v1929_v31 = vmul.f32 %v4540_v52, %v1817_v15  ;;  %v5088_v35 = vpop.eup %3727  ;;  %v2322_v17 = vmul.f32 %v4905_v2, %v4660_v37  ;;  %v2323_v53 = vmul.f32 %v4905_v2, %v4672_v48  ;;  %v6414_v9 = vld [vmem:[#allocation67_spill] sm:$0xff] }
  0xd9   : > { %v5102_v52 = vpop.eup %3729  ;;  %v6415_v4 = vunpack.c.l.bf16 %v6414_v9  ;;  %v6416_v37 = vunpack.c.h.bf16 %v6414_v9  ;;  %v2164_v48 = vsub.f32 %v2052_v25, %v2132_v8  ;;  %v2165_v2 = vsub.f32 %v2053_v20, %v2133_v6  ;;  %v6417_v8 = vld [vmem:[#allocation73_spill] sm:$0xff] }
  0xda   : > { %v1960_v36 = vmax.f32 %v1928_v51, 0.001  ;;  %v1961_v42 = vmax.f32 %v1929_v31, 0.001  ;;  %v2354_v15 = vadd.f32 %v2322_v17, %v2290_v45  ;;  %v2355_v50 = vadd.f32 %v2323_v53, %v2291_v28  ;;  %v5114_v29 = vpop.permute.xlu1 %2096  ;;  %v6418_v53 = vld [vmem:[#allocation27_spill] sm:$0xff] }
  0xdb   : > { %v5107_v13 = vadd.f32 %v6415_v4, %v4930_v38  ;;  %v5112_v59 = vadd.f32 %v6416_v37, %v4930_v38  ;;  %v2054_v38 = vmul.f32 %v4949_v61, %v4685_v1  ;;  %v2196_v25 = vmul.f32 %v4853_v11, %v2164_v48  ;;  %v6419_v37 = vld [vmem:[#allocation23_spill] sm:$0xff] }
  0xdc   : > { %3735 = vrcp.f32 %v1960_v36  ;;  %v2197_v20 = vmul.f32 %v4859_v32, %v2165_v2  ;;  %v2386_v45 = vmul.f32 %v4853_v11, %v2354_v15  ;;  %v2387_v31 = vmul.f32 %v4859_v32, %v2355_v50  ;;  %v5143_v2 = vpop.permute.xlu0 %2018 }
  0xdd   : > { %v1786_v55 = vmul.f32 %v5107_v13, %v5107_v13  ;;  %v1787_v51 = vmul.f32 %v5112_v59, %v5112_v59  ;;  %3737 = vrcp.f32 %v1961_v42  ;;  %v2055_v36 = vmul.f32 %v4949_v61, %v6418_v53 }
  0xde   : > { %v5129_v28 = vpop.eup %3731  ;;  %v2227_v9 = vsel %vm978_vm0, %v2196_v25, 0.0  ;;  %v2258_v11 = vsel %vm978_vm0, %v2197_v20, 0.0  ;;  %v2417_v4 = vsel %vm978_vm0, %v2386_v45, 0.0  ;;  %v2292_v48 = vmul.f32 %v4949_v61, %v6419_v37  ;;  %v6421_v25 = vld [vmem:[#allocation24_spill] sm:$0xff]  ;;  %v5150_v21 = vpop.permute.xlu1 %2098 }
  0xdf   : > { %v1818_v6 = vadd.f32 %v1786_v55, %v6417_v8  ;;  %v1819_v17 = vadd.f32 %v1787_v51, %v4569_v16  ;;  %v5136_v42 = vpop.eup %3733  ;;  %v2228_v32 = vadd.f32 %v2227_v9, %v2226_v63  ;;  %v2259_v15 = vadd.f32 %v2258_v11, %v2257_v39  ;;  %v6420_v51 = vld [vmem:[#allocation74_spill] sm:$0xff] }
  0xe0   : > { %v2418_v50 = vadd.f32 %v2417_v4, %v2416_v3  ;;  %v2448_v16 = vsel %vm978_vm0, %v2387_v31, 0.0  ;;  %v2293_v20 = vmul.f32 %v4949_v61, %v6421_v25  ;;  %v2134_v45 = vmul.f32 %v4977_v0, %v6419_v37  ;;  %v6423_v61 = vld [vmem:[#allocation28_spill] sm:$0xff] }
  0xe1   : > { %v2449_v55 = vadd.f32 %v2448_v16, %v2447_v5  ;;  %v1930_v8 = vmul.f32 %v6420_v51, %v1818_v6  ;;  %v1931_v57 = vmul.f32 %v6420_v51, %v1819_v17  ;;  %v2135_v63 = vmul.f32 %v4977_v0, %v6421_v25  ;;  %v6422_v6 = vld [vmem:[#allocation20_spill] sm:$0xff]  ;;  %v6424_v51 = vld [vmem:[#allocation26_spill] sm:$0xff] }
  0xe2   : > { %v2324_v39 = vmul.f32 %v4977_v0, %v4685_v1  ;;  %v2325_v3 = vmul.f32 %v4977_v0, %v6418_v53  ;;  %v2056_v17 = vmul.f32 %v4991_v58, %v6422_v6  ;;  %v2057_v9 = vmul.f32 %v4991_v58, %v6423_v61  ;;  %v6425_v1 = vld [vmem:[#allocation32_spill] sm:$0xff]  ;;  %v5170_v0 = vpop.permute.xlu0 %2020 }
  0xe3   : > { %v1962_v5 = vmax.f32 %v1930_v8, 0.001  ;;  %v1963_v31 = vmax.f32 %v1931_v57, 0.001  ;;  %v2166_v11 = vsub.f32 %v2054_v38, %v2134_v45  ;;  %v2167_v4 = vsub.f32 %v2055_v36, %v2135_v63  ;;  %v5180_v45 = vpop.permute.xlu1 %2100 }
  0xe4   : > { %v2356_v37 = vadd.f32 %v2324_v39, %v2292_v48  ;;  %v2357_v16 = vadd.f32 %v2325_v3, %v2293_v20  ;;  %v2294_v25 = vmul.f32 %v4991_v58, %v6424_v51  ;;  %v2295_v22 = vmul.f32 %v4991_v58, %v6425_v1 }
  0xe5   : > { %3739 = vrcp.f32 %v1962_v5  ;;  %v2136_v57 = vmul.f32 %v5001_v62, %v6424_v51  ;;  %v2198_v53 = vmul.f32 %v4871_v26, %v2166_v11  ;;  %v2199_v38 = vmul.f32 %v4875_v60, %v2167_v4 }
  0xe6   : > { %3741 = vrcp.f32 %v1963_v31  ;;  %v2388_v36 = vmul.f32 %v4871_v26, %v2356_v37  ;;  %v2389_v48 = vmul.f32 %v4875_v60, %v2357_v16  ;;  %v2137_v8 = vmul.f32 %v5001_v62, %v6425_v1 }
  0xe7   : > { %v2168_v20 = vsub.f32 %v2056_v17, %v2136_v57  ;;  %v2326_v58 = vmul.f32 %v5001_v62, %v6422_v6  ;;  %v2229_v63 = vsel %vm978_vm0, %v2198_v53, 0.0  ;;  %v2260_v39 = vsel %vm978_vm0, %v2199_v38, 0.0  ;;  %v6426_v57 = vld [vmem:[#allocation25_spill] sm:$0xff]  ;;  %v6427_v38 = vld [vmem:[#allocation30_spill] sm:$0xff] }
  0xe8   : > { %v2419_v3 = vsel %vm978_vm0, %v2388_v36, 0.0  ;;  %v2327_v26 = vmul.f32 %v5001_v62, %v6423_v61  ;;  %v2230_v60 = vadd.f32 %v2229_v63, %v2228_v32  ;;  %v2261_v31 = vadd.f32 %v2260_v39, %v2259_v15  ;;  %v6428_v61 = vld [vmem:[#allocation36_spill] sm:$0xff]  ;;  %v5199_v15 = vpop.permute.xlu0 %2022  ;;  %v6429_v36 = vld [vmem:[#allocation37_spill] sm:$0xff] }
  0xe9   : > { %v5187_v5 = vpop.eup %3735  ;;  %v2420_v11 = vadd.f32 %v2419_v3, %v2418_v50  ;;  %v2450_v17 = vsel %vm978_vm0, %v2389_v48, 0.0  ;;  %v2169_v37 = vsub.f32 %v2057_v9, %v2137_v8  ;;  %v2200_v16 = vmul.f32 %v4887_v18, %v2168_v20 }
  0xea   : > { %v5190_v4 = vpop.eup %3737  ;;  %v2451_v6 = vadd.f32 %v2450_v17, %v2449_v55  ;;  %v2358_v51 = vadd.f32 %v2326_v58, %v2294_v25  ;;  %v2359_v1 = vadd.f32 %v2327_v26, %v2295_v22  ;;  %v2058_v53 = vmul.f32 %v5011_v54, %v6426_v57  ;;  %v5211_v58 = vpop.permute.xlu1 %2102 }
  0xeb   : > { %v2059_v62 = vmul.f32 %v5011_v54, %v6427_v38  ;;  %v2296_v32 = vmul.f32 %v5011_v54, %v6428_v61  ;;  %v2201_v50 = vmul.f32 %v4899_v23, %v2169_v37  ;;  %v2231_v55 = vsel %vm978_vm0, %v2200_v16, 0.0 }
  0xec   : > { %v2390_v9 = vmul.f32 %v4887_v18, %v2358_v51  ;;  %v2297_v22 = vmul.f32 %v5011_v54, %v6429_v36  ;;  %v2391_v25 = vmul.f32 %v4899_v23, %v2359_v1  ;;  %v2232_v48 = vadd.f32 %v2231_v55, %v2230_v60  ;;  %v6431_v55 = vld [vmem:[#allocation77_spill] sm:$0xff] }
  0xed   : > { %v2138_v8 = vmul.f32 %v5025_v10, %v6428_v61  ;;  %v2139_v20 = vmul.f32 %v5025_v10, %v6429_v36  ;;  %v2262_v63 = vsel %vm978_vm0, %v2201_v50, 0.0  ;;  %v2328_v18 = vmul.f32 %v5025_v10, %v6426_v57  ;;  %v6430_v61 = vld [vmem:[#allocation76_spill] sm:$0xff] }
  0xee   : > { %v2421_v39 = vsel %vm978_vm0, %v2390_v9, 0.0  ;;  %v2329_v54 = vmul.f32 %v5025_v10, %v6427_v38  ;;  %v2452_v23 = vsel %vm978_vm0, %v2391_v25, 0.0  ;;  %v2263_v3 = vadd.f32 %v2262_v63, %v2261_v31  ;;  %v6432_v9 = vld [vmem:[#allocation10_spill] sm:$0xff]  ;;  %v5227_v38 = vpop.permute.xlu0 %2024  ;;  %v5245_v63 = vpop.permute.xlu1 %2104 }
  0xef   : > { %v2422_v26 = vadd.f32 %v2421_v39, %v2420_v11  ;;  %v2170_v60 = vsub.f32 %v2058_v53, %v2138_v8  ;;  %v2453_v17 = vadd.f32 %v2452_v23, %v2451_v6  ;;  %v2171_v37 = vsub.f32 %v2059_v62, %v2139_v20  ;;  %v6433_v62 = vld [vmem:[#allocation11_spill] sm:$0xff] }
  0xf0   : > { %v2360_v16 = vadd.f32 %v2328_v18, %v2296_v32  ;;  %v2361_v51 = vadd.f32 %v2329_v54, %v2297_v22  ;;  %v2060_v50 = vmul.f32 %v5043_v24, %v6430_v61  ;;  %v2061_v57 = vmul.f32 %v5043_v24, %v6431_v55 }
  0xf1   : > { %v2202_v1 = vmul.f32 %v4909_v43, %v2170_v60  ;;  %v2298_v10 = vmul.f32 %v5043_v24, %v6432_v9  ;;  %v2203_v11 = vmul.f32 %v4934_v7, %v2171_v37  ;;  %v2299_v32 = vmul.f32 %v5043_v24, %v6433_v62 }
  0xf2   : > { %v5229_v31 = vpop.eup %3739  ;;  %v2392_v6 = vmul.f32 %v4909_v43, %v2360_v16  ;;  %v2393_v53 = vmul.f32 %v4934_v7, %v2361_v51  ;;  %v2140_v25 = vmul.f32 %v5056_v27, %v6432_v9  ;;  %v2141_v8 = vmul.f32 %v5056_v27, %v6433_v62  ;;  %v6435_v9 = vld [vmem:[#allocation31_spill] sm:$0xff]  ;;  %v6436_v62 = vld [vmem:[#allocation81_spill] sm:$0xff] }
  0xf3   : > { %v5236_v36 = vpop.eup %3741  ;;  %v2233_v22 = vsel %vm978_vm0, %v2202_v1, 0.0  ;;  %v2330_v20 = vmul.f32 %v5056_v27, %v6430_v61  ;;  %v2264_v7 = vsel %vm978_vm0, %v2203_v11, 0.0  ;;  %v2331_v16 = vmul.f32 %v5056_v27, %v6431_v55  ;;  %v6434_v1 = vld [vmem:[#allocation80_spill] sm:$0xff] }
  0xf4   : > { %v2234_v43 = vadd.f32 %v2233_v22, %v2232_v48  ;;  %v2423_v24 = vsel %vm978_vm0, %v2392_v6, 0.0  ;;  %v2454_v39 = vsel %vm978_vm0, %v2393_v53, 0.0  ;;  %v2265_v18 = vadd.f32 %v2264_v7, %v2263_v3  ;;  %v6437_v6 = vld [vmem:[#allocation12_spill] sm:$0xff]  ;;  %v6438_v3 = vld [vmem:[#allocation13_spill] sm:$0xff] }
  0xf5   : > { %v2424_v54 = vadd.f32 %v2423_v24, %v2422_v26  ;;  %v2455_v23 = vadd.f32 %v2454_v39, %v2453_v17  ;;  %v2172_v60 = vsub.f32 %v2060_v50, %v2140_v25  ;;  %v2173_v37 = vsub.f32 %v2061_v57, %v2141_v8  ;;  %v5261_v17 = vpop.permute.xlu0 %706  ;;  %v6439_v50 = vld [vmem:[#allocation29_spill] sm:$0xff] }
  0xf6   : > { %v2362_v51 = vadd.f32 %v2330_v20, %v2298_v10  ;;  %v2062_v61 = vmul.f32 %v5071_v56, %v6434_v1  ;;  %v2063_v11 = vmul.f32 %v5071_v56, %v6436_v62  ;;  %v2300_v53 = vmul.f32 %v5071_v56, %v6437_v6  ;;  %v5274_v20 = vpop.permute.xlu1 %708 }
  0xf7   : > { %v2204_v48 = vmul.f32 %v6435_v9, %v2172_v60  ;;  %v2301_v26 = vmul.f32 %v5071_v56, %v6438_v3  ;;  %v2205_v57 = vmul.f32 %v6439_v50, %v2173_v37  ;;  %v2363_v27 = vadd.f32 %v2331_v16, %v2299_v32 }
  0xf8   : > { %v2394_v55 = vmul.f32 %v6435_v9, %v2362_v51  ;;  %v2142_v10 = vmul.f32 %v5082_v47, %v6437_v6  ;;  %v2143_v25 = vmul.f32 %v5082_v47, %v6438_v3  ;;  %v2332_v8 = vmul.f32 %v5082_v47, %v6434_v1  ;;  %v6440_v6 = vld [vmem:[#allocation35_spill] sm:$0xff]  ;;  %v6441_v3 = vld [vmem:[#allocation38_spill] sm:$0xff] }
  0xf9   : > { %v2235_v22 = vsel %vm978_vm0, %v2204_v48, 0.0  ;;  %v2333_v56 = vmul.f32 %v5082_v47, %v6436_v62  ;;  %v2266_v32 = vsel %vm978_vm0, %v2205_v57, 0.0  ;;  %v2395_v24 = vmul.f32 %v6439_v50, %v2363_v27  ;;  %v5286_v27 = vpop.permute.xlu0 %2026 }
  0xfa   : > { %v2236_v7 = vadd.f32 %v2235_v22, %v2234_v43  ;;  %v2425_v39 = vsel %vm978_vm0, %v2394_v55, 0.0  ;;  %v2267_v60 = vadd.f32 %v2266_v32, %v2265_v18  ;;  %v2174_v16 = vsub.f32 %v2062_v61, %v2142_v10  ;;  %v6442_v22 = vld [vmem:[#allocation82_spill] sm:$0xff]  ;;  %v6444_v61 = vld [vmem:[#allocation40_spill] sm:$0xff] }
  0xfb   : > { %v2426_v37 = vadd.f32 %v2425_v39, %v2424_v54  ;;  %v2175_v51 = vsub.f32 %v2063_v11, %v2143_v25  ;;  %v2456_v9 = vsel %vm978_vm0, %v2395_v24, 0.0  ;;  %v2364_v48 = vadd.f32 %v2332_v8, %v2300_v53  ;;  %v6445_v53 = vld [vmem:[#allocation42_spill] sm:$0xff]  ;;  %v5300_v8 = vpop.permute.xlu1 %2106 }
  0xfc   : > { %v2365_v1 = vadd.f32 %v2333_v56, %v2301_v26  ;;  %v2064_v47 = vmul.f32 %v5098_v30, %v6440_v6  ;;  %v2457_v62 = vadd.f32 %v2456_v9, %v2455_v23  ;;  %v2206_v43 = vmul.f32 %v6441_v3, %v2174_v16 }
  0xfd   : > { %v2207_v57 = vmul.f32 %v6442_v22, %v2175_v51  ;;  %v2065_v50 = vmul.f32 %v5098_v30, %v6443_v34  ;;  %v2396_v18 = vmul.f32 %v6441_v3, %v2364_v48  ;;  %v2302_v11 = vmul.f32 %v5098_v30, %v6444_v61  ;;  %v6446_v3 = vld [vmem:[#allocation43_spill] sm:$0xff] }
  0xfe   : > { %v2397_v54 = vmul.f32 %v6442_v22, %v2365_v1  ;;  %v2303_v26 = vmul.f32 %v5098_v30, %v6445_v53  ;;  %v2237_v23 = vsel %vm978_vm0, %v2206_v43, 0.0  ;;  %v2144_v10 = vmul.f32 %v5114_v29, %v6444_v61  ;;  %v6447_v22 = vld [vmem:[#allocation39_spill] sm:$0xff] }
  0xff   : > { %v2268_v55 = vsel %vm978_vm0, %v2207_v57, 0.0  ;;  %v2145_v25 = vmul.f32 %v5114_v29, %v6445_v53  ;;  %v2238_v56 = vadd.f32 %v2237_v23, %v2236_v7  ;;  %v2427_v24 = vsel %vm978_vm0, %v2396_v18, 0.0 }
 0x100   : > { %v2269_v32 = vadd.f32 %v2268_v55, %v2267_v60  ;;  %v2458_v39 = vsel %vm978_vm0, %v2397_v54, 0.0  ;;  %v2428_v16 = vadd.f32 %v2427_v24, %v2426_v37  ;;  %v2176_v51 = vsub.f32 %v2064_v47, %v2144_v10  ;;  %v6448_v37 = vld [vmem:[#allocation46_spill] sm:$0xff]  ;;  %v5330_v55 = vpop.permute.xlu1 %786 }
 0x101   : > { %v2459_v30 = vadd.f32 %v2458_v39, %v2457_v62  ;;  %v2177_v9 = vsub.f32 %v2065_v50, %v2145_v25  ;;  %v2334_v48 = vmul.f32 %v5114_v29, %v6440_v6  ;;  %v2335_v1 = vmul.f32 %v5114_v29, %v6443_v34  ;;  %v6449_v62 = vld [vmem:[#allocation49_spill] sm:$0xff]  ;;  %v5318_v6 = vpop.permute.xlu0 %710 }
 0x102   : > { %v2066_v43 = vmul.f32 %v5143_v2, %v6446_v3  ;;  %v2067_v7 = vmul.f32 %v5143_v2, %v6447_v22  ;;  %v2208_v60 = vmul.f32 %v4953_v19, %v2176_v51  ;;  %v2304_v47 = vmul.f32 %v5143_v2, %v6448_v37 }
 0x103   : > { %v2209_v57 = vmul.f32 %v4962_v49, %v2177_v9  ;;  %v2305_v50 = vmul.f32 %v5143_v2, %v6449_v62  ;;  %v2366_v18 = vadd.f32 %v2334_v48, %v2302_v11  ;;  %v2367_v34 = vadd.f32 %v2335_v1, %v2303_v26 }
 0x104   : > { %v2146_v29 = vmul.f32 %v5150_v21, %v6448_v37  ;;  %v2147_v54 = vmul.f32 %v5150_v21, %v6449_v62  ;;  %v2239_v61 = vsel %vm978_vm0, %v2208_v60, 0.0  ;;  %v2336_v23 = vmul.f32 %v5150_v21, %v6446_v3 }
 0x105   : > { %v2270_v53 = vsel %vm978_vm0, %v2209_v57, 0.0  ;;  %v2337_v2 = vmul.f32 %v5150_v21, %v6447_v22  ;;  %v2240_v11 = vadd.f32 %v2239_v61, %v2238_v56  ;;  %v2398_v10 = vmul.f32 %v4953_v19, %v2366_v18  ;;  %v6450_v21 = vld [vmem:[#allocation41_spill] sm:$0xff]  ;;  %v6451_v57 = vld [vmem:[#allocation51_spill] sm:$0xff] }
 0x106   : > { %v2271_v26 = vadd.f32 %v2270_v53, %v2269_v32  ;;  %v2399_v25 = vmul.f32 %v4962_v49, %v2367_v34  ;;  %v2178_v24 = vsub.f32 %v2066_v43, %v2146_v29  ;;  %v2179_v39 = vsub.f32 %v2067_v7, %v2147_v54  ;;  %v5342_v43 = vpop.permute.xlu0 %788  ;;  %v5356_v34 = vpop.permute.xlu1 %866 }
 0x107   : > { %v2368_v51 = vadd.f32 %v2336_v23, %v2304_v47  ;;  %v2369_v9 = vadd.f32 %v2337_v2, %v2305_v50  ;;  %v2429_v48 = vsel %vm978_vm0, %v2398_v10, 0.0  ;;  %v2068_v3 = vmul.f32 %v5170_v0, %v4918_v40  ;;  %v6452_v47 = vld [vmem:[#allocation54_spill] sm:$0xff] }
 0x108   : > { %v2460_v1 = vsel %vm978_vm0, %v2399_v25, 0.0  ;;  %v2069_v22 = vmul.f32 %v5170_v0, %v6450_v21  ;;  %v2430_v56 = vadd.f32 %v2429_v48, %v2428_v16  ;;  %v2210_v19 = vmul.f32 %v4981_v14, %v2178_v24 }
 0x109   : > { %v2461_v32 = vadd.f32 %v2460_v1, %v2459_v30  ;;  %v2211_v49 = vmul.f32 %v4984_v46, %v2179_v39  ;;  %v2400_v7 = vmul.f32 %v4981_v14, %v2368_v51  ;;  %v2401_v60 = vmul.f32 %v4984_v46, %v2369_v9  ;;  %v6453_v39 = vld [vmem:[#allocation56_spill] sm:$0xff]  ;;  %v6454_v9 = vld [vmem:[#allocation57_spill] sm:$0xff] }
 0x10a   : > { %v2306_v37 = vmul.f32 %v5170_v0, %v6451_v57  ;;  %v2307_v62 = vmul.f32 %v5170_v0, %v6452_v47  ;;  %v2241_v50 = vsel %vm978_vm0, %v2210_v19, 0.0  ;;  %v2148_v30 = vmul.f32 %v5180_v45, %v6451_v57  ;;  %v5398_v19 = vpop.permute.xlu1 %712 }
 0x10b   : > { %v2272_v16 = vsel %vm978_vm0, %v2211_v49, 0.0  ;;  %v2149_v18 = vmul.f32 %v5180_v45, %v6452_v47  ;;  %v5358_v14 = vadd.f32 %v2241_v50, %v2240_v11  ;;  %v2431_v29 = vsel %vm978_vm0, %v2400_v7, 0.0 }
 0x10c   : > { %v5360_v46 = vadd.f32 %v2272_v16, %v2271_v26  ;;  %v2462_v0 = vsel %vm978_vm0, %v2401_v60, 0.0  ;;  %v5364_v54 = vadd.f32 %v2431_v29, %v2430_v56  ;;  %v2180_v53 = vsub.f32 %v2068_v3, %v2148_v30  ;;  %v3508_v16 = vld [vmem:[%s6101_s0 + $0x88] sm:$0xff]  }
 0x10d   : > { %v5366_v61 = vadd.f32 %v2462_v0, %v2461_v32  ;;  %v2181_v23 = vsub.f32 %v2069_v22, %v2149_v18  ;;  %v2338_v2 = vmul.f32 %v5180_v45, %v4918_v40  ;;  %v2339_v10 = vmul.f32 %v5180_v45, %v6450_v21  ;;  %v5382_v40 = vpop.permute.xlu0 %868  ;;  %v6455_v29 = vld [vmem:[#allocation59_spill] sm:$0xff] }
 0x10e   : > { %v2070_v11 = vmul.f32 %v5199_v15, %v4970_v44  ;;  %v2071_v26 = vmul.f32 %v5199_v15, %v4975_v41  ;;  %v2212_v25 = vmul.f32 %v5088_v35, %v2180_v53  ;;  %v2308_v51 = vmul.f32 %v5199_v15, %v6453_v39  ;;  %v6456_v53 = vld [vmem:[#allocation60_spill] sm:$0xff] }
 0x10f   : > { %v2213_v24 = vmul.f32 %v5102_v52, %v2181_v23  ;;  %v2309_v48 = vmul.f32 %v5199_v15, %v6454_v9  ;;  %v2370_v1 = vadd.f32 %v2338_v2, %v2306_v37  ;;  %v2371_v45 = vadd.f32 %v2339_v10, %v2307_v62 }
 0x110   : > { %v2150_v3 = vmul.f32 %v5211_v58, %v6453_v39  ;;  %v2151_v21 = vmul.f32 %v5211_v58, %v6454_v9  ;;  %v5389_v22 = vsel %vm978_vm0, %v2212_v25, 0.0  ;;  %v2340_v32 = vmul.f32 %v5211_v58, %v4970_v44 }
 0x111   : > { %v5392_v56 = vsel %vm978_vm0, %v2213_v24, 0.0  ;;  %v2341_v15 = vmul.f32 %v5211_v58, %v4975_v41  ;;  %v2402_v49 = vmul.f32 %v5088_v35, %v2370_v1  ;;  %v2403_v7 = vmul.f32 %v5102_v52, %v2371_v45  ;;  %v3507_v58 = vld [vmem:[%s6101_s0 + $0x80] sm:$0xff]   ;;  %v5434_v2 = vpop.permute.xlu0 %790 }
 0x112   : > { %v2182_v60 = vsub.f32 %v2070_v11, %v2150_v3  ;;  %v2183_v57 = vsub.f32 %v2071_v26, %v2151_v21  ;;  %v2372_v37 = vadd.f32 %v2340_v32, %v2308_v51  ;;  %v2072_v62 = vmul.f32 %v5227_v38, %v5041_v33  ;;  %v5444_v51 = vpop.permute.xlu1 %870 }
 0x113   : > { %v2373_v47 = vadd.f32 %v2341_v15, %v2309_v48  ;;  %v2073_v50 = vmul.f32 %v5227_v38, %v5050_v12  ;;  %v5407_v44 = vsel %vm978_vm0, %v2402_v49, 0.0  ;;  %v5410_v41 = vsel %vm978_vm0, %v2403_v7, 0.0 }
 0x114   : > { %v5413_v35 = vmul.f32 %v5129_v28, %v2182_v60  ;;  %v5416_v52 = vmul.f32 %v5136_v42, %v2183_v57  ;;  %v5425_v30 = vmul.f32 %v5129_v28, %v2372_v37  ;;  %v2310_v0 = vmul.f32 %v5227_v38, %v6455_v29  ;;  %v6458_v60 = vld [vmem:[#allocation71_spill] sm:$0xff] }
 0x115   : > { %v5428_v18 = vmul.f32 %v5136_v42, %v2373_v47  ;;  %v2311_v23 = vmul.f32 %v5227_v38, %v6456_v53  ;;  %v2152_v10 = vmul.f32 %v5245_v63, %v6455_v29  ;;  %v2153_v11 = vmul.f32 %v5245_v63, %v6456_v53  ;;  %v5480_v37 = vpop.permute.xlu0 %714  ;;  %v3492_v53 = vld [vmem:[%s6101_s0 + $0x8] sm:$0xff]  }
 0x116   : > { %v2342_v28 = vmul.f32 %v5245_v63, %v5041_v33  ;;  %v2343_v42 = vmul.f32 %v5245_v63, %v5050_v12  ;;  %v3302_v26 = vunpack.c.l.bf16 %v3507_v58  ;;  %v3303_v25 = vunpack.c.h.bf16 %v3507_v58 }
 0x117   : > { %v3306_v24 = vunpack.c.l.bf16 %v3508_v16  ;;  %v3307_v39 = vunpack.c.h.bf16 %v3508_v16  ;;  %v2184_v38 = vsub.f32 %v2072_v62, %v2152_v10  ;;  %v2185_v9 = vsub.f32 %v2073_v50, %v2153_v11 }
 0x118   : > { %v2374_v48 = vadd.f32 %v2342_v28, %v2310_v0  ;;  %v2375_v1 = vadd.f32 %v2343_v42, %v2311_v23  ;;  %v754_v45 = vadd.f32 %v3302_v26, %v5261_v17  ;;  %v755_v3 = vadd.f32 %v3303_v25, %v5261_v17  ;;  %v3509_v17 = vld [vmem:[%s6101_s0 + $0x90] sm:$0xff]   ;;  %v5497_v23 = vpop.permute.xlu1 %792 }
 0x119   : > { %v756_v21 = vadd.f32 %v3306_v24, %v5274_v20  ;;  %v757_v33 = vadd.f32 %v3307_v39, %v5274_v20  ;;  %v5451_v12 = vmul.f32 %v5187_v5, %v2184_v38  ;;  %v5454_v63 = vmul.f32 %v5190_v4, %v2185_v9  ;;  %v3237_v20 = vld [vmem:[%s6101_s0] sm:$0xff]   ;;  %v6459_v42 = vld [vmem:[#allocation4_spill] sm:$0xff] }
 0x11a   : > { %v5457_v32 = vmul.f32 %v5187_v5, %v2374_v48  ;;  %v5460_v15 = vmul.f32 %v5190_v4, %v2375_v1  ;;  %v5470_v49 = vmul.f32 %v5286_v27, %v5107_v13  ;;  %v5474_v7 = vmul.f32 %v5286_v27, %v5112_v59  ;;  %v6457_v5 = vld [vmem:[#allocation70_spill] sm:$0xff] }
 0x11b   : > { %v2312_v4 = vmul.f32 %v5286_v27, %v6457_v5  ;;  %v2313_v57 = vmul.f32 %v5286_v27, %v6458_v60  ;;  %v5484_v47 = vmul.f32 %v5300_v8, %v6457_v5  ;;  %v5488_v62 = vmul.f32 %v5300_v8, %v6458_v60 }
 0x11c   : > { %v2344_v50 = vmul.f32 %v5300_v8, %v5107_v13  ;;  %v2345_v58 = vmul.f32 %v5300_v8, %v5112_v59  ;;  %v3310_v16 = vunpack.c.l.bf16 %v3509_v17  ;;  %v3311_v29 = vunpack.c.h.bf16 %v3509_v17 }
 0x11d   : > { %v3238_v0 = vunpack.c.l.bf16 %v3237_v20  ;;  %v3239_v27 = vunpack.c.h.bf16 %v3237_v20  ;;  %v2186_v10 = vsub.f32 %v5470_v49, %v5484_v47  ;;  %v2187_v11 = vsub.f32 %v5474_v7, %v5488_v62  ;;  %v6460_v49 = vld [vmem:[#allocation5_spill] sm:$0xff] }
 0x11e   : > { %v5503_v13 = vadd.f32 %v2344_v50, %v2312_v4  ;;  %v5505_v28 = vadd.f32 %v2345_v58, %v2313_v57  ;;  %v5508_v59 = vadd.f32 %v3310_v16, %v5318_v6  ;;  %v5511_v8 = vadd.f32 %v3311_v29, %v5318_v6  ;;  %v5521_v6 = vpop.permute.xlu0 %872  ;;  %v5531_v50 = vpop.permute.xlu1 %716 }
 0x11f   : > { %v609_v26 = vadd.f32 %v3238_v0, %v6459_v42  ;;  %v610_v25 = vadd.f32 %v3239_v27, %v6459_v42  ;;  %v1073_v24 = vmul.f32 %v5330_v55, %v754_v45  ;;  %v1074_v39 = vmul.f32 %v5330_v55, %v755_v3 }
 0x120   : > { %v3242_v38 = vunpack.c.l.bf16 %v3492_v53  ;;  %v3243_v9 = vunpack.c.h.bf16 %v3492_v53  ;;  %v1075_v17 = vmul.f32 %v5342_v43, %v756_v21  ;;  %v1076_v20 = vmul.f32 %v5342_v43, %v757_v33 }
 0x121   : > { %v834_v48 = vmul.f32 %v5330_v55, %v609_v26  ;;  %v835_v1 = vmul.f32 %v5330_v55, %v610_v25  ;;  %v914_v4 = vmul.f32 %v5356_v34, %v754_v45  ;;  %v915_v60 = vmul.f32 %v5356_v34, %v755_v3 }
 0x122   : > { %v611_v7 = vadd.f32 %v3242_v38, %v6460_v49  ;;  %v612_v5 = vadd.f32 %v3243_v9, %v6460_v49  ;;  %v1041_v57 = vmul.f32 %v5356_v34, %v609_v26  ;;  %v1042_v47 = vmul.f32 %v5356_v34, %v610_v25  ;;  %v3510_v34 = vld [vmem:[%s6101_s0 + $0x98] sm:$0xff]   ;;  %v5544_v38 = vpop.permute.xlu0 %794 }
 0x123   : > { %v916_v55 = vmul.f32 %v5382_v40, %v756_v21  ;;  %v917_v62 = vmul.f32 %v5382_v40, %v757_v33  ;;  %v946_v29 = vsub.f32 %v834_v48, %v914_v4  ;;  %v947_v0 = vsub.f32 %v835_v1, %v915_v60  ;;  %v5554_v60 = vpop.permute.xlu1 %874 }
 0x124   : > { %v836_v58 = vmul.f32 %v5342_v43, %v611_v7  ;;  %v837_v16 = vmul.f32 %v5342_v43, %v612_v5  ;;  %v1105_v27 = vadd.f32 %v1073_v24, %v1041_v57  ;;  %v1106_v45 = vadd.f32 %v1074_v39, %v1042_v47 }
 0x125   : > { %v1043_v3 = vmul.f32 %v5382_v40, %v611_v7  ;;  %v1044_v53 = vmul.f32 %v5382_v40, %v612_v5  ;;  %v979_v21 = vsel %vm978_vm0, %v946_v29, 0.0  ;;  %v1010_v33 = vsel %vm978_vm0, %v947_v0, 0.0 }
 0x126   : > { %v948_v42 = vsub.f32 %v836_v58, %v916_v55  ;;  %v949_v26 = vsub.f32 %v837_v16, %v917_v62  ;;  %v1137_v43 = vsel %vm978_vm0, %v1105_v27, 0.0  ;;  %v1168_v25 = vsel %vm978_vm0, %v1106_v45, 0.0 }
 0x127   : > { %v1107_v24 = vadd.f32 %v1075_v17, %v1043_v3  ;;  %v1108_v39 = vadd.f32 %v1076_v20, %v1044_v53  ;;  %v3314_v48 = vunpack.c.l.bf16 %v3510_v34  ;;  %v3315_v1 = vunpack.c.h.bf16 %v3510_v34 }
 0x128   : > { %v980_v40 = vsel %vm978_vm0, %v948_v42, 0.0  ;;  %v1011_v9 = vsel %vm978_vm0, %v949_v26, 0.0  ;;  %v2218_v55 = vmul.f32 %v5229_v31, %v2186_v10  ;;  %v2219_v62 = vmul.f32 %v5236_v36, %v2187_v11 }
 0x129   : > { %v5548_v49 = vadd.f32 %v980_v40, %v979_v21  ;;  %v5550_v7 = vadd.f32 %v1011_v9, %v1010_v33  ;;  %v1138_v5 = vsel %vm978_vm0, %v1107_v24, 0.0  ;;  %v1169_v4 = vsel %vm978_vm0, %v1108_v39, 0.0  ;;  %v3494_v39 = vld [vmem:[%s6101_s0 + $0x18] sm:$0xff]  }
 0x12a   : > { %v5556_v17 = vadd.f32 %v1138_v5, %v1137_v43  ;;  %v5558_v20 = vadd.f32 %v1169_v4, %v1168_v25  ;;  %v5561_v57 = vadd.f32 %v3314_v48, %v5398_v19  ;;  %v5564_v47 = vadd.f32 %v3315_v1, %v5398_v19  ;;  %v6461_v43 = vld [vmem:[#allocation6_spill] sm:$0xff] }
 0x12b   : > { %v2244_v58 = vadd.f32 %v5389_v22, %v5358_v14  ;;  %v2245_v16 = vsel %vm978_vm0, %v5413_v35, 0.0  ;;  %v2247_v29 = vsel %vm978_vm0, %v5451_v12, 0.0  ;;  %v2275_v0 = vadd.f32 %v5392_v56, %v5360_v46  ;;  %v5584_v35 = vpop.permute.xlu0 %718 }
 0x12c   : > { %v2276_v19 = vsel %vm978_vm0, %v5416_v52, 0.0  ;;  %v2278_v10 = vsel %vm978_vm0, %v5454_v63, 0.0  ;;  %v2249_v11 = vsel %vm978_vm0, %v2218_v55, 0.0  ;;  %v2280_v14 = vsel %vm978_vm0, %v2219_v62, 0.0  ;;  %v3493_v63 = vld [vmem:[%s6101_s0 + $0x10] sm:$0xff]  }
 0x12d   : > { %v2246_v27 = vadd.f32 %v2245_v16, %v2244_v58  ;;  %v2408_v22 = vmul.f32 %v5229_v31, %v5503_v13  ;;  %v2277_v12 = vadd.f32 %v2276_v19, %v2275_v0  ;;  %v2409_v46 = vmul.f32 %v5236_v36, %v5505_v28  ;;  %v5600_v36 = vpop.permute.xlu1 %796 }
 0x12e   : > { %v2434_v56 = vadd.f32 %v5407_v44, %v5364_v54  ;;  %v2435_v52 = vsel %vm978_vm0, %v5425_v30, 0.0  ;;  %v2437_v31 = vsel %vm978_vm0, %v5457_v32, 0.0  ;;  %v2465_v3 = vadd.f32 %v5410_v41, %v5366_v61 }
 0x12f   : > { %v2248_v45 = vadd.f32 %v2247_v29, %v2246_v27  ;;  %v2439_v13 = vsel %vm978_vm0, %v2408_v22, 0.0  ;;  %v2279_v28 = vadd.f32 %v2278_v10, %v2277_v12  ;;  %v2466_v44 = vsel %vm978_vm0, %v5428_v18, 0.0  ;;  %v3511_v18 = vld [vmem:[%s6101_s0 + $0xa0] sm:$0xff]   ;;  %v5624_v40 = vpop.permute.xlu0 %876 }
 0x130   : > { %v2436_v54 = vadd.f32 %v2435_v52, %v2434_v56  ;;  %v2468_v30 = vsel %vm978_vm0, %v5460_v15, 0.0  ;;  %v2467_v34 = vadd.f32 %v2466_v44, %v2465_v3  ;;  %v2470_v32 = vsel %vm978_vm0, %v2409_v46, 0.0  ;;  %v6462_v56 = vld [vmem:[#allocation9_spill] sm:$0xff] }
 0x131   : > { %v5606_v53 = vadd.f32 %v2249_v11, %v2248_v45  ;;  %v3246_v21 = vunpack.c.l.bf16 %v3493_v63  ;;  %v5609_v33 = vadd.f32 %v2280_v14, %v2279_v28  ;;  %v3247_v61 = vunpack.c.h.bf16 %v3493_v63  ;;  %v5637_v58 = vpop.permute.xlu1 %720  ;;  %v3512_v28 = vld [vmem:[%s6101_s0 + $0xa8] sm:$0xff]  }
 0x132   : > { %v2438_v42 = vadd.f32 %v2437_v31, %v2436_v54  ;;  %v1077_v41 = vmul.f32 %v5434_v2, %v5508_v59  ;;  %v2469_v26 = vadd.f32 %v2468_v30, %v2467_v34  ;;  %v1078_v25 = vmul.f32 %v5434_v2, %v5511_v8 }
 0x133   : > { %v613_v15 = vadd.f32 %v3246_v21, %v6461_v43  ;;  %v918_v24 = vmul.f32 %v5444_v51, %v5508_v59  ;;  %v3635_v9 = vpack.i.bf16 %v5609_v33, %v5606_v53  ;;  %v614_v1 = vadd.f32 %v3247_v61, %v6461_v43  ;;  %v5652_v45 = vpop.permute.xlu0 %798 }
 0x134   : > { %v5628_v48 = vadd.f32 %v2439_v13, %v2438_v42  ;;  %v919_v5 = vmul.f32 %v5444_v51, %v5511_v8  ;;  %v5633_v4 = vadd.f32 %v2470_v32, %v2469_v26  ;;  %v3318_v62 = vunpack.c.l.bf16 %v3511_v18 }
 0x135   : > { %v838_v59 = vmul.f32 %v5434_v2, %v613_v15  ;;  %v1045_v55 = vmul.f32 %v5444_v51, %v613_v15  ;;  %3636 = vrot.lane.b32.xlu0 %v3635_v9, %s3755_s16  ;;  %v839_v16 = vmul.f32 %v5434_v2, %v614_v1  ;;  %v1046_v29 = vmul.f32 %v5444_v51, %v614_v1  ;;  %v5668_v32 = vpop.permute.xlu1 %878 }
 0x136   : > { %v3319_v0 = vunpack.c.h.bf16 %v3511_v18  ;;  %v3250_v19 = vunpack.c.l.bf16 %v3494_v39  ;;  %v3640_v8 = vpack.i.bf16 %v5633_v4, %v5628_v48  ;;  %v762_v11 = vadd.f32 %v3318_v62, %v5480_v37 }
 0x137   : > { %v950_v10 = vsub.f32 %v838_v59, %v918_v24  ;;  %v1109_v27 = vadd.f32 %v1077_v41, %v1045_v55  ;;  %v951_v14 = vsub.f32 %v839_v16, %v919_v5  ;;  %v1110_v22 = vadd.f32 %v1078_v25, %v1046_v29  ;;  %v5681_v1 = vpop.permute.xlu0 %722  ;;  %v6463_v5 = vld [vmem:[#allocation14_spill] sm:$0xff] }
 0x138   : > { %v763_v12 = vadd.f32 %v3319_v0, %v5480_v37  ;;  %v3251_v46 = vunpack.c.h.bf16 %v3494_v39  ;;  %3641 = vrot.lane.b32.xlu1 %v3640_v8, %s3755_s16  ;;  %v615_v52 = vadd.f32 %v3250_v19, %v6462_v56  ;;  %v1079_v63 = vmul.f32 %v5497_v23, %v5561_v57 }
 0x139   : > { %v982_v2 = vsel %vm978_vm0, %v950_v10, 0.0  ;;  %v1140_v51 = vsel %vm978_vm0, %v1109_v27, 0.0  ;;  %v1013_v13 = vsel %vm978_vm0, %v951_v14, 0.0  ;;  %v1171_v3 = vsel %vm978_vm0, %v1110_v22, 0.0  ;;  %v5692_v0 = vpop.permute.xlu1 %800  ;;  %v3496_v14 = vld [vmem:[%s6101_s0 + $0x28] sm:$0xff]  }
 0x13a   : > { %v983_v31 = vadd.f32 %v982_v2, %v5548_v49  ;;  %v1141_v37 = vadd.f32 %v1140_v51, %v5556_v17  ;;  %v1014_v54 = vadd.f32 %v1013_v13, %v5550_v7  ;;  %v1172_v44 = vadd.f32 %v1171_v3, %v5558_v20  ;;  %v3495_v49 = vld [vmem:[%s6101_s0 + $0x20] sm:$0xff]  }
 0x13b   : > { %v616_v30 = vadd.f32 %v3251_v46, %v6462_v56  ;;  %v840_v34 = vmul.f32 %v5497_v23, %v615_v52  ;;  %v1080_v17 = vmul.f32 %v5497_v23, %v5564_v47  ;;  %v920_v21 = vmul.f32 %v5521_v6, %v5561_v57 }
 0x13c   : > { %v921_v7 = vmul.f32 %v5521_v6, %v5564_v47  ;;  %v1047_v20 = vmul.f32 %v5521_v6, %v615_v52  ;;  %v3322_v41 = vunpack.c.l.bf16 %v3512_v28  ;;  %v3323_v18 = vunpack.c.h.bf16 %v3512_v28 }
 0x13d   : > { %v841_v42 = vmul.f32 %v5497_v23, %v616_v30  ;;  %v1048_v61 = vmul.f32 %v5521_v6, %v616_v30  ;;  %v952_v26 = vsub.f32 %v840_v34, %v920_v21  ;;  %v3254_v15 = vunpack.c.l.bf16 %v3495_v49  ;;  %v5713_v21 = vpop.permute.xlu1 %724 }
 0x13e   : > { %v1111_v43 = vadd.f32 %v1079_v63, %v1047_v20  ;;  %v3255_v25 = vunpack.c.h.bf16 %v3495_v49  ;;  %v764_v9 = vadd.f32 %v3322_v41, %v5531_v50  ;;  %v765_v57 = vadd.f32 %v3323_v18, %v5531_v50  ;;  %v3513_v50 = vld [vmem:[%s6101_s0 + $0xb0] sm:$0xff]   ;;  %v6464_v49 = vld [vmem:[#allocation19_spill] sm:$0xff] }
 0x13f   : > { %v953_v24 = vsub.f32 %v841_v42, %v921_v7  ;;  %v1112_v39 = vadd.f32 %v1080_v17, %v1048_v61  ;;  %v984_v47 = vsel %vm978_vm0, %v952_v26, 0.0  ;;  %v617_v6 = vadd.f32 %v3254_v15, %v6463_v5  ;;  %v3497_v15 = vld [vmem:[%s6101_s0 + $0x30] sm:$0xff]  }
 0x140   : > { %v1142_v23 = vsel %vm978_vm0, %v1111_v43, 0.0  ;;  %v618_v59 = vadd.f32 %v3255_v25, %v6463_v5  ;;  %v985_v55 = vadd.f32 %v984_v47, %v983_v31  ;;  %v1081_v22 = vmul.f32 %v5544_v38, %v762_v11 }
 0x141   : > { %v1015_v62 = vsel %vm978_vm0, %v953_v24, 0.0  ;;  %v1143_v16 = vadd.f32 %v1142_v23, %v1141_v37  ;;  %v1173_v29 = vsel %vm978_vm0, %v1112_v39, 0.0  ;;  %v842_v10 = vmul.f32 %v5544_v38, %v617_v6 }
 0x142   : > { %v1016_v19 = vadd.f32 %v1015_v62, %v1014_v54  ;;  %v1174_v8 = vadd.f32 %v1173_v29, %v1172_v44  ;;  %v843_v27 = vmul.f32 %v5544_v38, %v618_v59  ;;  %v1082_v46 = vmul.f32 %v5544_v38, %v763_v12  ;;  %v5705_v54 = vpop.permute.xlu0 %880 }
 0x143   : > { %v922_v2 = vmul.f32 %v5554_v60, %v762_v11  ;;  %v923_v51 = vmul.f32 %v5554_v60, %v763_v12  ;;  %v1049_v56 = vmul.f32 %v5554_v60, %v617_v6  ;;  %v1050_v52 = vmul.f32 %v5554_v60, %v618_v59 }
 0x144   : > { %v3326_v63 = vunpack.c.l.bf16 %v3513_v50  ;;  %v3327_v31 = vunpack.c.h.bf16 %v3513_v50  ;;  %v3258_v3 = vunpack.c.l.bf16 %v3496_v14  ;;  %v3259_v28 = vunpack.c.h.bf16 %v3496_v14 }
 0x145   : > { %v954_v13 = vsub.f32 %v842_v10, %v922_v2  ;;  %v955_v37 = vsub.f32 %v843_v27, %v923_v51  ;;  %v1113_v44 = vadd.f32 %v1081_v22, %v1049_v56  ;;  %v1114_v30 = vadd.f32 %v1082_v46, %v1050_v52  ;;  %v5735_v10 = vpop.permute.xlu1 %882  ;;  %v6465_v27 = vld [vmem:[#allocation33_spill] sm:$0xff] }
 0x146   : > { %v766_v38 = vadd.f32 %v3326_v63, %v5584_v35  ;;  %v767_v11 = vadd.f32 %v3327_v31, %v5584_v35  ;;  %v619_v60 = vadd.f32 %v3258_v3, %v6464_v49  ;;  %v620_v17 = vadd.f32 %v3259_v28, %v6464_v49  ;;  %v3514_v35 = vld [vmem:[%s6101_s0 + $0xb8] sm:$0xff]  }
 0x147   : > { %v986_v12 = vsel %vm978_vm0, %v954_v13, 0.0  ;;  %v1017_v34 = vsel %vm978_vm0, %v955_v37, 0.0  ;;  %v1144_v42 = vsel %vm978_vm0, %v1113_v44, 0.0  ;;  %v1175_v61 = vsel %vm978_vm0, %v1114_v30, 0.0  ;;  %v3498_v37 = vld [vmem:[%s6101_s0 + $0x38] sm:$0xff]  }
 0x148   : > { %v987_v7 = vadd.f32 %v986_v12, %v985_v55  ;;  %v1018_v20 = vadd.f32 %v1017_v34, %v1016_v19  ;;  %v1145_v41 = vadd.f32 %v1144_v42, %v1143_v16  ;;  %v1176_v18 = vadd.f32 %v1175_v61, %v1174_v8  ;;  %v5731_v55 = vpop.permute.xlu0 %802 }
 0x149   : > { %v844_v26 = vmul.f32 %v5600_v36, %v619_v60  ;;  %v845_v43 = vmul.f32 %v5600_v36, %v620_v17  ;;  %v1083_v25 = vmul.f32 %v5600_v36, %v764_v9  ;;  %v1084_v24 = vmul.f32 %v5600_v36, %v765_v57 }
 0x14a   : > { %v924_v39 = vmul.f32 %v5624_v40, %v764_v9  ;;  %v925_v47 = vmul.f32 %v5624_v40, %v765_v57  ;;  %v1051_v23 = vmul.f32 %v5624_v40, %v619_v60  ;;  %v1052_v5 = vmul.f32 %v5624_v40, %v620_v17 }
 0x14b   : > { %v3330_v6 = vunpack.c.l.bf16 %v3514_v35  ;;  %v3331_v59 = vunpack.c.h.bf16 %v3514_v35  ;;  %v3262_v29 = vunpack.c.l.bf16 %v3497_v15  ;;  %v3263_v50 = vunpack.c.h.bf16 %v3497_v15  ;;  %v5759_v35 = vpop.permute.xlu1 %804 }
 0x14c   : > { %v956_v62 = vsub.f32 %v844_v26, %v924_v39  ;;  %v957_v16 = vsub.f32 %v845_v43, %v925_v47  ;;  %v1115_v19 = vadd.f32 %v1083_v25, %v1051_v23  ;;  %v1116_v8 = vadd.f32 %v1084_v24, %v1052_v5  ;;  %v5755_v12 = vpop.permute.xlu0 %726  ;;  %v6466_v43 = vld [vmem:[#allocation45_spill] sm:$0xff]  ;;  %v3516_v23 = vld [vmem:[%s6101_s0 + $0xc8] sm:$0xff]  }
 0x14d   : > { %v768_v36 = vadd.f32 %v3330_v6, %v5637_v58  ;;  %v769_v9 = vadd.f32 %v3331_v59, %v5637_v58  ;;  %v621_v14 = vadd.f32 %v3262_v29, %v6465_v27  ;;  %v622_v22 = vadd.f32 %v3263_v50, %v6465_v27  ;;  %v3515_v58 = vld [vmem:[%s6101_s0 + $0xc0] sm:$0xff]  }
 0x14e   : > { %v988_v57 = vsel %vm978_vm0, %v956_v62, 0.0  ;;  %v1019_v40 = vsel %vm978_vm0, %v957_v16, 0.0  ;;  %v1146_v51 = vsel %vm978_vm0, %v1115_v19, 0.0  ;;  %v1177_v56 = vsel %vm978_vm0, %v1116_v8, 0.0  ;;  %v3499_v62 = vld [vmem:[%s6101_s0 + $0x40] sm:$0xff]  }
 0x14f   : > { %v989_v46 = vadd.f32 %v988_v57, %v987_v7  ;;  %v1020_v2 = vadd.f32 %v1019_v40, %v1018_v20  ;;  %v1147_v52 = vadd.f32 %v1146_v51, %v1145_v41  ;;  %v1178_v63 = vadd.f32 %v1177_v56, %v1176_v18 }
 0x150   : > { %v846_v31 = vmul.f32 %v5652_v45, %v621_v14  ;;  %v847_v13 = vmul.f32 %v5652_v45, %v622_v22  ;;  %v1085_v3 = vmul.f32 %v5652_v45, %v766_v38  ;;  %v1086_v28 = vmul.f32 %v5652_v45, %v767_v11  ;;  %v5777_v16 = vpop.permute.xlu0 %884 }
 0x151   : > { %v926_v44 = vmul.f32 %v5668_v32, %v766_v38  ;;  %v927_v30 = vmul.f32 %v5668_v32, %v767_v11  ;;  %v1053_v34 = vmul.f32 %v5668_v32, %v621_v14  ;;  %v1054_v49 = vmul.f32 %v5668_v32, %v622_v22  ;;  %v5785_v22 = vpop.permute.xlu1 %728 }
 0x152   : > { %v3334_v60 = vunpack.c.l.bf16 %v3515_v58  ;;  %v3335_v17 = vunpack.c.h.bf16 %v3515_v58  ;;  %v3266_v42 = vunpack.c.l.bf16 %v3498_v37  ;;  %v3267_v61 = vunpack.c.h.bf16 %v3498_v37 }
 0x153   : > { %v958_v7 = vsub.f32 %v846_v31, %v926_v44  ;;  %v959_v20 = vsub.f32 %v847_v13, %v927_v30  ;;  %v1117_v41 = vadd.f32 %v1085_v3, %v1053_v34  ;;  %v1118_v45 = vadd.f32 %v1086_v28, %v1054_v49  ;;  %v6467_v31 = vld [vmem:[#allocation55_spill] sm:$0xff]  ;;  %v3517_v30 = vld [vmem:[%s6101_s0 + $0xd0] sm:$0xff]  }
 0x154   : > { %v770_v38 = vadd.f32 %v3334_v60, %v5681_v1  ;;  %v771_v11 = vadd.f32 %v3335_v17, %v5681_v1  ;;  %v623_v32 = vadd.f32 %v3266_v42, %v6466_v43  ;;  %v624_v15 = vadd.f32 %v3267_v61, %v6466_v43  ;;  %v5798_v34 = vpop.permute.xlu0 %806 }
 0x155   : > { %v990_v18 = vsel %vm978_vm0, %v958_v7, 0.0  ;;  %v1021_v26 = vsel %vm978_vm0, %v959_v20, 0.0  ;;  %v1148_v39 = vsel %vm978_vm0, %v1117_v41, 0.0  ;;  %v1179_v47 = vsel %vm978_vm0, %v1118_v45, 0.0  ;;  %v3500_v7 = vld [vmem:[%s6101_s0 + $0x48] sm:$0xff]   ;;  %v5809_v45 = vpop.permute.xlu1 %886 }
 0x156   : > { %v991_v25 = vadd.f32 %v990_v18, %v989_v46  ;;  %v1022_v24 = vadd.f32 %v1021_v26, %v1020_v2  ;;  %v1149_v5 = vadd.f32 %v1148_v39, %v1147_v52  ;;  %v1180_v1 = vadd.f32 %v1179_v47, %v1178_v63 }
 0x157   : > { %v848_v6 = vmul.f32 %v5692_v0, %v623_v32  ;;  %v849_v59 = vmul.f32 %v5692_v0, %v624_v15  ;;  %v1087_v29 = vmul.f32 %v5692_v0, %v768_v36  ;;  %v1088_v50 = vmul.f32 %v5692_v0, %v769_v9 }
 0x158   : > { %v928_v19 = vmul.f32 %v5705_v54, %v768_v36  ;;  %v929_v8 = vmul.f32 %v5705_v54, %v769_v9  ;;  %v1055_v57 = vmul.f32 %v5705_v54, %v623_v32  ;;  %v1056_v40 = vmul.f32 %v5705_v54, %v624_v15 }
 0x159   : > { %v3338_v27 = vunpack.c.l.bf16 %v3516_v23  ;;  %v3339_v14 = vunpack.c.h.bf16 %v3516_v23  ;;  %v3270_v51 = vunpack.c.l.bf16 %v3499_v62  ;;  %v3271_v56 = vunpack.c.h.bf16 %v3499_v62 }
 0x15a   : > { %v960_v46 = vsub.f32 %v848_v6, %v928_v19  ;;  %v961_v2 = vsub.f32 %v849_v59, %v929_v8  ;;  %v1119_v58 = vadd.f32 %v1087_v29, %v1055_v57  ;;  %v1120_v52 = vadd.f32 %v1088_v50, %v1056_v40  ;;  %v731_v59 = vpop.permute.xlu0 %730  ;;  %v3518_v8 = vld [vmem:[%s6101_s0 + $0xd8] sm:$0xff]  }
 0x15b   : > { %v772_v0 = vadd.f32 %v3338_v27, %v5713_v21  ;;  %v773_v36 = vadd.f32 %v3339_v14, %v5713_v21  ;;  %v625_v54 = vadd.f32 %v3270_v51, %v6467_v31  ;;  %v626_v13 = vadd.f32 %v3271_v56, %v6467_v31  ;;  %v3501_v14 = vld [vmem:[%s6101_s0 + $0x50] sm:$0xff]  }
 0x15c   : > { %v992_v9 = vsel %vm978_vm0, %v960_v46, 0.0  ;;  %v1023_v63 = vsel %vm978_vm0, %v961_v2, 0.0  ;;  %v1150_v28 = vsel %vm978_vm0, %v1119_v58, 0.0  ;;  %v1181_v44 = vsel %vm978_vm0, %v1120_v52, 0.0  ;;  %v5829_v46 = vpop.permute.xlu1 %808 }
 0x15d   : > { %v993_v37 = vadd.f32 %v992_v9, %v991_v25  ;;  %v1024_v3 = vadd.f32 %v1023_v63, %v1022_v24  ;;  %v1151_v21 = vadd.f32 %v1150_v28, %v1149_v5  ;;  %v1182_v49 = vadd.f32 %v1181_v44, %v1180_v1  ;;  %v6468_v1 = vld [vmem:[#allocation61_spill] sm:$0xff] }
 0x15e   : > { %v850_v60 = vmul.f32 %v5731_v55, %v625_v54  ;;  %v851_v17 = vmul.f32 %v5731_v55, %v626_v13  ;;  %v1089_v20 = vmul.f32 %v5731_v55, %v770_v38  ;;  %v1090_v42 = vmul.f32 %v5731_v55, %v771_v11 }
 0x15f   : > { %v930_v61 = vmul.f32 %v5735_v10, %v770_v38  ;;  %v931_v41 = vmul.f32 %v5735_v10, %v771_v11  ;;  %v1057_v18 = vmul.f32 %v5735_v10, %v625_v54  ;;  %v1058_v26 = vmul.f32 %v5735_v10, %v626_v13 }
 0x160   : > { %v3342_v43 = vunpack.c.l.bf16 %v3517_v30  ;;  %v3343_v32 = vunpack.c.h.bf16 %v3517_v30  ;;  %v3274_v24 = vunpack.c.l.bf16 %v3500_v7  ;;  %v3275_v39 = vunpack.c.h.bf16 %v3500_v7 }
 0x161   : > { %v962_v15 = vsub.f32 %v850_v60, %v930_v61  ;;  %v963_v25 = vsub.f32 %v851_v17, %v931_v41  ;;  %v1121_v47 = vadd.f32 %v1089_v20, %v1057_v18  ;;  %v1122_v23 = vadd.f32 %v1090_v42, %v1058_v26  ;;  %v3519_v61 = vld [vmem:[%s6101_s0 + $0xe0] sm:$0xff]  }
 0x162   : > { %v774_v55 = vadd.f32 %v3342_v43, %v5755_v12  ;;  %v775_v38 = vadd.f32 %v3343_v32, %v5755_v12  ;;  %v627_v6 = vadd.f32 %v3274_v24, %v6468_v1  ;;  %v628_v10 = vadd.f32 %v3275_v39, %v6468_v1  ;;  %v3502_v32 = vld [vmem:[%s6101_s0 + $0x58] sm:$0xff]  }
 0x163   : > { %v994_v11 = vsel %vm978_vm0, %v962_v15, 0.0  ;;  %v1025_v5 = vsel %vm978_vm0, %v963_v25, 0.0  ;;  %v1152_v50 = vsel %vm978_vm0, %v1121_v47, 0.0  ;;  %v1183_v19 = vsel %vm978_vm0, %v1122_v23, 0.0 }
 0x164   : > { %v995_v62 = vadd.f32 %v994_v11, %v993_v37  ;;  %v1026_v29 = vadd.f32 %v1025_v5, %v1024_v3  ;;  %v1153_v12 = vadd.f32 %v1152_v50, %v1151_v21  ;;  %v1184_v57 = vadd.f32 %v1183_v19, %v1182_v49  ;;  %v889_v21 = vpop.permute.xlu0 %888  ;;  %v6469_v49 = vld [vmem:[#allocation65_spill] sm:$0xff] }
 0x165   : > { %v852_v40 = vmul.f32 %v5759_v35, %v627_v6  ;;  %v853_v27 = vmul.f32 %v5759_v35, %v628_v10  ;;  %v1091_v2 = vmul.f32 %v5759_v35, %v772_v0  ;;  %v1092_v51 = vmul.f32 %v5759_v35, %v773_v36 }
 0x166   : > { %v932_v56 = vmul.f32 %v5777_v16, %v772_v0  ;;  %v933_v58 = vmul.f32 %v5777_v16, %v773_v36  ;;  %v1059_v52 = vmul.f32 %v5777_v16, %v627_v6  ;;  %v1060_v9 = vmul.f32 %v5777_v16, %v628_v10 }
 0x167   : > { %v3346_v63 = vunpack.c.l.bf16 %v3518_v8  ;;  %v3347_v31 = vunpack.c.h.bf16 %v3518_v8  ;;  %v3278_v37 = vunpack.c.l.bf16 %v3501_v14  ;;  %v3279_v3 = vunpack.c.h.bf16 %v3501_v14 }
 0x168   : > { %v964_v54 = vsub.f32 %v852_v40, %v932_v56  ;;  %v965_v13 = vsub.f32 %v853_v27, %v933_v58  ;;  %v1123_v28 = vadd.f32 %v1091_v2, %v1059_v52  ;;  %v1124_v44 = vadd.f32 %v1092_v51, %v1060_v9  ;;  %v3520_v56 = vld [vmem:[%s6101_s0 + $0xe8] sm:$0xff]  }
 0x169   : > { %v776_v30 = vadd.f32 %v3346_v63, %v5785_v22  ;;  %v777_v35 = vadd.f32 %v3347_v31, %v5785_v22  ;;  %v629_v60 = vadd.f32 %v3278_v37, %v6469_v49  ;;  %v630_v16 = vadd.f32 %v3279_v3, %v6469_v49  ;;  %v733_v22 = vpop.permute.xlu1 %732  ;;  %v3503_v63 = vld [vmem:[%s6101_s0 + $0x60] sm:$0xff]  }
 0x16a   : > { %v996_v0 = vsel %vm978_vm0, %v964_v54, 0.0  ;;  %v1027_v36 = vsel %vm978_vm0, %v965_v13, 0.0  ;;  %v1154_v20 = vsel %vm978_vm0, %v1123_v28, 0.0  ;;  %v1185_v42 = vsel %vm978_vm0, %v1124_v44, 0.0 }
 0x16b   : > { %v997_v17 = vadd.f32 %v996_v0, %v995_v62  ;;  %v1028_v7 = vadd.f32 %v1027_v36, %v1026_v29  ;;  %v1155_v41 = vadd.f32 %v1154_v20, %v1153_v12  ;;  %v1186_v18 = vadd.f32 %v1185_v42, %v1184_v57  ;;  %v811_v29 = vpop.permute.xlu0 %810 }
 0x16c   : > { %v854_v26 = vmul.f32 %v5798_v34, %v629_v60  ;;  %v855_v43 = vmul.f32 %v5798_v34, %v630_v16  ;;  %v1093_v15 = vmul.f32 %v5798_v34, %v774_v55  ;;  %v1094_v25 = vmul.f32 %v5798_v34, %v775_v38 }
 0x16d   : > { %v934_v24 = vmul.f32 %v5809_v45, %v774_v55  ;;  %v935_v39 = vmul.f32 %v5809_v45, %v775_v38  ;;  %v1061_v47 = vmul.f32 %v5809_v45, %v629_v60  ;;  %v1062_v23 = vmul.f32 %v5809_v45, %v630_v16  ;;  %v6470_v38 = vld [vmem:[#allocation66_spill] sm:$0xff]  ;;  %v891_v45 = vpop.permute.xlu1 %890 }
 0x16e   : > { %v3350_v11 = vunpack.c.l.bf16 %v3519_v61  ;;  %v3351_v5 = vunpack.c.h.bf16 %v3519_v61  ;;  %v3282_v10 = vunpack.c.l.bf16 %v3502_v32  ;;  %v3283_v62 = vunpack.c.h.bf16 %v3502_v32 }
 0x16f   : > { %v966_v1 = vsub.f32 %v854_v26, %v934_v24  ;;  %v967_v6 = vsub.f32 %v855_v43, %v935_v39  ;;  %v1125_v50 = vadd.f32 %v1093_v15, %v1061_v47  ;;  %v1126_v19 = vadd.f32 %v1094_v25, %v1062_v23  ;;  %v735_v36 = vpop.permute.xlu0 %734  ;;  %v3521_v25 = vld [vmem:[%s6101_s0 + $0xf0] sm:$0xff]   ;;  %v3504_v23 = vld [vmem:[%s6101_s0 + $0x68] sm:$0xff]  }
 0x170   : > { %v778_v8 = vadd.f32 %v3350_v11, %v731_v59  ;;  %v779_v12 = vadd.f32 %v3351_v5, %v731_v59  ;;  %v631_v57 = vadd.f32 %v3282_v10, %v6470_v38  ;;  %v632_v40 = vadd.f32 %v3283_v62, %v6470_v38 }
 0x171   : > { %v998_v34 = vsel %vm978_vm0, %v966_v1, 0.0  ;;  %v1029_v55 = vsel %vm978_vm0, %v967_v6, 0.0  ;;  %v1156_v2 = vsel %vm978_vm0, %v1125_v50, 0.0  ;;  %v1187_v51 = vsel %vm978_vm0, %v1126_v19, 0.0 }
 0x172   : > { %v999_v27 = vadd.f32 %v998_v34, %v997_v17  ;;  %v1030_v14 = vadd.f32 %v1029_v55, %v1028_v7  ;;  %v1157_v59 = vadd.f32 %v1156_v2, %v1155_v41  ;;  %v1188_v58 = vadd.f32 %v1187_v51, %v1186_v18  ;;  %v813_v41 = vpop.permute.xlu1 %812 }
 0x173   : > { %v856_v52 = vmul.f32 %v5829_v46, %v631_v57  ;;  %v857_v9 = vmul.f32 %v5829_v46, %v632_v40  ;;  %v1095_v31 = vmul.f32 %v5829_v46, %v776_v30  ;;  %v1096_v54 = vmul.f32 %v5829_v46, %v777_v35  ;;  %v893_v10 = vpop.permute.xlu0 %892 }
 0x174   : > { %v936_v13 = vmul.f32 %v889_v21, %v776_v30  ;;  %v937_v37 = vmul.f32 %v889_v21, %v777_v35  ;;  %v1063_v3 = vmul.f32 %v889_v21, %v631_v57  ;;  %v1064_v28 = vmul.f32 %v889_v21, %v632_v40  ;;  %v6471_v30 = vld [vmem:[#allocation72_spill] sm:$0xff] }
 0x175   : > { %v3354_v44 = vunpack.c.l.bf16 %v3520_v56  ;;  %v3355_v0 = vunpack.c.h.bf16 %v3520_v56  ;;  %v3286_v16 = vunpack.c.l.bf16 %v3503_v63  ;;  %v3287_v17 = vunpack.c.h.bf16 %v3503_v63 }
 0x176   : > { %v968_v49 = vsub.f32 %v856_v52, %v936_v13  ;;  %v969_v60 = vsub.f32 %v857_v9, %v937_v37  ;;  %v1127_v7 = vadd.f32 %v1095_v31, %v1063_v3  ;;  %v1128_v20 = vadd.f32 %v1096_v54, %v1064_v28  ;;  %v3522_v31 = vld [vmem:[%s6101_s0 + $0xf8] sm:$0xff]   ;;  %v3505_v28 = vld [vmem:[%s6101_s0 + $0x70] sm:$0xff]  }
 0x177   : > { %v780_v42 = vadd.f32 %v3354_v44, %v733_v22  ;;  %v781_v61 = vadd.f32 %v3355_v0, %v733_v22  ;;  %v633_v35 = vadd.f32 %v3286_v16, %v6471_v30  ;;  %v634_v21 = vadd.f32 %v3287_v17, %v6471_v30  ;;  %v815_v44 = vpop.permute.xlu0 %814 }
 0x178   : > { %v1000_v18 = vsel %vm978_vm0, %v968_v49, 0.0  ;;  %v1031_v46 = vsel %vm978_vm0, %v969_v60, 0.0  ;;  %v1158_v32 = vsel %vm978_vm0, %v1127_v7, 0.0  ;;  %v1189_v15 = vsel %vm978_vm0, %v1128_v20, 0.0 }
 0x179   : > { %v1001_v26 = vadd.f32 %v1000_v18, %v999_v27  ;;  %v1032_v43 = vadd.f32 %v1031_v46, %v1030_v14  ;;  %v1159_v22 = vadd.f32 %v1158_v32, %v1157_v59  ;;  %v1190_v24 = vadd.f32 %v1189_v15, %v1188_v58  ;;  %v737_v27 = vpop.permute.xlu1 %736 }
 0x17a   : > { %v858_v39 = vmul.f32 %v811_v29, %v633_v35  ;;  %v859_v47 = vmul.f32 %v811_v29, %v634_v21  ;;  %v1097_v11 = vmul.f32 %v811_v29, %v778_v8  ;;  %v1098_v5 = vmul.f32 %v811_v29, %v779_v12 }
 0x17b   : > { %v938_v1 = vmul.f32 %v891_v45, %v778_v8  ;;  %v939_v6 = vmul.f32 %v891_v45, %v779_v12  ;;  %v1065_v62 = vmul.f32 %v891_v45, %v633_v35  ;;  %v1066_v50 = vmul.f32 %v891_v45, %v634_v21  ;;  %v6472_v8 = vld [vmem:[#allocation75_spill] sm:$0xff] }
 0x17c   : > { %v3358_v19 = vunpack.c.l.bf16 %v3521_v25  ;;  %v3359_v34 = vunpack.c.h.bf16 %v3521_v25  ;;  %v3290_v57 = vunpack.c.l.bf16 %v3504_v23  ;;  %v3291_v40 = vunpack.c.h.bf16 %v3504_v23 }
 0x17d   : > { %v970_v55 = vsub.f32 %v858_v39, %v938_v1  ;;  %v971_v38 = vsub.f32 %v859_v47, %v939_v6  ;;  %v1129_v14 = vadd.f32 %v1097_v11, %v1065_v62  ;;  %v1130_v2 = vadd.f32 %v1098_v5, %v1066_v50  ;;  %v895_v18 = vpop.permute.xlu1 %894  ;;  %v817_v5 = vpop.permute.xlu0 %816 }
 0x17e   : > { %v782_v51 = vadd.f32 %v3358_v19, %v735_v36  ;;  %v783_v56 = vadd.f32 %v3359_v34, %v735_v36  ;;  %v635_v12 = vadd.f32 %v3290_v57, %v6472_v8  ;;  %v636_v58 = vadd.f32 %v3291_v40, %v6472_v8 }
 0x17f   : > { %v1002_v59 = vsel %vm978_vm0, %v970_v55, 0.0  ;;  %v1033_v29 = vsel %vm978_vm0, %v971_v38, 0.0  ;;  %v1160_v9 = vsel %vm978_vm0, %v1129_v14, 0.0  ;;  %v1191_v63 = vsel %vm978_vm0, %v1130_v2, 0.0 }
 0x180   : > { %v1003_v45 = vadd.f32 %v1002_v59, %v1001_v26  ;;  %v5891_v52 = vadd.f32 %v1033_v29, %v1032_v43  ;;  %v1161_v54 = vadd.f32 %v1160_v9, %v1159_v22  ;;  %v5898_v13 = vadd.f32 %v1191_v63, %v1190_v24  ;;  %v3506_v24 = vld [vmem:[%s6101_s0 + $0x78] sm:$0xff]   ;;  %v6474_v29 = vld [vmem:[#allocation79_spill] sm:$0xff] }
 0x181   : > { %v860_v37 = vmul.f32 %v813_v41, %v635_v12  ;;  %v861_v3 = vmul.f32 %v813_v41, %v636_v58  ;;  %v1099_v0 = vmul.f32 %v813_v41, %v780_v42  ;;  %v1100_v36 = vmul.f32 %v813_v41, %v781_v61  ;;  %v6473_v41 = vld [vmem:[#allocation78_spill] sm:$0xff]  ;;  %v897_v38 = vpop.permute.xlu1 %896 }
 0x182   : > { %v940_v49 = vmul.f32 %v893_v10, %v780_v42  ;;  %v941_v60 = vmul.f32 %v893_v10, %v781_v61  ;;  %v1067_v16 = vmul.f32 %v893_v10, %v635_v12  ;;  %v1068_v17 = vmul.f32 %v893_v10, %v636_v58 }
 0x183   : > { %v3362_v7 = vunpack.c.l.bf16 %v3522_v31  ;;  %v3363_v20 = vunpack.c.h.bf16 %v3522_v31  ;;  %v3294_v35 = vunpack.c.l.bf16 %v3505_v28  ;;  %v3295_v21 = vunpack.c.h.bf16 %v3505_v28 }
 0x184   : > { %v972_v46 = vsub.f32 %v860_v37, %v940_v49  ;;  %v973_v30 = vsub.f32 %v861_v3, %v941_v60  ;;  %v1131_v26 = vadd.f32 %v1099_v0, %v1067_v16  ;;  %v1132_v43 = vadd.f32 %v1100_v36, %v1068_v17 }
 0x185   : > { %v784_v32 = vadd.f32 %v3362_v7, %v737_v27  ;;  %v785_v15 = vadd.f32 %v3363_v20, %v737_v27  ;;  %v637_v42 = vadd.f32 %v3294_v35, %v6473_v41  ;;  %v638_v61 = vadd.f32 %v3295_v21, %v6473_v41 }
 0x186   : > { %v1004_v25 = vsel %vm978_vm0, %v972_v46, 0.0  ;;  %v1035_v22 = vsel %vm978_vm0, %v973_v30, 0.0  ;;  %v1162_v39 = vsel %vm978_vm0, %v1131_v26, 0.0  ;;  %v1193_v47 = vsel %vm978_vm0, %v1132_v43, 0.0 }
 0x187   : > { %v1101_v23 = vmul.f32 %v815_v44, %v782_v51  ;;  %v1102_v11 = vmul.f32 %v815_v44, %v783_v56  ;;  %v862_v1 = vmul.f32 %v815_v44, %v637_v42  ;;  %v863_v6 = vmul.f32 %v815_v44, %v638_v61 }
 0x188   : > { %v942_v10 = vmul.f32 %v895_v18, %v782_v51  ;;  %v943_v62 = vmul.f32 %v895_v18, %v783_v56  ;;  %v1069_v50 = vmul.f32 %v895_v18, %v637_v42  ;;  %v1070_v19 = vmul.f32 %v895_v18, %v638_v61 }
 0x189   : > { %v3298_v34 = vunpack.c.l.bf16 %v3506_v24  ;;  %v3299_v55 = vunpack.c.h.bf16 %v3506_v24  ;;  %v1103_v27 = vmul.f32 %v817_v5, %v784_v32  ;;  %v1104_v14 = vmul.f32 %v817_v5, %v785_v15 }
 0x18a   : > { %v974_v57 = vsub.f32 %v862_v1, %v942_v10  ;;  %v975_v40 = vsub.f32 %v863_v6, %v943_v62  ;;  %v1133_v2 = vadd.f32 %v1101_v23, %v1069_v50  ;;  %v1134_v59 = vadd.f32 %v1102_v11, %v1070_v19 }
 0x18b   : > { %v639_v8 = vadd.f32 %v3298_v34, %v6474_v29  ;;  %v640_v12 = vadd.f32 %v3299_v55, %v6474_v29  ;;  %v944_v58 = vmul.f32 %v897_v38, %v784_v32  ;;  %v945_v9 = vmul.f32 %v897_v38, %v785_v15 }
 0x18c   : > { %v1005_v63 = vadd.f32 %v1004_v25, %v1003_v45  ;;  %v1006_v51 = vsel %vm978_vm0, %v974_v57, 0.0  ;;  %v1036_v44 = vadd.f32 %v1035_v22, %v5891_v52  ;;  %v1037_v0 = vsel %vm978_vm0, %v975_v40, 0.0 }
 0x18d   : > { %v864_v56 = vmul.f32 %v817_v5, %v639_v8  ;;  %v865_v31 = vmul.f32 %v817_v5, %v640_v12  ;;  %v1071_v37 = vmul.f32 %v897_v38, %v639_v8  ;;  %v1072_v3 = vmul.f32 %v897_v38, %v640_v12 }
 0x18e   : > { %v1007_v28 = vadd.f32 %v1006_v51, %v1005_v63  ;;  %v1163_v36 = vadd.f32 %v1162_v39, %v1161_v54  ;;  %v1038_v7 = vadd.f32 %v1037_v0, %v1036_v44  ;;  %v1164_v20 = vsel %vm978_vm0, %v1133_v2, 0.0 }
 0x18f   : > { %v976_v49 = vsub.f32 %v864_v56, %v944_v58  ;;  %v977_v60 = vsub.f32 %v865_v31, %v945_v9  ;;  %v1135_v16 = vadd.f32 %v1103_v27, %v1071_v37  ;;  %v1136_v17 = vadd.f32 %v1104_v14, %v1072_v3 }
 0x190   : > { %v1194_v45 = vadd.f32 %v1193_v47, %v5898_v13  ;;  %v1195_v18 = vsel %vm978_vm0, %v1134_v59, 0.0  ;;  %v1165_v35 = vadd.f32 %v1164_v20, %v1163_v36  ;;  %v2484_v61 = vsub.f32 0.0, %v5628_v48 }
 0x191   : > { %v1008_v46 = vsel %vm978_vm0, %v976_v49, 0.0  ;;  %v1039_v30 = vsel %vm978_vm0, %v977_v60, 0.0  ;;  %v1166_v52 = vsel %vm978_vm0, %v1135_v16, 0.0  ;;  %v1197_v43 = vsel %vm978_vm0, %v1136_v17, 0.0 }
 0x192   : > { %v1009_v21 = vadd.f32 %v1008_v46, %v1007_v28  ;;  %v1040_v54 = vadd.f32 %v1039_v30, %v1038_v7  ;;  %v1196_v26 = vadd.f32 %v1195_v18, %v1194_v45  ;;  %v1167_v32 = vadd.f32 %v1166_v52, %v1165_v35 }
 0x193   : > { %v2485_v24 = vsub.f32 0.0, %v5633_v4 }
 0x194   : > { %v2472_v15 = vpack.c.bf16 %v1040_v54, %v1009_v21  ;;  %v1198_v25 = vadd.f32 %v1197_v43, %v1196_v26 }
 0x196   : > { %2498 = vxpose.xlu0.c.b16.start [1/2] (short) (narrow) %v2472_v15, 32  ;;  %v2473_v22 = vpack.c.bf16 %v1198_v25, %v1167_v32 }
 0x19a   : > { %2499 = vxpose.xlu0.c.b16.end [2/2] (short) (narrow) %v2473_v22, 32 }
 0x1a7   : > { %v3637_v13 = vpop.permute.xlu0 %3636 }
 0x1a8   : > { %v3639_v41 = vunpack.i.h.bf16 %v3637_v13  ;;  %v3638_v42 = vunpack.i.l.bf16 %v3637_v13 }
 0x1aa   : > { %v3642_v39 = vpop.permute.xlu1 %3641  ;;  %v2494_v47 = vsel %vm978_vm0, %v2484_v61, %v3638_v42  ;;  %v2495_v23 = vsel %vm978_vm0, %v2485_v24, %v3639_v41 }
 0x1ab   : > { %v3644_v11 = vunpack.i.h.bf16 %v3642_v39  ;;  %v3643_v5 = vunpack.i.l.bf16 %v3642_v39  ;;  %v2497_v1 = vpack.c.bf16 %v2495_v23, %v2494_v47 }
 0x1ad   : > { %3574 = vmatprep.subr.bf16.mxu0 %v2497_v1  ;;  %v2482_v6 = vsel %vm978_vm0, %v5606_v53, %v3643_v5  ;;  %v2483_v10 = vsel %vm978_vm0, %v5609_v33, %v3644_v11 }
 0x1ae   : > { %3575 = vmatpush3.bf16.msra.mxu0 %v2497_v1  ;;  %v2496_v62 = vpack.c.bf16 %v2483_v10, %v2482_v6 }
 0x1b0   : > { %3576 = vmatprep.subr.bf16.mxu0 %v2496_v62 }
 0x1b2   : > { %3577 = vmatpush3.bf16.msra.mxu0 %v2496_v62 }
 0x1f8   : > { %v2506_v48 = vpop.trf.xlu0 }
 0x1f9   : > { %3578 = vmatprep.mubr.msk.bf16.mxu0 %vm978_vm0, %v2506_v48 }
 0x1fc   : > { %v2507_v4 = vpop.trf.xlu0 }
 0x1fd   : > { %3579 = vmatmul.mubr.msk.bf16.vlgmr.msra.gmra.mxu0 %vm978_vm0, %v2507_v4 }
 0x2bd   : > { %v5934_v50 = vpop.f32.mrf.mxu0 }
 0x2be   : > { %v2571_v19 = vmul.f32 %v5934_v50, %v5934_v50  ;;  %v2615_v27 = vsel %vm978_vm0, %v5934_v50, 0.0 }
 0x2bf   : > { %v5938_v34 = vpop.f32.mrf.mxu0 }
 0x2c0   : > { %2581 = vrot.lane.b32.xlu1 %v2571_v19, %s3754_s15  ;;  %v2569_v33 = vmul.f32 %v5938_v34, %v5938_v34  ;;  %v2612_v38 = vsel %vm978_vm0, %v5938_v34, 0.0 }
 0x2c1   : > { %v5941_v53 = vpop.f32.mrf.mxu0 }
 0x2c2   : > { %v2617_v59 = vsel %vm978_vm0, %v5941_v53, 0.0  ;;  %v2572_v8 = vmul.f32 %v5941_v53, %v5941_v53 }
 0x2c3   : > { %v5945_v55 = vpop.f32.mrf.mxu0 }
 0x2c4   : > { %v2613_v57 = vsel %vm978_vm0, %v5945_v55, 0.0  ;;  %2577 = vrot.lane.b32.xlu1 %v2569_v33, %s3754_s15  ;;  %v2570_v14 = vmul.f32 %v5945_v55, %v5945_v55 }
 0x2c5   : > { %v2614_v40 = vadd.f32 %v2613_v57, %v2612_v38 }
 0x2c7   : > { %v2616_v2 = vadd.f32 %v2615_v27, %v2614_v40  ;;  %v3671_v40 = vld [vmem:[%s6106_s5 + $0x18] sm:$0xff]   ;;  %v3672_v27 = vld [vmem:[%s6106_s5 + $0x10] sm:$0xff]  }
 0x2c8   : > { %2579 = vrot.lane.b32.xlu1 %v2570_v14, %s3754_s15  ;;  %3582 = vmatprep.subr.bf16.mxu1 %v3671_v40 }
 0x2c9   : > { %v2618_v29 = vadd.f32 %v2617_v59, %v2616_v2  ;;  %3583 = vmatpush3.bf16.msra.mxu1 %v3671_v40 }
 0x2ca   : > { %3584 = vmatprep.subr.bf16.mxu1 %v3672_v27 }
 0x2cb   : > { %2619 = vadd.xlane.f32.xlu0 %v2618_v29  ;;  %v3674_v29 = vld [vmem:[%s6106_s5] sm:$0xff]  }
 0x2cc   : > { %2583 = vrot.lane.b32.xlu1 %v2572_v8, %s3754_s15 }
 0x2cd   : > { %3585 = vmatpush3.bf16.msra.mxu1 %v3672_v27 }
 0x332   : > { %v2582_v12 = vpop.permute.xlu1 %2581 }
 0x333   : > { %v2591_v51 = vadd.f32 %v2582_v12, %v2571_v19 }
 0x335   : > { %v2595_v28 = vsel %vm978_vm0, %v2591_v51, -inf  ;;  %v2667_v51 = vld [vmem:[%s6105_s4] sm:$0xff] }
 0x336   : > { %v2578_v58 = vpop.permute.xlu1 %2577 }
 0x337   : > { %v2589_v56 = vadd.f32 %v2578_v58, %v2569_v33 }
 0x339   : > { %v2593_v44 = vsel %vm978_vm0, %v2589_v56, -inf  ;;  %v2668_v56 = vld [vmem:[%s6105_s4 + $0x8] sm:$0xff] }
 0x33a   : > { %v2580_v9 = vpop.permute.xlu1 %2579 }
 0x33b   : > { %v2590_v63 = vadd.f32 %v2580_v9, %v2570_v14  ;;  %v3673_v14 = vld [vmem:[%s6106_s5 + $0x8] sm:$0xff]  }
 0x33c   : > { %3586 = vmatprep.subr.bf16.mxu1 %v3673_v14 }
 0x33d   : > { %v2594_v37 = vsel %vm978_vm0, %v2590_v63, -inf  ;;  %3587 = vmatpush3.bf16.msra.mxu1 %v3673_v14 }
 0x33e   : > { %v2584_v31 = vpop.permute.xlu1 %2583  ;;  %v2597_v36 = vmax.f32 %v2593_v44, %v2594_v37  ;;  %3588 = vmatprep.subr.bf16.mxu1 %v3674_v29  ;;  %v2669_v44 = vld [vmem:[%s6105_s4 + $0x10] sm:$0xff] }
 0x33f   : > { %v2592_v3 = vadd.f32 %v2584_v31, %v2572_v8 }
 0x341   : > { %v2596_v0 = vsel %vm978_vm0, %v2592_v3, -inf  ;;  %3589 = vmatpush3.bf16.msra.mxu1 %v3674_v29 }
 0x342   : > { %v2598_v49 = vmax.f32 %v2595_v28, %v2596_v0  ;;  %v2670_v0 = vld [vmem:[%s6105_s4 + $0x18] sm:$0xff] }
 0x344   : > { %v2599_v60 = vmax.f32 %v2597_v36, %v2598_v49 }
 0x346   : > { %2600 = vmax.xlane.f32.xlu1 %v2599_v60 }
 0x354   : > { %v2620_v16 = vpop.xlane.xlu0 %2619 }
 0x355   : > { %v2621_v17 = vrot.slane %v2620_v16, 4 }
 0x357   : > { %v2622_v7 = vadd.f32 %v2621_v17, %v2620_v16 }
 0x359   : > { %v2623_v20 = vrot.slane %v2622_v7, 2 }
 0x35b   : > { %v2624_v30 = vadd.f32 %v2623_v20, %v2622_v7  ;;  %v2673_v20 = vld [vmem:[%s6105_s4 + $0x30] sm:$0xff] }
 0x35d   : > { %v2625_v21 = vrot.slane %v2624_v30, 1 }
 0x35f   : > { %v2626_v43 = vadd.f32 %v2625_v21, %v2624_v30 }
 0x3cf   : > { %v2601_v45 = vpop.xlane.xlu1 %2600 }
 0x3d0   : > { %v2602_v18 = vrot.slane %v2601_v45, 4 }
 0x3d2   : > { %v2603_v46 = vmax.f32 %v2601_v45, %v2602_v18  ;;  %v2674_v45 = vld [vmem:[%s6105_s4 + $0x38] sm:$0xff] }
 0x3d4   : > { %v2604_v35 = vrot.slane %v2603_v46, 2 }
 0x3d6   : > { %v2605_v52 = vmax.f32 %v2603_v46, %v2604_v35 }
 0x3d8   : > { %v2606_v54 = vrot.slane %v2605_v52, 1 }
 0x3da   : > { %v2607_v26 = vmax.f32 %v2605_v52, %v2606_v54 }
 0x3dc   : > { %3614 = vpush %v2607_v26 }
 0x3dd   : > { %3616 = vpush %v2626_v43 }
 0x40d   : > { %s3615_s24 = spop %3614 }
 0x40e   : > { %v2609_v32 = vstv %s3615_s24  ;;  %s3617_s17 = spop %3616 }
 0x40f   : > { %2611 = vst [vmem:[%s361_s14] sm:$0x1] %v2609_v32  ;;  %s2628_s21 = smul.f32 0.0009765625, %s3617_s17 }
 0x411   : > { %v2629_v15 = vstv %s2628_s21 }
 0x412   : > { %v2630_v25 = vsub.f32 %v5938_v34, %v2629_v15  ;;  %v2631_v22 = vsub.f32 %v5945_v55, %v2629_v15  ;;  %v2632_v13 = vsub.f32 %v5934_v50, %v2629_v15  ;;  %v2633_v41 = vsub.f32 %v5941_v53, %v2629_v15 }
 0x414   : > { %v2634_v42 = vmul.f32 %v2630_v25, %v2630_v25  ;;  %v2635_v61 = vmul.f32 %v2631_v22, %v2631_v22  ;;  %v2636_v24 = vmul.f32 %v2632_v13, %v2632_v13  ;;  %v2637_v39 = vmul.f32 %v2633_v41, %v2633_v41 }
 0x416   : > { %v2638_v47 = vsel %vm978_vm0, %v2634_v42, 0.0  ;;  %v2639_v23 = vsel %vm978_vm0, %v2635_v61, 0.0  ;;  %v2641_v5 = vsel %vm978_vm0, %v2636_v24, 0.0  ;;  %v2643_v6 = vsel %vm978_vm0, %v2637_v39, 0.0 }
 0x417   : > { %v2640_v11 = vadd.f32 %v2639_v23, %v2638_v47  ;;  %v3675_v47 = vld [vmem:[%s6107_s6 + $0x18] sm:$0xff]   ;;  %v3676_v23 = vld [vmem:[%s6107_s6 + $0x10] sm:$0xff]  }
 0x418   : > { %3598 = vmatprep.subr.bf16.mxu0 %v3675_v47 }
 0x419   : > { %v2642_v1 = vadd.f32 %v2641_v5, %v2640_v11  ;;  %3599 = vmatpush3.bf16.msra.mxu0 %v3675_v47  ;;  %v3677_v5 = vld [vmem:[%s6107_s6 + $0x8] sm:$0xff]  }
 0x41a   : > { %3600 = vmatprep.subr.bf16.mxu0 %v3676_v23 }
 0x41b   : > { %v2644_v10 = vadd.f32 %v2643_v6, %v2642_v1  ;;  %v3678_v1 = vld [vmem:[%s6107_s6] sm:$0xff]  }
 0x41d   : > { %2645 = vadd.xlane.f32.xlu0 %v2644_v10  ;;  %3601 = vmatpush3.bf16.msra.mxu0 %v3676_v23 }
 0x41e   : > { %3602 = vmatprep.subr.bf16.mxu0 %v3677_v5 }
 0x421   : > { %3603 = vmatpush3.bf16.msra.mxu0 %v3677_v5 }
 0x422   : > { %3604 = vmatprep.subr.bf16.mxu0 %v3678_v1 }
 0x425   : > { %3605 = vmatpush3.bf16.msra.mxu0 %v3678_v1 }
 0x4a6   : > { %v2646_v62 = vpop.xlane.xlu0 %2645 }
 0x4a7   : > { %v2647_v48 = vrot.slane %v2646_v62, 4 }
 0x4a9   : > { %v2648_v4 = vadd.f32 %v2647_v48, %v2646_v62 }
 0x4ab   : > { %v2649_v19 = vrot.slane %v2648_v4, 2 }
 0x4ad   : > { %v2650_v33 = vadd.f32 %v2649_v19, %v2648_v4 }
 0x4af   : > { %v2651_v38 = vrot.slane %v2650_v33, 1 }
 0x4b1   : > { %v2652_v57 = vadd.f32 %v2651_v38, %v2650_v33 }
 0x4b3   : > { %3618 = vpush %v2652_v57 }
 0x4e4   : > { %s3619_s12 = spop %3618 }
 0x4e5   : > { %s2654_s13 = smul.f32 0.0009775171, %s3619_s12 }
 0x4e7   : > { %v2655_v2 = vstv %s2654_s13 }
 0x4e8   : > { %3743 = vrsqrt.f32 %v2655_v2 }
 0x4f5   : > { %v3744_v59 = vpop.eup %3743 }
 0x4f6   : > { %3620 = vpush %v3744_v59 }
 0x527   : > { %s3621_s20 = spop %3620 }
 0x528   : > { %v2658_v8 = vstv %s3621_s20 }
 0x529   : > { %v2659_v12 = vmul.f32 %v2658_v8, %v2630_v25  ;;  %v2660_v58 = vmul.f32 %v2658_v8, %v2631_v22  ;;  %v2661_v9 = vmul.f32 %v2658_v8, %v2632_v13  ;;  %v2662_v63 = vmul.f32 %v2658_v8, %v2633_v41 }
 0x52b   : > { %v2663_v31 = vsel %vm978_vm0, %v2659_v12, %v5938_v34  ;;  %v2664_v37 = vsel %vm978_vm0, %v2660_v58, %v5945_v55  ;;  %v2665_v3 = vsel %vm978_vm0, %v2661_v9, %v5934_v50  ;;  %v2666_v28 = vsel %vm978_vm0, %v2662_v63, %v5941_v53  ;;  %v2671_v50 = vld [vmem:[%s6105_s4 + $0x20] sm:$0xff]  ;;  %v2672_v53 = vld [vmem:[%s6105_s4 + $0x28] sm:$0xff] }
 0x52c   : > { %v2675_v36 = vmul.f32 %v2667_v51, %v2663_v31  ;;  %v2676_v49 = vmul.f32 %v2668_v56, %v2664_v37  ;;  %v2677_v34 = vmul.f32 %v2669_v44, %v2665_v3  ;;  %v2678_v60 = vmul.f32 %v2670_v0, %v2666_v28 }
 0x52d   : > { %v2679_v55 = vmul.f32 %v2671_v50, %v2663_v31  ;;  %v2680_v17 = vmul.f32 %v2672_v53, %v2664_v37  ;;  %v2681_v18 = vmul.f32 %v2673_v20, %v2665_v3  ;;  %v2682_v46 = vmul.f32 %v2674_v45, %v2666_v28  ;;  %v2986_v20 = vld [vmem:[%s6108_s7 + $0x20] sm:$0xff] }
 0x52e   : > { %v2683_v16 = vpack.c.bf16 %v2676_v49, %v2675_v36  ;;  %v2684_v7 = vpack.c.bf16 %v2678_v60, %v2677_v34  ;;  %v2984_v36 = vld [vmem:[%s6108_s7 + $0x10] sm:$0xff] }
 0x52f   : > { %v2685_v30 = vpack.c.bf16 %v2680_v17, %v2679_v55  ;;  %v2686_v35 = vpack.c.bf16 %v2682_v46, %v2681_v18  ;;  %v2985_v55 = vld [vmem:[%s6108_s7 + $0x18] sm:$0xff]  ;;  %v2983_v18 = vld [vmem:[%s6108_s7 + $0x8] sm:$0xff] }
 0x530   : > { %2695 = vxpose.xlu0.c.b16.start [1/4] (short) (narrow) %v2683_v16, 64  ;;  %v2982_v16 = vld [vmem:[%s6108_s7] sm:$0xff] }
 0x534   : > { %2696 = vxpose.xlu0.c.b16.cont [2/4] (short) (narrow) %v2684_v7, 64 }
 0x538   : > { %2697 = vxpose.xlu0.c.b16.cont [3/4] (short) (narrow) %v2685_v30, 64 }
 0x53c   : > { %2698 = vxpose.xlu0.c.b16.end [4/4] (short) (narrow) %v2686_v35, 64  ;;  %v2988_v35 = vld [vmem:[%s6108_s7 + $0x30] sm:$0xff] }
 0x592   : > { %v2703_v52 = vpop.trf.xlu0 }
 0x593   : > { %3590 = vmatprep.mubr.msk.bf16.mxu1 %vm2735_vm1, %v2703_v52 }
 0x596   : > { %v2704_v21 = vpop.trf.xlu0 }
 0x597   : > { %3591 = vmatmul.mubr.msk.bf16.vlgmr.msra.gmra.mxu1 %vm2735_vm1, %v2704_v21 }
 0x59a   : > { %v2705_v54 = vpop.trf.xlu0 }
 0x59b   : > { %3594 = vmatprep.mubr.msk.bf16.mxu1 %vm2735_vm1, %v2705_v54 }
 0x59e   : > { %v2706_v26 = vpop.trf.xlu0 }
 0x59f   : > { %3595 = vmatmul.mubr.msk.bf16.gmra.mxu1 %vm2735_vm1, %v2706_v26  ;;  %v2987_v26 = vld [vmem:[%s6108_s7 + $0x28] sm:$0xff] }
 0x657   : > { %v3592_v43 = vpop.f32.mrf.mxu1 }
 0x659   : > { %v2782_v32 = vpop.f32.mrf.mxu1 }
 0x65b   : > { %v3593_v15 = vpop.f32.mrf.mxu1 }
 0x65c   : > { %v3660_v11 = vpack.i.bf16 %v3593_v15, %v3592_v43 }
 0x65d   : > { %v2785_v25 = vpop.f32.mrf.mxu1 }
 0x65e   : > { %v3655_v39 = vpack.i.bf16 %v2785_v25, %v2782_v32 }
 0x65f   : > { %v3596_v22 = vpop.f32.mrf.mxu1 }
 0x661   : > { %v2798_v13 = vpop.f32.mrf.mxu1 }
 0x663   : > { %v3597_v41 = vpop.f32.mrf.mxu1 }
 0x664   : > { %v3645_v42 = vpack.i.bf16 %v3597_v41, %v3596_v22 }
 0x665   : > { %v2801_v61 = vpop.f32.mrf.mxu1 }
 0x666   : > { %3646 = vrot.lane.b32.xlu1 %v3645_v42, %s3755_s16  ;;  %v3650_v24 = vpack.i.bf16 %v2801_v61, %v2798_v13 }
 0x66a   : > { %3651 = vrot.lane.b32.xlu1 %v3650_v24, %s3755_s16  ;;  %s3235_s16 = sshll.u32 %s6476_s10, 6 }
 0x66b   : > { %s358_s26 = scalar_lea.vmem %s6109_s8, %s3235_s16 }
 0x66e   : > { %3656 = vrot.lane.b32.xlu1 %v3655_v39, %s3754_s15 }
 0x672   : > { %3661 = vrot.lane.b32.xlu1 %v3660_v11, %s3754_s15 }
 0x6d8   : > { %v3647_v6 = vpop.permute.xlu1 %3646 }
 0x6d9   : > { %v3649_v62 = vunpack.i.h.bf16 %v3647_v6  ;;  %v3648_v48 = vunpack.i.l.bf16 %v3647_v6 }
 0x6db   : > { %v2831_v2 = vsel %vm978_vm0, %v3592_v43, %v3648_v48  ;;  %v2832_v59 = vsel %vm978_vm0, %v3593_v15, %v3649_v62  ;;  %v2989_v15 = vld [vmem:[%s6108_s7 + $0x38] sm:$0xff] }
 0x6dc   : > { %v3652_v10 = vpop.permute.xlu1 %3651  ;;  %v2854_v8 = vpack.c.bf16 %v2832_v59, %v2831_v2 }
 0x6dd   : > { %v3654_v4 = vunpack.i.h.bf16 %v3652_v10  ;;  %v3653_v19 = vunpack.i.l.bf16 %v3652_v10 }
 0x6df   : > { %v2829_v33 = vsel %vm978_vm0, %v2782_v32, %v3653_v19  ;;  %v2830_v38 = vsel %vm978_vm0, %v2785_v25, %v3654_v4 }
 0x6e0   : > { %v3657_v57 = vpop.permute.xlu1 %3656  ;;  %v2853_v40 = vpack.c.bf16 %v2830_v38, %v2829_v33 }
 0x6e1   : > { %v3659_v27 = vunpack.i.h.bf16 %v3657_v57  ;;  %v3658_v14 = vunpack.i.l.bf16 %v3657_v57 }
 0x6e2   : > { %2865 = vxpose.xlu1.c.b16.start [1/4] (short) (narrow) %v2853_v40, 64 }
 0x6e3   : > { %v2849_v9 = vsel %vm978_vm0, %v3658_v14, %v2798_v13  ;;  %v2850_v63 = vsel %vm978_vm0, %v3659_v27, %v2801_v61 }
 0x6e4   : > { %v3662_v29 = vpop.permute.xlu1 %3661  ;;  %v2855_v51 = vpack.c.bf16 %v2850_v63, %v2849_v9 }
 0x6e5   : > { %v3664_v12 = vunpack.i.h.bf16 %v3662_v29  ;;  %v3663_v58 = vunpack.i.l.bf16 %v3662_v29 }
 0x6e6   : > { %2866 = vxpose.xlu1.c.b16.cont [2/4] (short) (narrow) %v2854_v8, 64 }
 0x6e7   : > { %v2851_v56 = vsel %vm978_vm0, %v3663_v58, %v3596_v22  ;;  %v2852_v31 = vsel %vm978_vm0, %v3664_v12, %v3597_v41 }
 0x6e8   : > { %v2856_v37 = vpack.c.bf16 %v2852_v31, %v2851_v56 }
 0x6ea   : > { %2867 = vxpose.xlu1.c.b16.cont [3/4] (short) (narrow) %v2855_v51, 64 }
 0x6ee   : > { %2868 = vxpose.xlu1.c.b16.end [4/4] (short) (narrow) %v2856_v37, 64 }
 0x744   : > { %v2873_v3 = vpop.trf.xlu1 }
 0x745   : > { %3606 = vmatprep.mubr.msk.bf16.mxu0 %vm2735_vm1, %v2873_v3 }
 0x748   : > { %v2874_v28 = vpop.trf.xlu1 }
 0x749   : > { %3607 = vmatmul.mubr.msk.bf16.vlgmr.msra.gmra.mxu0 %vm2735_vm1, %v2874_v28 }
 0x74c   : > { %v2875_v44 = vpop.trf.xlu1 }
 0x74d   : > { %3610 = vmatprep.mubr.msk.bf16.mxu0 %vm2735_vm1, %v2875_v44 }
 0x750   : > { %v2876_v0 = vpop.trf.xlu1 }
 0x751   : > { %3611 = vmatmul.mubr.msk.bf16.gmra.mxu0 %vm2735_vm1, %v2876_v0 }
 0x809   : > { %v3608_v49 = vpop.f32.mrf.mxu0 }
 0x80a   : > { %v2992_v34 = vmul.f32 %v3608_v49, %v2984_v36 }
 0x80b   : > { %v2951_v60 = vpop.f32.mrf.mxu0 }
 0x80c   : > { %3006 = vrot.lane.b32.xlu0 %v2992_v34, %s3754_s15  ;;  %v2990_v53 = vmul.f32 %v2982_v16, %v2951_v60 }
 0x80d   : > { %v3609_v50 = vpop.f32.mrf.mxu0 }
 0x80e   : > { %v2993_v45 = vmul.f32 %v3609_v50, %v2985_v55 }
 0x80f   : > { %v2954_v17 = vpop.f32.mrf.mxu0 }
 0x810   : > { %3002 = vrot.lane.b32.xlu0 %v2990_v53, %s3754_s15  ;;  %v2991_v21 = vmul.f32 %v2983_v18, %v2954_v17 }
 0x811   : > { %v3612_v7 = vpop.f32.mrf.mxu0 }
 0x812   : > { %v2996_v43 = vmul.f32 %v3612_v7, %v2988_v35 }
 0x813   : > { %v2967_v46 = vpop.f32.mrf.mxu0 }
 0x814   : > { %v2994_v30 = vmul.f32 %v2986_v20, %v2967_v46  ;;  %3008 = vrot.lane.b32.xlu0 %v2993_v45, %s3754_s15 }
 0x815   : > { %v3613_v52 = vpop.f32.mrf.mxu0 }
 0x816   : > { %3026 = vrot.lane.b32.xlu1 %v2994_v30, %s3754_s15  ;;  %v2997_v25 = vmul.f32 %v3613_v52, %v2989_v15 }
 0x817   : > { %v2970_v54 = vpop.f32.mrf.mxu0 }
 0x818   : > { %3004 = vrot.lane.b32.xlu0 %v2991_v21, %s3754_s15  ;;  %v2995_v32 = vmul.f32 %v2987_v26, %v2970_v54 }
 0x81a   : > { %3030 = vrot.lane.b32.xlu1 %v2996_v43, %s3754_s15 }
 0x81c   : > { %3028 = vrot.lane.b32.xlu0 %v2995_v32, %s3754_s15 }
 0x820   : > { %3032 = vrot.lane.b32.xlu0 %v2997_v25, %s3754_s15 }
 0x87e   : > { %v3007_v22 = vpop.permute.xlu0 %3006 }
 0x87f   : > { %v3016_v13 = vadd.f32 %v3007_v22, %v2992_v34 }
 0x881   : > { %3020 = vst.msk [vmem:[%s358_s26 + $0x10] sm:$0xff] %vm978_vm0, %v3016_v13 }
 0x882   : > { %v3003_v41 = vpop.permute.xlu0 %3002 }
 0x883   : > { %v3014_v42 = vadd.f32 %v3003_v41, %v2990_v53 }
 0x885   : > { %3018 = vst.msk [vmem:[%s358_s26] sm:$0xff] %vm978_vm0, %v3014_v42 }
 0x886   : > { %v3009_v61 = vpop.permute.xlu0 %3008 }
 0x887   : > { %v3017_v24 = vadd.f32 %v3009_v61, %v2993_v45 }
 0x888   : > { %v3027_v39 = vpop.permute.xlu1 %3026 }
 0x889   : > { %3021 = vst.msk [vmem:[%s358_s26 + $0x18] sm:$0xff] %vm978_vm0, %v3017_v24  ;;  %v3038_v47 = vadd.f32 %v3027_v39, %v2994_v30 }
 0x88a   : > { %v3005_v23 = vpop.permute.xlu0 %3004 }
 0x88b   : > { %3042 = vst.msk [vmem:[%s358_s26 + $0x20] sm:$0xff] %vm978_vm0, %v3038_v47  ;;  %v3015_v11 = vadd.f32 %v3005_v23, %v2991_v21 }
 0x88c   : > { %v3031_v5 = vpop.permute.xlu1 %3030 }
 0x88d   : > { %3019 = vst.msk [vmem:[%s358_s26 + $0x8] sm:$0xff] %vm978_vm0, %v3015_v11  ;;  %v3040_v1 = vadd.f32 %v3031_v5, %v2996_v43 }
 0x88e   : > { %v3029_v6 = vpop.permute.xlu0 %3028 }
 0x88f   : > { %3044 = vst.msk [vmem:[%s358_s26 + $0x30] sm:$0xff] %vm978_vm0, %v3040_v1  ;;  %v3039_v10 = vadd.f32 %v3029_v6, %v2995_v32 }
 0x891   : > { %3043 = vst.msk [vmem:[%s358_s26 + $0x28] sm:$0xff] %vm978_vm0, %v3039_v10 }
 0x892   : > { %v3033_v62 = vpop.permute.xlu0 %3032 }
 0x893   : > { %v3041_v48 = vadd.f32 %v3033_v62, %v2997_v25 }
 0x895   : > { %3045 = vst.msk [vmem:[%s358_s26 + $0x38] sm:$0xff] %vm978_vm0, %v3041_v48 }
 0x896 PF: > { %s20_s30 = sadd.s32 1, %s3751_s30  }
 0x897   : > { %p17_p4 = scmp.ge.s32.totalorder %s20_s30, 4  }
 0x899   :  { %19 = sbr.rel (!%p17_p4) target bundleno = 1 (0x1), region = 99 }

</bundles_post_ra>
